<compile_context>
chip_gen: v5e
topology: v5e:2x2
jax: 0.10.0
libtpu: 0.0.40
codegen_flags: <defaults>
</compile_context>

<pallas_src>
import jax
import jax.numpy as jnp
from jax.experimental import pallas as pl
from jax.experimental.pallas import tpu as pltpu


# ----------------------------------------------------------------------------
# Fused forward kernel (single invocation, whole batch resident in VMEM).
#   gi*_ref : (L, B, 3H)   precomputed input projections (x W_ih + b_ih), [r|z|n]
#   sel_ref : (Lw*B, Lc*B) block-diagonal, count-normalized span selector
#   whh_ref : (3, H, 3H)   recurrent weights (char, word, ner), h @ W layout
#   bhh_ref : (3, 1, 3H)   recurrent biases
#   winn_ref: (2, H, 3H)   NER W_ih split into the c2w half and the wemb half
#   bihn_ref: (1, 3H)      NER b_ih
#   fcw/fcb : (1, H) / (1, 1)
#   out_ref : (Lw*B, 1)    logits, flat row index = w*B + b
#   scratch : char / word / ner hidden states, flat row index = t*B + b
# ----------------------------------------------------------------------------
def _cwner_kernel(gic_ref, giw_ref, sel_ref, whh_ref, bhh_ref,
                  winn_ref, bihn_ref, fcw_ref, fcb_ref,
                  out_ref,
                  cemb_ref, wemb_ref, nerh_ref):
    Lc, B, H3 = gic_ref.shape
    Lw = giw_ref.shape[0]
    H = H3 // 3

    def gru(load_gi, whh, bhh, hout_ref, seq_len):
        # Batched GRU (torch gate order r, z, n): ONE fused (B,H)x(H,3H)
        # recurrent matmul per step; static loop -> fully unrolled.
        h = jnp.zeros((B, H), jnp.float32)
        for t in range(seq_len):
            gi_t = load_gi(t)                                           # (B, 3H)
            hw = jnp.dot(h, whh, preferred_element_type=jnp.float32) + bhh
            r = jax.nn.sigmoid(gi_t[:, :H] + hw[:, :H])
            z = jax.nn.sigmoid(gi_t[:, H:2 * H] + hw[:, H:2 * H])
            n = jnp.tanh(gi_t[:, 2 * H:] + r * hw[:, 2 * H:])
            h = (1.0 - z) * n + z * h
            hout_ref[pl.ds(t * B, B), :] = h                            # rows t*B..t*B+B-1

    # 1) char GRU and 2) word GRU (input projections hoisted to the wrapper).
    gru(lambda t: gic_ref[t], whh_ref[0], bhh_ref[0], cemb_ref, Lc)
    gru(lambda t: giw_ref[t], whh_ref[1], bhh_ref[1], wemb_ref, Lw)

    # 3) char -> word span-mean pooling: single matmul against the
    #    block-diagonal, pre-normalized selector (empty spans -> zero rows).
    c2w = jnp.dot(sel_ref[...], cemb_ref[...],
                  preferred_element_type=jnp.float32)                   # (Lw*B, H)

    # 4) NER input projection with the concat fused away:
    #    feat @ W_ih == c2w @ W_ih[:H] + wemb @ W_ih[H:]
    wemb = wemb_ref[...]                                                # (Lw*B, H)
    gin = (jnp.dot(c2w, winn_ref[0], preferred_element_type=jnp.float32)
           + jnp.dot(wemb, winn_ref[1], preferred_element_type=jnp.float32)
           + bihn_ref[...])                                             # (Lw*B, 3H)

    # 5) NER GRU (reads per-step (B,3H) rows straight out of the gin value).
    gru(lambda t: gin[t * B:(t + 1) * B, :], whh_ref[2], bhh_ref[2], nerh_ref, Lw)

    # 6) Linear(H, 1) epilogue: elementwise mul + lane reduction.
    out_ref[...] = (jnp.sum(nerh_ref[...] * fcw_ref[...], axis=-1, keepdims=True)
                    + fcb_ref[...])


# ----------------------------------------------------------------------------
# Forward wrapper: embedding gathers + hoisted input projections + pooling
# operator construction in XLA, then one pallas_call for everything else.
# ----------------------------------------------------------------------------
@jax.jit
def cwner_forward(params, cx, wx, cspans, cmask, wmask):
    del cmask, wmask   # see TODO(synk) at top of file
    B, Lc = cx.shape
    Lw = wx.shape[1]

    wih_c, whh_c, bih_c, bhh_c = params['crnn']     # (E,3H),(H,3H),(3H,),(3H,)
    wih_w, whh_w, bih_w, bhh_w = params['wrnn']
    wih_n, whh_n, bih_n, bhh_n = params['nernn']    # wih_n: (2H, 3H)
    H = whh_c.shape[0]

    char_x = params['char_emb'][cx].astype(jnp.float32)        # (B, Lc, E)
    word_x = params['word_emb'][wx].astype(jnp.float32)        # (B, Lw, E)

    # Hoisted GRU input projections, time-major (L, B, 3H).
    gi_c = jnp.einsum('ble,eg->lbg', char_x, wih_c) + bih_c
    gi_w = jnp.einsum('ble,eg->lbg', word_x, wih_w) + bih_w

    # Pre-normalized block-diagonal span selector (Lw*B, Lc*B):
    #   sel[w*B+b, c*B+b'] = [b'==b] * [first<=c<last] / count   (0 if empty span)
    first = cspans[..., 0].astype(jnp.int32)                   # (B, Lw)
    last = cspans[..., 1].astype(jnp.int32)
    cnt = (last - first).astype(jnp.float32)
    c_idx = jnp.arange(Lc, dtype=jnp.int32)
    hit = ((c_idx[None, None, :] >= first[..., None]) &
           (c_idx[None, None, :] < last[..., None])).astype(jnp.float32)
    inv = jnp.where(cnt > 0, 1.0 / jnp.maximum(cnt, 1.0), 0.0)
    selnorm = hit * inv[..., None]                             # (B, Lw, Lc)
    eye = jnp.eye(B, dtype=jnp.float32)
    sel_bd = jnp.einsum('bwc,bp->wbcp', selnorm, eye).reshape(Lw * B, Lc * B)

    # Packed constant operands.
    whh_all = jnp.stack([whh_c, whh_w, whh_n])                 # (3, H, 3H)
    bhh_all = jnp.stack([bhh_c, bhh_w, bhh_n])[:, None, :]     # (3, 1, 3H)
    winn_all = jnp.stack([wih_n[:H], wih_n[H:]])               # (2, H, 3H)
    bihn = bih_n[None, :]                                      # (1, 3H)

    out_flat = pl.pallas_call(
        _cwner_kernel,
        out_shape=jax.ShapeDtypeStruct((Lw * B, 1), jnp.float32),
        in_specs=[pl.BlockSpec(memory_space=pltpu.MemorySpace.VMEM)] * 9,
        out_specs=pl.BlockSpec(memory_space=pltpu.MemorySpace.VMEM),
        scratch_shapes=[
            pltpu.VMEM((Lc * B, H), jnp.float32),   # char GRU outputs (row c*B+b)
            pltpu.VMEM((Lw * B, H), jnp.float32),   # word GRU outputs (row w*B+b)
            pltpu.VMEM((Lw * B, H), jnp.float32),   # NER  GRU outputs (row w*B+b)
        ],
    )(gi_c, gi_w, sel_bd, whh_all, bhh_all, winn_all, bihn,
      params['fc_w'], params['fc_b'])

    # flat row index = w*B + b  ->  (B, Lw, 1)
    return out_flat.reshape(Lw, B, 1).transpose(1, 0, 2)


# ----------------------------------------------------------------------------
# Pure-JAX reference + deterministic parameter init
# ----------------------------------------------------------------------------
def _gru_ref(x, w_ih, w_hh, b_ih, b_hh):
    Bsz = x.shape[0]
    H = w_hh.shape[0]

    def step(h, xt):
        gi = xt @ w_ih + b_ih                      # (B, 3H), gate order r,z,n
        gh = h @ w_hh + b_hh
        r = jax.nn.sigmoid(gi[:, :H] + gh[:, :H])
        z = jax.nn.sigmoid(gi[:, H:2 * H] + gh[:, H:2 * H])
        n = jnp.tanh(gi[:, 2 * H:] + r * gh[:, 2 * H:])
        h_new = (1.0 - z) * n + z * h
        return h_new, h_new

    h0 = jnp.zeros((Bsz, H), jnp.float32)
    _, ys = jax.lax.scan(step, h0, jnp.transpose(x, (1, 0, 2)).astype(jnp.float32))
    return jnp.transpose(ys, (1, 0, 2))


def cwner_reference(params, cx, wx, cspans, cmask, wmask):
    del cmask, wmask
    cemb = _gru_ref(params['char_emb'][cx], *params['crnn'])
    wemb = _gru_ref(params['word_emb'][wx], *params['wrnn'])
    first = cspans[..., 0]
    last = cspans[..., 1]
    Lc = cemb.shape[1]
    c_idx = jnp.arange(Lc)
    sel = ((c_idx[None, None, :] >= first[..., None]) &
           (c_idx[None, None, :] < last[..., None])).astype(jnp.float32)
    acc = jnp.einsum('bwc,bch->bwh', sel, cemb)
    n = (last - first).astype(jnp.float32)[..., None]
    c2w = jnp.where(n > 0, acc / jnp.maximum(n, 1.0), 0.0)
    feat = jnp.concatenate([c2w, wemb], axis=-1)
    rnn_o = _gru_ref(feat, *params['nernn'])
    return rnn_o @ params['fc_w'].T + params['fc_b']


def init_params(key, cvocab, wvocab, E, H):
    ks = iter(jax.random.split(key, 16))
    scale = 1.0 / float(H) ** 0.5

    def uni(shape):
        return jax.random.uniform(next(ks), shape, jnp.float32, -scale, scale)

    def gru_params(in_size):
        return (uni((in_size, 3 * H)),   # W_ih^T, gates [r|z|n] along lanes
                uni((H, 3 * H)),         # W_hh^T
                uni((3 * H,)),           # b_ih
                uni((3 * H,)))           # b_hh

    return {
        'char_emb': jax.random.normal(next(ks), (cvocab, E), jnp.float32),
        'word_emb': jax.random.normal(next(ks), (wvocab, E), jnp.float32),
        'crnn': gru_params(E),
        'wrnn': gru_params(E),
        'nernn': gru_params(2 * E),
        'fc_w': uni((1, H)),
        'fc_b': uni((1, 1)),
    }


if __name__ == "__main__":
    B, Lc, Lw = 2, 16, 8
    E = H = 32                      # emb_size must equal hidden size (see header)
    CVOCAB, WVOCAB = 50, 40

    key = jax.random.PRNGKey(0)
    k_cx, k_wx, k_par = jax.random.split(key, 3)
    cx = jax.random.randint(k_cx, (B, Lc), 0, CVOCAB, dtype=jnp.int32)
    wx = jax.random.randint(k_wx, (B, Lw), 0, WVOCAB, dtype=jnp.int32)

    # Consistent spans / masks: batch 0 has 8 words, batch 1 has 6; word w
    # covers char positions [2w, 2w+2).
    n_words = jnp.array([8, 6], dtype=jnp.int32)
    w_idx = jnp.arange(Lw, dtype=jnp.int32)
    valid = w_idx[None, :] < n_words[:, None]              # (B, Lw)
    first = jnp.where(valid, 2 * w_idx[None, :], 0)
    last = jnp.where(valid, 2 * w_idx[None, :] + 2, 0)
    cspans = jnp.stack([first, last], axis=-1)             # (B, Lw, 2)
    c_idx = jnp.arange(Lc, dtype=jnp.int32)
    cmask = c_idx[None, :] < (2 * n_words)[:, None]        # (B, Lc)
    wmask = valid                                          # (B, Lw)

    params = init_params(k_par, CVOCAB, WVOCAB, E, H)

    out = cwner_forward(params, cx, wx, cspans, cmask, wmask)
    out = jax.block_until_ready(out)
    assert out.shape == (B, Lw, 1)

    # Reference at highest matmul precision; tolerance covers the TPU's
    # default-precision (bf16-product) f32 matmuls in the kernel path.
    # A gate-order / bias-layout bug would show O(0.1-1) errors.
    with jax.default_matmul_precision('highest'):
        ref = cwner_reference(params, cx, wx, cspans, cmask, wmask)
    max_err = float(jnp.max(jnp.abs(out - ref)))
    assert max_err < 1e-2, f"max abs error vs reference: {max_err}"

    print("KERNEL_OK")
</pallas_src>

<mosaic_0001>
module attributes {stable_mosaic.version = 11 : i64} {
  func.func @_cwner_kernel(%arg0: memref<16x2x96xf32, #tpu.memory_space<vmem>>, %arg1: memref<8x2x96xf32, #tpu.memory_space<vmem>>, %arg2: memref<16x32xf32, #tpu.memory_space<vmem>>, %arg3: memref<3x32x96xf32, #tpu.memory_space<vmem>>, %arg4: memref<3x1x96xf32, #tpu.memory_space<vmem>>, %arg5: memref<2x32x96xf32, #tpu.memory_space<vmem>>, %arg6: memref<1x96xf32, #tpu.memory_space<vmem>>, %arg7: memref<1x32xf32, #tpu.memory_space<vmem>>, %arg8: memref<1x1xf32, #tpu.memory_space<vmem>>, %arg9: memref<16x1xf32, #tpu.memory_space<vmem>>, %arg10: memref<32x32xf32, #tpu.memory_space<vmem>>, %arg11: memref<16x32xf32, #tpu.memory_space<vmem>>, %arg12: memref<16x32xf32, #tpu.memory_space<vmem>>) attributes {dimension_semantics = [], scalar_prefetch = 0 : i64, scratch_operands = 3 : i64, tpu.core_type = #tpu.core_type<tc>} {
    %c0 = arith.constant 0 : index
    %c0_0 = arith.constant 0 : index
    %c0_1 = arith.constant 0 : index
    %0 = vector.load %arg3[%c0, %c0_0, %c0_1] : memref<3x32x96xf32, #tpu.memory_space<vmem>>, vector<1x32x96xf32>
    %1 = vector.shape_cast %0 : vector<1x32x96xf32> to vector<32x96xf32>
    %c0_2 = arith.constant 0 : index
    %c0_3 = arith.constant 0 : index
    %c0_4 = arith.constant 0 : index
    %2 = vector.load %arg4[%c0_2, %c0_3, %c0_4] : memref<3x1x96xf32, #tpu.memory_space<vmem>>, vector<1x1x96xf32>
    %3 = vector.shape_cast %2 : vector<1x1x96xf32> to vector<1x96xf32>
    %cst = arith.constant 0.000000e+00 : f32
    %4 = vector.broadcast %cst : f32 to vector<2x32xf32>
    %c0_5 = arith.constant 0 : index
    %c0_6 = arith.constant 0 : index
    %c0_7 = arith.constant 0 : index
    %5 = vector.load %arg0[%c0_5, %c0_6, %c0_7] : memref<16x2x96xf32, #tpu.memory_space<vmem>>, vector<1x2x96xf32>
    %6 = vector.shape_cast %5 : vector<1x2x96xf32> to vector<2x96xf32>
    %cst_8 = arith.constant dense<0.000000e+00> : vector<2x96xf32>
    %7 = tpu.matmul %4, %1, %cst_8 {dimension_numbers = #tpu.dot_dimension_numbers<[1], [0], [0], [1], [0, 0, 1, 1], [], []>} : vector<2x32xf32>, vector<32x96xf32>, vector<2x96xf32> -> vector<2x96xf32>
    %8 = vector.broadcast %3 : vector<1x96xf32> to vector<2x96xf32>
    %9 = arith.addf %7, %8 : vector<2x96xf32>
    %10 = vector.extract_strided_slice %6 {offsets = [0, 0], sizes = [2, 32], strides = [1, 1]} : vector<2x96xf32> to vector<2x32xf32>
    %11 = vector.extract_strided_slice %9 {offsets = [0, 0], sizes = [2, 32], strides = [1, 1]} : vector<2x96xf32> to vector<2x32xf32>
    %12 = arith.addf %10, %11 : vector<2x32xf32>
    %13 = arith.negf %12 : vector<2x32xf32>
    %14 = math.exp %13 : vector<2x32xf32>
    %cst_9 = arith.constant 1.000000e+00 : f32
    %15 = vector.broadcast %cst_9 : f32 to vector<2x32xf32>
    %16 = arith.addf %15, %14 : vector<2x32xf32>
    %17 = arith.divf %15, %16 : vector<2x32xf32>
    %18 = vector.extract_strided_slice %6 {offsets = [0, 32], sizes = [2, 32], strides = [1, 1]} : vector<2x96xf32> to vector<2x32xf32>
    %19 = vector.extract_strided_slice %9 {offsets = [0, 32], sizes = [2, 32], strides = [1, 1]} : vector<2x96xf32> to vector<2x32xf32>
    %20 = arith.addf %18, %19 : vector<2x32xf32>
    %21 = arith.negf %20 : vector<2x32xf32>
    %22 = math.exp %21 : vector<2x32xf32>
    %cst_10 = arith.constant 1.000000e+00 : f32
    %23 = vector.broadcast %cst_10 : f32 to vector<2x32xf32>
    %24 = arith.addf %23, %22 : vector<2x32xf32>
    %25 = arith.divf %23, %24 : vector<2x32xf32>
    %26 = vector.extract_strided_slice %6 {offsets = [0, 64], sizes = [2, 32], strides = [1, 1]} : vector<2x96xf32> to vector<2x32xf32>
    %27 = vector.extract_strided_slice %9 {offsets = [0, 64], sizes = [2, 32], strides = [1, 1]} : vector<2x96xf32> to vector<2x32xf32>
    %28 = arith.mulf %17, %27 : vector<2x32xf32>
    %29 = arith.addf %26, %28 : vector<2x32xf32>
    %30 = math.tanh %29 : vector<2x32xf32>
    %cst_11 = arith.constant 1.000000e+00 : f32
    %31 = vector.broadcast %cst_11 : f32 to vector<2x32xf32>
    %32 = arith.subf %31, %25 : vector<2x32xf32>
    %33 = arith.mulf %32, %30 : vector<2x32xf32>
    %34 = arith.mulf %25, %4 : vector<2x32xf32>
    %35 = arith.addf %33, %34 : vector<2x32xf32>
    %c0_12 = arith.constant 0 : index
    %c0_13 = arith.constant 0 : index
    %36 = vector.load %arg10[%c0_12, %c0_13] : memref<32x32xf32, #tpu.memory_space<vmem>>, vector<2x32xf32>
    tpu.vector_store %arg10[%c0_12, %c0_13], %35 {strides = array<i32>} : memref<32x32xf32, #tpu.memory_space<vmem>>, vector<2x32xf32>,
    %c1 = arith.constant 1 : index
    %c0_14 = arith.constant 0 : index
    %c0_15 = arith.constant 0 : index
    %37 = vector.load %arg0[%c1, %c0_14, %c0_15] : memref<16x2x96xf32, #tpu.memory_space<vmem>>, vector<1x2x96xf32>
    %38 = vector.shape_cast %37 : vector<1x2x96xf32> to vector<2x96xf32>
    %cst_16 = arith.constant dense<0.000000e+00> : vector<2x96xf32>
    %39 = tpu.matmul %35, %1, %cst_16 {dimension_numbers = #tpu.dot_dimension_numbers<[1], [0], [0], [1], [0, 0, 1, 1], [], []>} : vector<2x32xf32>, vector<32x96xf32>, vector<2x96xf32> -> vector<2x96xf32>
    %40 = vector.broadcast %3 : vector<1x96xf32> to vector<2x96xf32>
    %41 = arith.addf %39, %40 : vector<2x96xf32>
    %42 = vector.extract_strided_slice %38 {offsets = [0, 0], sizes = [2, 32], strides = [1, 1]} : vector<2x96xf32> to vector<2x32xf32>
    %43 = vector.extract_strided_slice %41 {offsets = [0, 0], sizes = [2, 32], strides = [1, 1]} : vector<2x96xf32> to vector<2x32xf32>
    %44 = arith.addf %42, %43 : vector<2x32xf32>
    %45 = arith.negf %44 : vector<2x32xf32>
    %46 = math.exp %45 : vector<2x32xf32>
    %cst_17 = arith.constant 1.000000e+00 : f32
    %47 = vector.broadcast %cst_17 : f32 to vector<2x32xf32>
    %48 = arith.addf %47, %46 : vector<2x32xf32>
    %49 = arith.divf %47, %48 : vector<2x32xf32>
    %50 = vector.extract_strided_slice %38 {offsets = [0, 32], sizes = [2, 32], strides = [1, 1]} : vector<2x96xf32> to vector<2x32xf32>
    %51 = vector.extract_strided_slice %41 {offsets = [0, 32], sizes = [2, 32], strides = [1, 1]} : vector<2x96xf32> to vector<2x32xf32>
    %52 = arith.addf %50, %51 : vector<2x32xf32>
    %53 = arith.negf %52 : vector<2x32xf32>
    %54 = math.exp %53 : vector<2x32xf32>
    %cst_18 = arith.constant 1.000000e+00 : f32
    %55 = vector.broadcast %cst_18 : f32 to vector<2x32xf32>
    %56 = arith.addf %55, %54 : vector<2x32xf32>
    %57 = arith.divf %55, %56 : vector<2x32xf32>
    %58 = vector.extract_strided_slice %38 {offsets = [0, 64], sizes = [2, 32], strides = [1, 1]} : vector<2x96xf32> to vector<2x32xf32>
    %59 = vector.extract_strided_slice %41 {offsets = [0, 64], sizes = [2, 32], strides = [1, 1]} : vector<2x96xf32> to vector<2x32xf32>
    %60 = arith.mulf %49, %59 : vector<2x32xf32>
    %61 = arith.addf %58, %60 : vector<2x32xf32>
    %62 = math.tanh %61 : vector<2x32xf32>
    %cst_19 = arith.constant 1.000000e+00 : f32
    %63 = vector.broadcast %cst_19 : f32 to vector<2x32xf32>
    %64 = arith.subf %63, %57 : vector<2x32xf32>
    %65 = arith.mulf %64, %62 : vector<2x32xf32>
    %66 = arith.mulf %57, %35 : vector<2x32xf32>
    %67 = arith.addf %65, %66 : vector<2x32xf32>
    %c2 = arith.constant 2 : index
    %c0_20 = arith.constant 0 : index
    %68 = vector.load %arg10[%c2, %c0_20] : memref<32x32xf32, #tpu.memory_space<vmem>>, vector<2x32xf32>
    tpu.vector_store %arg10[%c2, %c0_20], %67 {strides = array<i32>} : memref<32x32xf32, #tpu.memory_space<vmem>>, vector<2x32xf32>,
    %c2_21 = arith.constant 2 : index
    %c0_22 = arith.constant 0 : index
    %c0_23 = arith.constant 0 : index
    %69 = vector.load %arg0[%c2_21, %c0_22, %c0_23] : memref<16x2x96xf32, #tpu.memory_space<vmem>>, vector<1x2x96xf32>
    %70 = vector.shape_cast %69 : vector<1x2x96xf32> to vector<2x96xf32>
    %cst_24 = arith.constant dense<0.000000e+00> : vector<2x96xf32>
    %71 = tpu.matmul %67, %1, %cst_24 {dimension_numbers = #tpu.dot_dimension_numbers<[1], [0], [0], [1], [0, 0, 1, 1], [], []>} : vector<2x32xf32>, vector<32x96xf32>, vector<2x96xf32> -> vector<2x96xf32>
    %72 = vector.broadcast %3 : vector<1x96xf32> to vector<2x96xf32>
    %73 = arith.addf %71, %72 : vector<2x96xf32>
    %74 = vector.extract_strided_slice %70 {offsets = [0, 0], sizes = [2, 32], strides = [1, 1]} : vector<2x96xf32> to vector<2x32xf32>
    %75 = vector.extract_strided_slice %73 {offsets = [0, 0], sizes = [2, 32], strides = [1, 1]} : vector<2x96xf32> to vector<2x32xf32>
    %76 = arith.addf %74, %75 : vector<2x32xf32>
    %77 = arith.negf %76 : vector<2x32xf32>
    %78 = math.exp %77 : vector<2x32xf32>
    %cst_25 = arith.constant 1.000000e+00 : f32
    %79 = vector.broadcast %cst_25 : f32 to vector<2x32xf32>
    %80 = arith.addf %79, %78 : vector<2x32xf32>
    %81 = arith.divf %79, %80 : vector<2x32xf32>
    %82 = vector.extract_strided_slice %70 {offsets = [0, 32], sizes = [2, 32], strides = [1, 1]} : vector<2x96xf32> to vector<2x32xf32>
    %83 = vector.extract_strided_slice %73 {offsets = [0, 32], sizes = [2, 32], strides = [1, 1]} : vector<2x96xf32> to vector<2x32xf32>
    %84 = arith.addf %82, %83 : vector<2x32xf32>
    %85 = arith.negf %84 : vector<2x32xf32>
    %86 = math.exp %85 : vector<2x32xf32>
    %cst_26 = arith.constant 1.000000e+00 : f32
    %87 = vector.broadcast %cst_26 : f32 to vector<2x32xf32>
    %88 = arith.addf %87, %86 : vector<2x32xf32>
    %89 = arith.divf %87, %88 : vector<2x32xf32>
    %90 = vector.extract_strided_slice %70 {offsets = [0, 64], sizes = [2, 32], strides = [1, 1]} : vector<2x96xf32> to vector<2x32xf32>
    %91 = vector.extract_strided_slice %73 {offsets = [0, 64], sizes = [2, 32], strides = [1, 1]} : vector<2x96xf32> to vector<2x32xf32>
    %92 = arith.mulf %81, %91 : vector<2x32xf32>
    %93 = arith.addf %90, %92 : vector<2x32xf32>
    %94 = math.tanh %93 : vector<2x32xf32>
    %cst_27 = arith.constant 1.000000e+00 : f32
    %95 = vector.broadcast %cst_27 : f32 to vector<2x32xf32>
    %96 = arith.subf %95, %89 : vector<2x32xf32>
    %97 = arith.mulf %96, %94 : vector<2x32xf32>
    %98 = arith.mulf %89, %67 : vector<2x32xf32>
    %99 = arith.addf %97, %98 : vector<2x32xf32>
    %c4 = arith.constant 4 : index
    %c0_28 = arith.constant 0 : index
    %100 = vector.load %arg10[%c4, %c0_28] : memref<32x32xf32, #tpu.memory_space<vmem>>, vector<2x32xf32>
    tpu.vector_store %arg10[%c4, %c0_28], %99 {strides = array<i32>} : memref<32x32xf32, #tpu.memory_space<vmem>>, vector<2x32xf32>,
    %c3 = arith.constant 3 : index
    %c0_29 = arith.constant 0 : index
    %c0_30 = arith.constant 0 : index
    %101 = vector.load %arg0[%c3, %c0_29, %c0_30] : memref<16x2x96xf32, #tpu.memory_space<vmem>>, vector<1x2x96xf32>
    %102 = vector.shape_cast %101 : vector<1x2x96xf32> to vector<2x96xf32>
    %cst_31 = arith.constant dense<0.000000e+00> : vector<2x96xf32>
    %103 = tpu.matmul %99, %1, %cst_31 {dimension_numbers = #tpu.dot_dimension_numbers<[1], [0], [0], [1], [0, 0, 1, 1], [], []>} : vector<2x32xf32>, vector<32x96xf32>, vector<2x96xf32> -> vector<2x96xf32>
    %104 = vector.broadcast %3 : vector<1x96xf32> to vector<2x96xf32>
    %105 = arith.addf %103, %104 : vector<2x96xf32>
    %106 = vector.extract_strided_slice %102 {offsets = [0, 0], sizes = [2, 32], strides = [1, 1]} : vector<2x96xf32> to vector<2x32xf32>
    %107 = vector.extract_strided_slice %105 {offsets = [0, 0], sizes = [2, 32], strides = [1, 1]} : vector<2x96xf32> to vector<2x32xf32>
    %108 = arith.addf %106, %107 : vector<2x32xf32>
    %109 = arith.negf %108 : vector<2x32xf32>
    %110 = math.exp %109 : vector<2x32xf32>
    %cst_32 = arith.constant 1.000000e+00 : f32
    %111 = vector.broadcast %cst_32 : f32 to vector<2x32xf32>
    %112 = arith.addf %111, %110 : vector<2x32xf32>
    %113 = arith.divf %111, %112 : vector<2x32xf32>
    %114 = vector.extract_strided_slice %102 {offsets = [0, 32], sizes = [2, 32], strides = [1, 1]} : vector<2x96xf32> to vector<2x32xf32>
    %115 = vector.extract_strided_slice %105 {offsets = [0, 32], sizes = [2, 32], strides = [1, 1]} : vector<2x96xf32> to vector<2x32xf32>
    %116 = arith.addf %114, %115 : vector<2x32xf32>
    %117 = arith.negf %116 : vector<2x32xf32>
    %118 = math.exp %117 : vector<2x32xf32>
    %cst_33 = arith.constant 1.000000e+00 : f32
    %119 = vector.broadcast %cst_33 : f32 to vector<2x32xf32>
    %120 = arith.addf %119, %118 : vector<2x32xf32>
    %121 = arith.divf %119, %120 : vector<2x32xf32>
    %122 = vector.extract_strided_slice %102 {offsets = [0, 64], sizes = [2, 32], strides = [1, 1]} : vector<2x96xf32> to vector<2x32xf32>
    %123 = vector.extract_strided_slice %105 {offsets = [0, 64], sizes = [2, 32], strides = [1, 1]} : vector<2x96xf32> to vector<2x32xf32>
    %124 = arith.mulf %113, %123 : vector<2x32xf32>
    %125 = arith.addf %122, %124 : vector<2x32xf32>
    %126 = math.tanh %125 : vector<2x32xf32>
    %cst_34 = arith.constant 1.000000e+00 : f32
    %127 = vector.broadcast %cst_34 : f32 to vector<2x32xf32>
    %128 = arith.subf %127, %121 : vector<2x32xf32>
    %129 = arith.mulf %128, %126 : vector<2x32xf32>
    %130 = arith.mulf %121, %99 : vector<2x32xf32>
    %131 = arith.addf %129, %130 : vector<2x32xf32>
    %c6 = arith.constant 6 : index
    %c0_35 = arith.constant 0 : index
    %132 = vector.load %arg10[%c6, %c0_35] : memref<32x32xf32, #tpu.memory_space<vmem>>, vector<2x32xf32>
    tpu.vector_store %arg10[%c6, %c0_35], %131 {strides = array<i32>} : memref<32x32xf32, #tpu.memory_space<vmem>>, vector<2x32xf32>,
    %c4_36 = arith.constant 4 : index
    %c0_37 = arith.constant 0 : index
    %c0_38 = arith.constant 0 : index
    %133 = vector.load %arg0[%c4_36, %c0_37, %c0_38] : memref<16x2x96xf32, #tpu.memory_space<vmem>>, vector<1x2x96xf32>
    %134 = vector.shape_cast %133 : vector<1x2x96xf32> to vector<2x96xf32>
    %cst_39 = arith.constant dense<0.000000e+00> : vector<2x96xf32>
    %135 = tpu.matmul %131, %1, %cst_39 {dimension_numbers = #tpu.dot_dimension_numbers<[1], [0], [0], [1], [0, 0, 1, 1], [], []>} : vector<2x32xf32>, vector<32x96xf32>, vector<2x96xf32> -> vector<2x96xf32>
    %136 = vector.broadcast %3 : vector<1x96xf32> to vector<2x96xf32>
    %137 = arith.addf %135, %136 : vector<2x96xf32>
    %138 = vector.extract_strided_slice %134 {offsets = [0, 0], sizes = [2, 32], strides = [1, 1]} : vector<2x96xf32> to vector<2x32xf32>
    %139 = vector.extract_strided_slice %137 {offsets = [0, 0], sizes = [2, 32], strides = [1, 1]} : vector<2x96xf32> to vector<2x32xf32>
    %140 = arith.addf %138, %139 : vector<2x32xf32>
    %141 = arith.negf %140 : vector<2x32xf32>
    %142 = math.exp %141 : vector<2x32xf32>
    %cst_40 = arith.constant 1.000000e+00 : f32
    %143 = vector.broadcast %cst_40 : f32 to vector<2x32xf32>
    %144 = arith.addf %143, %142 : vector<2x32xf32>
    %145 = arith.divf %143, %144 : vector<2x32xf32>
    %146 = vector.extract_strided_slice %134 {offsets = [0, 32], sizes = [2, 32], strides = [1, 1]} : vector<2x96xf32> to vector<2x32xf32>
    %147 = vector.extract_strided_slice %137 {offsets = [0, 32], sizes = [2, 32], strides = [1, 1]} : vector<2x96xf32> to vector<2x32xf32>
    %148 = arith.addf %146, %147 : vector<2x32xf32>
    %149 = arith.negf %148 : vector<2x32xf32>
    %150 = math.exp %149 : vector<2x32xf32>
    %cst_41 = arith.constant 1.000000e+00 : f32
    %151 = vector.broadcast %cst_41 : f32 to vector<2x32xf32>
    %152 = arith.addf %151, %150 : vector<2x32xf32>
    %153 = arith.divf %151, %152 : vector<2x32xf32>
    %154 = vector.extract_strided_slice %134 {offsets = [0, 64], sizes = [2, 32], strides = [1, 1]} : vector<2x96xf32> to vector<2x32xf32>
    %155 = vector.extract_strided_slice %137 {offsets = [0, 64], sizes = [2, 32], strides = [1, 1]} : vector<2x96xf32> to vector<2x32xf32>
    %156 = arith.mulf %145, %155 : vector<2x32xf32>
    %157 = arith.addf %154, %156 : vector<2x32xf32>
    %158 = math.tanh %157 : vector<2x32xf32>
    %cst_42 = arith.constant 1.000000e+00 : f32
    %159 = vector.broadcast %cst_42 : f32 to vector<2x32xf32>
    %160 = arith.subf %159, %153 : vector<2x32xf32>
    %161 = arith.mulf %160, %158 : vector<2x32xf32>
    %162 = arith.mulf %153, %131 : vector<2x32xf32>
    %163 = arith.addf %161, %162 : vector<2x32xf32>
    %c8 = arith.constant 8 : index
    %c0_43 = arith.constant 0 : index
    %164 = vector.load %arg10[%c8, %c0_43] : memref<32x32xf32, #tpu.memory_space<vmem>>, vector<2x32xf32>
    tpu.vector_store %arg10[%c8, %c0_43], %163 {strides = array<i32>} : memref<32x32xf32, #tpu.memory_space<vmem>>, vector<2x32xf32>,
    %c5 = arith.constant 5 : index
    %c0_44 = arith.constant 0 : index
    %c0_45 = arith.constant 0 : index
    %165 = vector.load %arg0[%c5, %c0_44, %c0_45] : memref<16x2x96xf32, #tpu.memory_space<vmem>>, vector<1x2x96xf32>
    %166 = vector.shape_cast %165 : vector<1x2x96xf32> to vector<2x96xf32>
    %cst_46 = arith.constant dense<0.000000e+00> : vector<2x96xf32>
    %167 = tpu.matmul %163, %1, %cst_46 {dimension_numbers = #tpu.dot_dimension_numbers<[1], [0], [0], [1], [0, 0, 1, 1], [], []>} : vector<2x32xf32>, vector<32x96xf32>, vector<2x96xf32> -> vector<2x96xf32>
    %168 = vector.broadcast %3 : vector<1x96xf32> to vector<2x96xf32>
    %169 = arith.addf %167, %168 : vector<2x96xf32>
    %170 = vector.extract_strided_slice %166 {offsets = [0, 0], sizes = [2, 32], strides = [1, 1]} : vector<2x96xf32> to vector<2x32xf32>
    %171 = vector.extract_strided_slice %169 {offsets = [0, 0], sizes = [2, 32], strides = [1, 1]} : vector<2x96xf32> to vector<2x32xf32>
    %172 = arith.addf %170, %171 : vector<2x32xf32>
    %173 = arith.negf %172 : vector<2x32xf32>
    %174 = math.exp %173 : vector<2x32xf32>
    %cst_47 = arith.constant 1.000000e+00 : f32
    %175 = vector.broadcast %cst_47 : f32 to vector<2x32xf32>
    %176 = arith.addf %175, %174 : vector<2x32xf32>
    %177 = arith.divf %175, %176 : vector<2x32xf32>
    %178 = vector.extract_strided_slice %166 {offsets = [0, 32], sizes = [2, 32], strides = [1, 1]} : vector<2x96xf32> to vector<2x32xf32>
    %179 = vector.extract_strided_slice %169 {offsets = [0, 32], sizes = [2, 32], strides = [1, 1]} : vector<2x96xf32> to vector<2x32xf32>
    %180 = arith.addf %178, %179 : vector<2x32xf32>
    %181 = arith.negf %180 : vector<2x32xf32>
    %182 = math.exp %181 : vector<2x32xf32>
    %cst_48 = arith.constant 1.000000e+00 : f32
    %183 = vector.broadcast %cst_48 : f32 to vector<2x32xf32>
    %184 = arith.addf %183, %182 : vector<2x32xf32>
    %185 = arith.divf %183, %184 : vector<2x32xf32>
    %186 = vector.extract_strided_slice %166 {offsets = [0, 64], sizes = [2, 32], strides = [1, 1]} : vector<2x96xf32> to vector<2x32xf32>
    %187 = vector.extract_strided_slice %169 {offsets = [0, 64], sizes = [2, 32], strides = [1, 1]} : vector<2x96xf32> to vector<2x32xf32>
    %188 = arith.mulf %177, %187 : vector<2x32xf32>
    %189 = arith.addf %186, %188 : vector<2x32xf32>
    %190 = math.tanh %189 : vector<2x32xf32>
    %cst_49 = arith.constant 1.000000e+00 : f32
    %191 = vector.broadcast %cst_49 : f32 to vector<2x32xf32>
    %192 = arith.subf %191, %185 : vector<2x32xf32>
    %193 = arith.mulf %192, %190 : vector<2x32xf32>
    %194 = arith.mulf %185, %163 : vector<2x32xf32>
    %195 = arith.addf %193, %194 : vector<2x32xf32>
    %c10 = arith.constant 10 : index
    %c0_50 = arith.constant 0 : index
    %196 = vector.load %arg10[%c10, %c0_50] : memref<32x32xf32, #tpu.memory_space<vmem>>, vector<2x32xf32>
    tpu.vector_store %arg10[%c10, %c0_50], %195 {strides = array<i32>} : memref<32x32xf32, #tpu.memory_space<vmem>>, vector<2x32xf32>,
    %c6_51 = arith.constant 6 : index
    %c0_52 = arith.constant 0 : index
    %c0_53 = arith.constant 0 : index
    %197 = vector.load %arg0[%c6_51, %c0_52, %c0_53] : memref<16x2x96xf32, #tpu.memory_space<vmem>>, vector<1x2x96xf32>
    %198 = vector.shape_cast %197 : vector<1x2x96xf32> to vector<2x96xf32>
    %cst_54 = arith.constant dense<0.000000e+00> : vector<2x96xf32>
    %199 = tpu.matmul %195, %1, %cst_54 {dimension_numbers = #tpu.dot_dimension_numbers<[1], [0], [0], [1], [0, 0, 1, 1], [], []>} : vector<2x32xf32>, vector<32x96xf32>, vector<2x96xf32> -> vector<2x96xf32>
    %200 = vector.broadcast %3 : vector<1x96xf32> to vector<2x96xf32>
    %201 = arith.addf %199, %200 : vector<2x96xf32>
    %202 = vector.extract_strided_slice %198 {offsets = [0, 0], sizes = [2, 32], strides = [1, 1]} : vector<2x96xf32> to vector<2x32xf32>
    %203 = vector.extract_strided_slice %201 {offsets = [0, 0], sizes = [2, 32], strides = [1, 1]} : vector<2x96xf32> to vector<2x32xf32>
    %204 = arith.addf %202, %203 : vector<2x32xf32>
    %205 = arith.negf %204 : vector<2x32xf32>
    %206 = math.exp %205 : vector<2x32xf32>
    %cst_55 = arith.constant 1.000000e+00 : f32
    %207 = vector.broadcast %cst_55 : f32 to vector<2x32xf32>
    %208 = arith.addf %207, %206 : vector<2x32xf32>
    %209 = arith.divf %207, %208 : vector<2x32xf32>
    %210 = vector.extract_strided_slice %198 {offsets = [0, 32], sizes = [2, 32], strides = [1, 1]} : vector<2x96xf32> to vector<2x32xf32>
    %211 = vector.extract_strided_slice %201 {offsets = [0, 32], sizes = [2, 32], strides = [1, 1]} : vector<2x96xf32> to vector<2x32xf32>
    %212 = arith.addf %210, %211 : vector<2x32xf32>
    %213 = arith.negf %212 : vector<2x32xf32>
    %214 = math.exp %213 : vector<2x32xf32>
    %cst_56 = arith.constant 1.000000e+00 : f32
    %215 = vector.broadcast %cst_56 : f32 to vector<2x32xf32>
    %216 = arith.addf %215, %214 : vector<2x32xf32>
    %217 = arith.divf %215, %216 : vector<2x32xf32>
    %218 = vector.extract_strided_slice %198 {offsets = [0, 64], sizes = [2, 32], strides = [1, 1]} : vector<2x96xf32> to vector<2x32xf32>
    %219 = vector.extract_strided_slice %201 {offsets = [0, 64], sizes = [2, 32], strides = [1, 1]} : vector<2x96xf32> to vector<2x32xf32>
    %220 = arith.mulf %209, %219 : vector<2x32xf32>
    %221 = arith.addf %218, %220 : vector<2x32xf32>
    %222 = math.tanh %221 : vector<2x32xf32>
    %cst_57 = arith.constant 1.000000e+00 : f32
    %223 = vector.broadcast %cst_57 : f32 to vector<2x32xf32>
    %224 = arith.subf %223, %217 : vector<2x32xf32>
    %225 = arith.mulf %224, %222 : vector<2x32xf32>
    %226 = arith.mulf %217, %195 : vector<2x32xf32>
    %227 = arith.addf %225, %226 : vector<2x32xf32>
    %c12 = arith.constant 12 : index
    %c0_58 = arith.constant 0 : index
    %228 = vector.load %arg10[%c12, %c0_58] : memref<32x32xf32, #tpu.memory_space<vmem>>, vector<2x32xf32>
    tpu.vector_store %arg10[%c12, %c0_58], %227 {strides = array<i32>} : memref<32x32xf32, #tpu.memory_space<vmem>>, vector<2x32xf32>,
    %c7 = arith.constant 7 : index
    %c0_59 = arith.constant 0 : index
    %c0_60 = arith.constant 0 : index
    %229 = vector.load %arg0[%c7, %c0_59, %c0_60] : memref<16x2x96xf32, #tpu.memory_space<vmem>>, vector<1x2x96xf32>
    %230 = vector.shape_cast %229 : vector<1x2x96xf32> to vector<2x96xf32>
    %cst_61 = arith.constant dense<0.000000e+00> : vector<2x96xf32>
    %231 = tpu.matmul %227, %1, %cst_61 {dimension_numbers = #tpu.dot_dimension_numbers<[1], [0], [0], [1], [0, 0, 1, 1], [], []>} : vector<2x32xf32>, vector<32x96xf32>, vector<2x96xf32> -> vector<2x96xf32>
    %232 = vector.broadcast %3 : vector<1x96xf32> to vector<2x96xf32>
    %233 = arith.addf %231, %232 : vector<2x96xf32>
    %234 = vector.extract_strided_slice %230 {offsets = [0, 0], sizes = [2, 32], strides = [1, 1]} : vector<2x96xf32> to vector<2x32xf32>
    %235 = vector.extract_strided_slice %233 {offsets = [0, 0], sizes = [2, 32], strides = [1, 1]} : vector<2x96xf32> to vector<2x32xf32>
    %236 = arith.addf %234, %235 : vector<2x32xf32>
    %237 = arith.negf %236 : vector<2x32xf32>
    %238 = math.exp %237 : vector<2x32xf32>
    %cst_62 = arith.constant 1.000000e+00 : f32
    %239 = vector.broadcast %cst_62 : f32 to vector<2x32xf32>
    %240 = arith.addf %239, %238 : vector<2x32xf32>
    %241 = arith.divf %239, %240 : vector<2x32xf32>
    %242 = vector.extract_strided_slice %230 {offsets = [0, 32], sizes = [2, 32], strides = [1, 1]} : vector<2x96xf32> to vector<2x32xf32>
    %243 = vector.extract_strided_slice %233 {offsets = [0, 32], sizes = [2, 32], strides = [1, 1]} : vector<2x96xf32> to vector<2x32xf32>
    %244 = arith.addf %242, %243 : vector<2x32xf32>
    %245 = arith.negf %244 : vector<2x32xf32>
    %246 = math.exp %245 : vector<2x32xf32>
    %cst_63 = arith.constant 1.000000e+00 : f32
    %247 = vector.broadcast %cst_63 : f32 to vector<2x32xf32>
    %248 = arith.addf %247, %246 : vector<2x32xf32>
    %249 = arith.divf %247, %248 : vector<2x32xf32>
    %250 = vector.extract_strided_slice %230 {offsets = [0, 64], sizes = [2, 32], strides = [1, 1]} : vector<2x96xf32> to vector<2x32xf32>
    %251 = vector.extract_strided_slice %233 {offsets = [0, 64], sizes = [2, 32], strides = [1, 1]} : vector<2x96xf32> to vector<2x32xf32>
    %252 = arith.mulf %241, %251 : vector<2x32xf32>
    %253 = arith.addf %250, %252 : vector<2x32xf32>
    %254 = math.tanh %253 : vector<2x32xf32>
    %cst_64 = arith.constant 1.000000e+00 : f32
    %255 = vector.broadcast %cst_64 : f32 to vector<2x32xf32>
    %256 = arith.subf %255, %249 : vector<2x32xf32>
    %257 = arith.mulf %256, %254 : vector<2x32xf32>
    %258 = arith.mulf %249, %227 : vector<2x32xf32>
    %259 = arith.addf %257, %258 : vector<2x32xf32>
    %c14 = arith.constant 14 : index
    %c0_65 = arith.constant 0 : index
    %260 = vector.load %arg10[%c14, %c0_65] : memref<32x32xf32, #tpu.memory_space<vmem>>, vector<2x32xf32>
    tpu.vector_store %arg10[%c14, %c0_65], %259 {strides = array<i32>} : memref<32x32xf32, #tpu.memory_space<vmem>>, vector<2x32xf32>,
    %c8_66 = arith.constant 8 : index
    %c0_67 = arith.constant 0 : index
    %c0_68 = arith.constant 0 : index
    %261 = vector.load %arg0[%c8_66, %c0_67, %c0_68] : memref<16x2x96xf32, #tpu.memory_space<vmem>>, vector<1x2x96xf32>
    %262 = vector.shape_cast %261 : vector<1x2x96xf32> to vector<2x96xf32>
    %cst_69 = arith.constant dense<0.000000e+00> : vector<2x96xf32>
    %263 = tpu.matmul %259, %1, %cst_69 {dimension_numbers = #tpu.dot_dimension_numbers<[1], [0], [0], [1], [0, 0, 1, 1], [], []>} : vector<2x32xf32>, vector<32x96xf32>, vector<2x96xf32> -> vector<2x96xf32>
    %264 = vector.broadcast %3 : vector<1x96xf32> to vector<2x96xf32>
    %265 = arith.addf %263, %264 : vector<2x96xf32>
    %266 = vector.extract_strided_slice %262 {offsets = [0, 0], sizes = [2, 32], strides = [1, 1]} : vector<2x96xf32> to vector<2x32xf32>
    %267 = vector.extract_strided_slice %265 {offsets = [0, 0], sizes = [2, 32], strides = [1, 1]} : vector<2x96xf32> to vector<2x32xf32>
    %268 = arith.addf %266, %267 : vector<2x32xf32>
    %269 = arith.negf %268 : vector<2x32xf32>
    %270 = math.exp %269 : vector<2x32xf32>
    %cst_70 = arith.constant 1.000000e+00 : f32
    %271 = vector.broadcast %cst_70 : f32 to vector<2x32xf32>
    %272 = arith.addf %271, %270 : vector<2x32xf32>
    %273 = arith.divf %271, %272 : vector<2x32xf32>
    %274 = vector.extract_strided_slice %262 {offsets = [0, 32], sizes = [2, 32], strides = [1, 1]} : vector<2x96xf32> to vector<2x32xf32>
    %275 = vector.extract_strided_slice %265 {offsets = [0, 32], sizes = [2, 32], strides = [1, 1]} : vector<2x96xf32> to vector<2x32xf32>
    %276 = arith.addf %274, %275 : vector<2x32xf32>
    %277 = arith.negf %276 : vector<2x32xf32>
    %278 = math.exp %277 : vector<2x32xf32>
    %cst_71 = arith.constant 1.000000e+00 : f32
    %279 = vector.broadcast %cst_71 : f32 to vector<2x32xf32>
    %280 = arith.addf %279, %278 : vector<2x32xf32>
    %281 = arith.divf %279, %280 : vector<2x32xf32>
    %282 = vector.extract_strided_slice %262 {offsets = [0, 64], sizes = [2, 32], strides = [1, 1]} : vector<2x96xf32> to vector<2x32xf32>
    %283 = vector.extract_strided_slice %265 {offsets = [0, 64], sizes = [2, 32], strides = [1, 1]} : vector<2x96xf32> to vector<2x32xf32>
    %284 = arith.mulf %273, %283 : vector<2x32xf32>
    %285 = arith.addf %282, %284 : vector<2x32xf32>
    %286 = math.tanh %285 : vector<2x32xf32>
    %cst_72 = arith.constant 1.000000e+00 : f32
    %287 = vector.broadcast %cst_72 : f32 to vector<2x32xf32>
    %288 = arith.subf %287, %281 : vector<2x32xf32>
    %289 = arith.mulf %288, %286 : vector<2x32xf32>
    %290 = arith.mulf %281, %259 : vector<2x32xf32>
    %291 = arith.addf %289, %290 : vector<2x32xf32>
    %c16 = arith.constant 16 : index
    %c0_73 = arith.constant 0 : index
    %292 = vector.load %arg10[%c16, %c0_73] : memref<32x32xf32, #tpu.memory_space<vmem>>, vector<2x32xf32>
    tpu.vector_store %arg10[%c16, %c0_73], %291 {strides = array<i32>} : memref<32x32xf32, #tpu.memory_space<vmem>>, vector<2x32xf32>,
    %c9 = arith.constant 9 : index
    %c0_74 = arith.constant 0 : index
    %c0_75 = arith.constant 0 : index
    %293 = vector.load %arg0[%c9, %c0_74, %c0_75] : memref<16x2x96xf32, #tpu.memory_space<vmem>>, vector<1x2x96xf32>
    %294 = vector.shape_cast %293 : vector<1x2x96xf32> to vector<2x96xf32>
    %cst_76 = arith.constant dense<0.000000e+00> : vector<2x96xf32>
    %295 = tpu.matmul %291, %1, %cst_76 {dimension_numbers = #tpu.dot_dimension_numbers<[1], [0], [0], [1], [0, 0, 1, 1], [], []>} : vector<2x32xf32>, vector<32x96xf32>, vector<2x96xf32> -> vector<2x96xf32>
    %296 = vector.broadcast %3 : vector<1x96xf32> to vector<2x96xf32>
    %297 = arith.addf %295, %296 : vector<2x96xf32>
    %298 = vector.extract_strided_slice %294 {offsets = [0, 0], sizes = [2, 32], strides = [1, 1]} : vector<2x96xf32> to vector<2x32xf32>
    %299 = vector.extract_strided_slice %297 {offsets = [0, 0], sizes = [2, 32], strides = [1, 1]} : vector<2x96xf32> to vector<2x32xf32>
    %300 = arith.addf %298, %299 : vector<2x32xf32>
    %301 = arith.negf %300 : vector<2x32xf32>
    %302 = math.exp %301 : vector<2x32xf32>
    %cst_77 = arith.constant 1.000000e+00 : f32
    %303 = vector.broadcast %cst_77 : f32 to vector<2x32xf32>
    %304 = arith.addf %303, %302 : vector<2x32xf32>
    %305 = arith.divf %303, %304 : vector<2x32xf32>
    %306 = vector.extract_strided_slice %294 {offsets = [0, 32], sizes = [2, 32], strides = [1, 1]} : vector<2x96xf32> to vector<2x32xf32>
    %307 = vector.extract_strided_slice %297 {offsets = [0, 32], sizes = [2, 32], strides = [1, 1]} : vector<2x96xf32> to vector<2x32xf32>
    %308 = arith.addf %306, %307 : vector<2x32xf32>
    %309 = arith.negf %308 : vector<2x32xf32>
    %310 = math.exp %309 : vector<2x32xf32>
    %cst_78 = arith.constant 1.000000e+00 : f32
    %311 = vector.broadcast %cst_78 : f32 to vector<2x32xf32>
    %312 = arith.addf %311, %310 : vector<2x32xf32>
    %313 = arith.divf %311, %312 : vector<2x32xf32>
    %314 = vector.extract_strided_slice %294 {offsets = [0, 64], sizes = [2, 32], strides = [1, 1]} : vector<2x96xf32> to vector<2x32xf32>
    %315 = vector.extract_strided_slice %297 {offsets = [0, 64], sizes = [2, 32], strides = [1, 1]} : vector<2x96xf32> to vector<2x32xf32>
    %316 = arith.mulf %305, %315 : vector<2x32xf32>
    %317 = arith.addf %314, %316 : vector<2x32xf32>
    %318 = math.tanh %317 : vector<2x32xf32>
    %cst_79 = arith.constant 1.000000e+00 : f32
    %319 = vector.broadcast %cst_79 : f32 to vector<2x32xf32>
    %320 = arith.subf %319, %313 : vector<2x32xf32>
    %321 = arith.mulf %320, %318 : vector<2x32xf32>
    %322 = arith.mulf %313, %291 : vector<2x32xf32>
    %323 = arith.addf %321, %322 : vector<2x32xf32>
    %c18 = arith.constant 18 : index
    %c0_80 = arith.constant 0 : index
    %324 = vector.load %arg10[%c18, %c0_80] : memref<32x32xf32, #tpu.memory_space<vmem>>, vector<2x32xf32>
    tpu.vector_store %arg10[%c18, %c0_80], %323 {strides = array<i32>} : memref<32x32xf32, #tpu.memory_space<vmem>>, vector<2x32xf32>,
    %c10_81 = arith.constant 10 : index
    %c0_82 = arith.constant 0 : index
    %c0_83 = arith.constant 0 : index
    %325 = vector.load %arg0[%c10_81, %c0_82, %c0_83] : memref<16x2x96xf32, #tpu.memory_space<vmem>>, vector<1x2x96xf32>
    %326 = vector.shape_cast %325 : vector<1x2x96xf32> to vector<2x96xf32>
    %cst_84 = arith.constant dense<0.000000e+00> : vector<2x96xf32>
    %327 = tpu.matmul %323, %1, %cst_84 {dimension_numbers = #tpu.dot_dimension_numbers<[1], [0], [0], [1], [0, 0, 1, 1], [], []>} : vector<2x32xf32>, vector<32x96xf32>, vector<2x96xf32> -> vector<2x96xf32>
    %328 = vector.broadcast %3 : vector<1x96xf32> to vector<2x96xf32>
    %329 = arith.addf %327, %328 : vector<2x96xf32>
    %330 = vector.extract_strided_slice %326 {offsets = [0, 0], sizes = [2, 32], strides = [1, 1]} : vector<2x96xf32> to vector<2x32xf32>
    %331 = vector.extract_strided_slice %329 {offsets = [0, 0], sizes = [2, 32], strides = [1, 1]} : vector<2x96xf32> to vector<2x32xf32>
    %332 = arith.addf %330, %331 : vector<2x32xf32>
    %333 = arith.negf %332 : vector<2x32xf32>
    %334 = math.exp %333 : vector<2x32xf32>
    %cst_85 = arith.constant 1.000000e+00 : f32
    %335 = vector.broadcast %cst_85 : f32 to vector<2x32xf32>
    %336 = arith.addf %335, %334 : vector<2x32xf32>
    %337 = arith.divf %335, %336 : vector<2x32xf32>
    %338 = vector.extract_strided_slice %326 {offsets = [0, 32], sizes = [2, 32], strides = [1, 1]} : vector<2x96xf32> to vector<2x32xf32>
    %339 = vector.extract_strided_slice %329 {offsets = [0, 32], sizes = [2, 32], strides = [1, 1]} : vector<2x96xf32> to vector<2x32xf32>
    %340 = arith.addf %338, %339 : vector<2x32xf32>
    %341 = arith.negf %340 : vector<2x32xf32>
    %342 = math.exp %341 : vector<2x32xf32>
    %cst_86 = arith.constant 1.000000e+00 : f32
    %343 = vector.broadcast %cst_86 : f32 to vector<2x32xf32>
    %344 = arith.addf %343, %342 : vector<2x32xf32>
    %345 = arith.divf %343, %344 : vector<2x32xf32>
    %346 = vector.extract_strided_slice %326 {offsets = [0, 64], sizes = [2, 32], strides = [1, 1]} : vector<2x96xf32> to vector<2x32xf32>
    %347 = vector.extract_strided_slice %329 {offsets = [0, 64], sizes = [2, 32], strides = [1, 1]} : vector<2x96xf32> to vector<2x32xf32>
    %348 = arith.mulf %337, %347 : vector<2x32xf32>
    %349 = arith.addf %346, %348 : vector<2x32xf32>
    %350 = math.tanh %349 : vector<2x32xf32>
    %cst_87 = arith.constant 1.000000e+00 : f32
    %351 = vector.broadcast %cst_87 : f32 to vector<2x32xf32>
    %352 = arith.subf %351, %345 : vector<2x32xf32>
    %353 = arith.mulf %352, %350 : vector<2x32xf32>
    %354 = arith.mulf %345, %323 : vector<2x32xf32>
    %355 = arith.addf %353, %354 : vector<2x32xf32>
    %c20 = arith.constant 20 : index
    %c0_88 = arith.constant 0 : index
    %356 = vector.load %arg10[%c20, %c0_88] : memref<32x32xf32, #tpu.memory_space<vmem>>, vector<2x32xf32>
    tpu.vector_store %arg10[%c20, %c0_88], %355 {strides = array<i32>} : memref<32x32xf32, #tpu.memory_space<vmem>>, vector<2x32xf32>,
    %c11 = arith.constant 11 : index
    %c0_89 = arith.constant 0 : index
    %c0_90 = arith.constant 0 : index
    %357 = vector.load %arg0[%c11, %c0_89, %c0_90] : memref<16x2x96xf32, #tpu.memory_space<vmem>>, vector<1x2x96xf32>
    %358 = vector.shape_cast %357 : vector<1x2x96xf32> to vector<2x96xf32>
    %cst_91 = arith.constant dense<0.000000e+00> : vector<2x96xf32>
    %359 = tpu.matmul %355, %1, %cst_91 {dimension_numbers = #tpu.dot_dimension_numbers<[1], [0], [0], [1], [0, 0, 1, 1], [], []>} : vector<2x32xf32>, vector<32x96xf32>, vector<2x96xf32> -> vector<2x96xf32>
    %360 = vector.broadcast %3 : vector<1x96xf32> to vector<2x96xf32>
    %361 = arith.addf %359, %360 : vector<2x96xf32>
    %362 = vector.extract_strided_slice %358 {offsets = [0, 0], sizes = [2, 32], strides = [1, 1]} : vector<2x96xf32> to vector<2x32xf32>
    %363 = vector.extract_strided_slice %361 {offsets = [0, 0], sizes = [2, 32], strides = [1, 1]} : vector<2x96xf32> to vector<2x32xf32>
    %364 = arith.addf %362, %363 : vector<2x32xf32>
    %365 = arith.negf %364 : vector<2x32xf32>
    %366 = math.exp %365 : vector<2x32xf32>
    %cst_92 = arith.constant 1.000000e+00 : f32
    %367 = vector.broadcast %cst_92 : f32 to vector<2x32xf32>
    %368 = arith.addf %367, %366 : vector<2x32xf32>
    %369 = arith.divf %367, %368 : vector<2x32xf32>
    %370 = vector.extract_strided_slice %358 {offsets = [0, 32], sizes = [2, 32], strides = [1, 1]} : vector<2x96xf32> to vector<2x32xf32>
    %371 = vector.extract_strided_slice %361 {offsets = [0, 32], sizes = [2, 32], strides = [1, 1]} : vector<2x96xf32> to vector<2x32xf32>
    %372 = arith.addf %370, %371 : vector<2x32xf32>
    %373 = arith.negf %372 : vector<2x32xf32>
    %374 = math.exp %373 : vector<2x32xf32>
    %cst_93 = arith.constant 1.000000e+00 : f32
    %375 = vector.broadcast %cst_93 : f32 to vector<2x32xf32>
    %376 = arith.addf %375, %374 : vector<2x32xf32>
    %377 = arith.divf %375, %376 : vector<2x32xf32>
    %378 = vector.extract_strided_slice %358 {offsets = [0, 64], sizes = [2, 32], strides = [1, 1]} : vector<2x96xf32> to vector<2x32xf32>
    %379 = vector.extract_strided_slice %361 {offsets = [0, 64], sizes = [2, 32], strides = [1, 1]} : vector<2x96xf32> to vector<2x32xf32>
    %380 = arith.mulf %369, %379 : vector<2x32xf32>
    %381 = arith.addf %378, %380 : vector<2x32xf32>
    %382 = math.tanh %381 : vector<2x32xf32>
    %cst_94 = arith.constant 1.000000e+00 : f32
    %383 = vector.broadcast %cst_94 : f32 to vector<2x32xf32>
    %384 = arith.subf %383, %377 : vector<2x32xf32>
    %385 = arith.mulf %384, %382 : vector<2x32xf32>
    %386 = arith.mulf %377, %355 : vector<2x32xf32>
    %387 = arith.addf %385, %386 : vector<2x32xf32>
    %c22 = arith.constant 22 : index
    %c0_95 = arith.constant 0 : index
    %388 = vector.load %arg10[%c22, %c0_95] : memref<32x32xf32, #tpu.memory_space<vmem>>, vector<2x32xf32>
    tpu.vector_store %arg10[%c22, %c0_95], %387 {strides = array<i32>} : memref<32x32xf32, #tpu.memory_space<vmem>>, vector<2x32xf32>,
    %c12_96 = arith.constant 12 : index
    %c0_97 = arith.constant 0 : index
    %c0_98 = arith.constant 0 : index
    %389 = vector.load %arg0[%c12_96, %c0_97, %c0_98] : memref<16x2x96xf32, #tpu.memory_space<vmem>>, vector<1x2x96xf32>
    %390 = vector.shape_cast %389 : vector<1x2x96xf32> to vector<2x96xf32>
    %cst_99 = arith.constant dense<0.000000e+00> : vector<2x96xf32>
    %391 = tpu.matmul %387, %1, %cst_99 {dimension_numbers = #tpu.dot_dimension_numbers<[1], [0], [0], [1], [0, 0, 1, 1], [], []>} : vector<2x32xf32>, vector<32x96xf32>, vector<2x96xf32> -> vector<2x96xf32>
    %392 = vector.broadcast %3 : vector<1x96xf32> to vector<2x96xf32>
    %393 = arith.addf %391, %392 : vector<2x96xf32>
    %394 = vector.extract_strided_slice %390 {offsets = [0, 0], sizes = [2, 32], strides = [1, 1]} : vector<2x96xf32> to vector<2x32xf32>
    %395 = vector.extract_strided_slice %393 {offsets = [0, 0], sizes = [2, 32], strides = [1, 1]} : vector<2x96xf32> to vector<2x32xf32>
    %396 = arith.addf %394, %395 : vector<2x32xf32>
    %397 = arith.negf %396 : vector<2x32xf32>
    %398 = math.exp %397 : vector<2x32xf32>
    %cst_100 = arith.constant 1.000000e+00 : f32
    %399 = vector.broadcast %cst_100 : f32 to vector<2x32xf32>
    %400 = arith.addf %399, %398 : vector<2x32xf32>
    %401 = arith.divf %399, %400 : vector<2x32xf32>
    %402 = vector.extract_strided_slice %390 {offsets = [0, 32], sizes = [2, 32], strides = [1, 1]} : vector<2x96xf32> to vector<2x32xf32>
    %403 = vector.extract_strided_slice %393 {offsets = [0, 32], sizes = [2, 32], strides = [1, 1]} : vector<2x96xf32> to vector<2x32xf32>
    %404 = arith.addf %402, %403 : vector<2x32xf32>
    %405 = arith.negf %404 : vector<2x32xf32>
    %406 = math.exp %405 : vector<2x32xf32>
    %cst_101 = arith.constant 1.000000e+00 : f32
    %407 = vector.broadcast %cst_101 : f32 to vector<2x32xf32>
    %408 = arith.addf %407, %406 : vector<2x32xf32>
    %409 = arith.divf %407, %408 : vector<2x32xf32>
    %410 = vector.extract_strided_slice %390 {offsets = [0, 64], sizes = [2, 32], strides = [1, 1]} : vector<2x96xf32> to vector<2x32xf32>
    %411 = vector.extract_strided_slice %393 {offsets = [0, 64], sizes = [2, 32], strides = [1, 1]} : vector<2x96xf32> to vector<2x32xf32>
    %412 = arith.mulf %401, %411 : vector<2x32xf32>
    %413 = arith.addf %410, %412 : vector<2x32xf32>
    %414 = math.tanh %413 : vector<2x32xf32>
    %cst_102 = arith.constant 1.000000e+00 : f32
    %415 = vector.broadcast %cst_102 : f32 to vector<2x32xf32>
    %416 = arith.subf %415, %409 : vector<2x32xf32>
    %417 = arith.mulf %416, %414 : vector<2x32xf32>
    %418 = arith.mulf %409, %387 : vector<2x32xf32>
    %419 = arith.addf %417, %418 : vector<2x32xf32>
    %c24 = arith.constant 24 : index
    %c0_103 = arith.constant 0 : index
    %420 = vector.load %arg10[%c24, %c0_103] : memref<32x32xf32, #tpu.memory_space<vmem>>, vector<2x32xf32>
    tpu.vector_store %arg10[%c24, %c0_103], %419 {strides = array<i32>} : memref<32x32xf32, #tpu.memory_space<vmem>>, vector<2x32xf32>,
    %c13 = arith.constant 13 : index
    %c0_104 = arith.constant 0 : index
    %c0_105 = arith.constant 0 : index
    %421 = vector.load %arg0[%c13, %c0_104, %c0_105] : memref<16x2x96xf32, #tpu.memory_space<vmem>>, vector<1x2x96xf32>
    %422 = vector.shape_cast %421 : vector<1x2x96xf32> to vector<2x96xf32>
    %cst_106 = arith.constant dense<0.000000e+00> : vector<2x96xf32>
    %423 = tpu.matmul %419, %1, %cst_106 {dimension_numbers = #tpu.dot_dimension_numbers<[1], [0], [0], [1], [0, 0, 1, 1], [], []>} : vector<2x32xf32>, vector<32x96xf32>, vector<2x96xf32> -> vector<2x96xf32>
    %424 = vector.broadcast %3 : vector<1x96xf32> to vector<2x96xf32>
    %425 = arith.addf %423, %424 : vector<2x96xf32>
    %426 = vector.extract_strided_slice %422 {offsets = [0, 0], sizes = [2, 32], strides = [1, 1]} : vector<2x96xf32> to vector<2x32xf32>
    %427 = vector.extract_strided_slice %425 {offsets = [0, 0], sizes = [2, 32], strides = [1, 1]} : vector<2x96xf32> to vector<2x32xf32>
    %428 = arith.addf %426, %427 : vector<2x32xf32>
    %429 = arith.negf %428 : vector<2x32xf32>
    %430 = math.exp %429 : vector<2x32xf32>
    %cst_107 = arith.constant 1.000000e+00 : f32
    %431 = vector.broadcast %cst_107 : f32 to vector<2x32xf32>
    %432 = arith.addf %431, %430 : vector<2x32xf32>
    %433 = arith.divf %431, %432 : vector<2x32xf32>
    %434 = vector.extract_strided_slice %422 {offsets = [0, 32], sizes = [2, 32], strides = [1, 1]} : vector<2x96xf32> to vector<2x32xf32>
    %435 = vector.extract_strided_slice %425 {offsets = [0, 32], sizes = [2, 32], strides = [1, 1]} : vector<2x96xf32> to vector<2x32xf32>
    %436 = arith.addf %434, %435 : vector<2x32xf32>
    %437 = arith.negf %436 : vector<2x32xf32>
    %438 = math.exp %437 : vector<2x32xf32>
    %cst_108 = arith.constant 1.000000e+00 : f32
    %439 = vector.broadcast %cst_108 : f32 to vector<2x32xf32>
    %440 = arith.addf %439, %438 : vector<2x32xf32>
    %441 = arith.divf %439, %440 : vector<2x32xf32>
    %442 = vector.extract_strided_slice %422 {offsets = [0, 64], sizes = [2, 32], strides = [1, 1]} : vector<2x96xf32> to vector<2x32xf32>
    %443 = vector.extract_strided_slice %425 {offsets = [0, 64], sizes = [2, 32], strides = [1, 1]} : vector<2x96xf32> to vector<2x32xf32>
    %444 = arith.mulf %433, %443 : vector<2x32xf32>
    %445 = arith.addf %442, %444 : vector<2x32xf32>
    %446 = math.tanh %445 : vector<2x32xf32>
    %cst_109 = arith.constant 1.000000e+00 : f32
    %447 = vector.broadcast %cst_109 : f32 to vector<2x32xf32>
    %448 = arith.subf %447, %441 : vector<2x32xf32>
    %449 = arith.mulf %448, %446 : vector<2x32xf32>
    %450 = arith.mulf %441, %419 : vector<2x32xf32>
    %451 = arith.addf %449, %450 : vector<2x32xf32>
    %c26 = arith.constant 26 : index
    %c0_110 = arith.constant 0 : index
    %452 = vector.load %arg10[%c26, %c0_110] : memref<32x32xf32, #tpu.memory_space<vmem>>, vector<2x32xf32>
    tpu.vector_store %arg10[%c26, %c0_110], %451 {strides = array<i32>} : memref<32x32xf32, #tpu.memory_space<vmem>>, vector<2x32xf32>,
    %c14_111 = arith.constant 14 : index
    %c0_112 = arith.constant 0 : index
    %c0_113 = arith.constant 0 : index
    %453 = vector.load %arg0[%c14_111, %c0_112, %c0_113] : memref<16x2x96xf32, #tpu.memory_space<vmem>>, vector<1x2x96xf32>
    %454 = vector.shape_cast %453 : vector<1x2x96xf32> to vector<2x96xf32>
    %cst_114 = arith.constant dense<0.000000e+00> : vector<2x96xf32>
    %455 = tpu.matmul %451, %1, %cst_114 {dimension_numbers = #tpu.dot_dimension_numbers<[1], [0], [0], [1], [0, 0, 1, 1], [], []>} : vector<2x32xf32>, vector<32x96xf32>, vector<2x96xf32> -> vector<2x96xf32>
    %456 = vector.broadcast %3 : vector<1x96xf32> to vector<2x96xf32>
    %457 = arith.addf %455, %456 : vector<2x96xf32>
    %458 = vector.extract_strided_slice %454 {offsets = [0, 0], sizes = [2, 32], strides = [1, 1]} : vector<2x96xf32> to vector<2x32xf32>
    %459 = vector.extract_strided_slice %457 {offsets = [0, 0], sizes = [2, 32], strides = [1, 1]} : vector<2x96xf32> to vector<2x32xf32>
    %460 = arith.addf %458, %459 : vector<2x32xf32>
    %461 = arith.negf %460 : vector<2x32xf32>
    %462 = math.exp %461 : vector<2x32xf32>
    %cst_115 = arith.constant 1.000000e+00 : f32
    %463 = vector.broadcast %cst_115 : f32 to vector<2x32xf32>
    %464 = arith.addf %463, %462 : vector<2x32xf32>
    %465 = arith.divf %463, %464 : vector<2x32xf32>
    %466 = vector.extract_strided_slice %454 {offsets = [0, 32], sizes = [2, 32], strides = [1, 1]} : vector<2x96xf32> to vector<2x32xf32>
    %467 = vector.extract_strided_slice %457 {offsets = [0, 32], sizes = [2, 32], strides = [1, 1]} : vector<2x96xf32> to vector<2x32xf32>
    %468 = arith.addf %466, %467 : vector<2x32xf32>
    %469 = arith.negf %468 : vector<2x32xf32>
    %470 = math.exp %469 : vector<2x32xf32>
    %cst_116 = arith.constant 1.000000e+00 : f32
    %471 = vector.broadcast %cst_116 : f32 to vector<2x32xf32>
    %472 = arith.addf %471, %470 : vector<2x32xf32>
    %473 = arith.divf %471, %472 : vector<2x32xf32>
    %474 = vector.extract_strided_slice %454 {offsets = [0, 64], sizes = [2, 32], strides = [1, 1]} : vector<2x96xf32> to vector<2x32xf32>
    %475 = vector.extract_strided_slice %457 {offsets = [0, 64], sizes = [2, 32], strides = [1, 1]} : vector<2x96xf32> to vector<2x32xf32>
    %476 = arith.mulf %465, %475 : vector<2x32xf32>
    %477 = arith.addf %474, %476 : vector<2x32xf32>
    %478 = math.tanh %477 : vector<2x32xf32>
    %cst_117 = arith.constant 1.000000e+00 : f32
    %479 = vector.broadcast %cst_117 : f32 to vector<2x32xf32>
    %480 = arith.subf %479, %473 : vector<2x32xf32>
    %481 = arith.mulf %480, %478 : vector<2x32xf32>
    %482 = arith.mulf %473, %451 : vector<2x32xf32>
    %483 = arith.addf %481, %482 : vector<2x32xf32>
    %c28 = arith.constant 28 : index
    %c0_118 = arith.constant 0 : index
    %484 = vector.load %arg10[%c28, %c0_118] : memref<32x32xf32, #tpu.memory_space<vmem>>, vector<2x32xf32>
    tpu.vector_store %arg10[%c28, %c0_118], %483 {strides = array<i32>} : memref<32x32xf32, #tpu.memory_space<vmem>>, vector<2x32xf32>,
    %c15 = arith.constant 15 : index
    %c0_119 = arith.constant 0 : index
    %c0_120 = arith.constant 0 : index
    %485 = vector.load %arg0[%c15, %c0_119, %c0_120] : memref<16x2x96xf32, #tpu.memory_space<vmem>>, vector<1x2x96xf32>
    %486 = vector.shape_cast %485 : vector<1x2x96xf32> to vector<2x96xf32>
    %cst_121 = arith.constant dense<0.000000e+00> : vector<2x96xf32>
    %487 = tpu.matmul %483, %1, %cst_121 {dimension_numbers = #tpu.dot_dimension_numbers<[1], [0], [0], [1], [0, 0, 1, 1], [], []>} : vector<2x32xf32>, vector<32x96xf32>, vector<2x96xf32> -> vector<2x96xf32>
    %488 = vector.broadcast %3 : vector<1x96xf32> to vector<2x96xf32>
    %489 = arith.addf %487, %488 : vector<2x96xf32>
    %490 = vector.extract_strided_slice %486 {offsets = [0, 0], sizes = [2, 32], strides = [1, 1]} : vector<2x96xf32> to vector<2x32xf32>
    %491 = vector.extract_strided_slice %489 {offsets = [0, 0], sizes = [2, 32], strides = [1, 1]} : vector<2x96xf32> to vector<2x32xf32>
    %492 = arith.addf %490, %491 : vector<2x32xf32>
    %493 = arith.negf %492 : vector<2x32xf32>
    %494 = math.exp %493 : vector<2x32xf32>
    %cst_122 = arith.constant 1.000000e+00 : f32
    %495 = vector.broadcast %cst_122 : f32 to vector<2x32xf32>
    %496 = arith.addf %495, %494 : vector<2x32xf32>
    %497 = arith.divf %495, %496 : vector<2x32xf32>
    %498 = vector.extract_strided_slice %486 {offsets = [0, 32], sizes = [2, 32], strides = [1, 1]} : vector<2x96xf32> to vector<2x32xf32>
    %499 = vector.extract_strided_slice %489 {offsets = [0, 32], sizes = [2, 32], strides = [1, 1]} : vector<2x96xf32> to vector<2x32xf32>
    %500 = arith.addf %498, %499 : vector<2x32xf32>
    %501 = arith.negf %500 : vector<2x32xf32>
    %502 = math.exp %501 : vector<2x32xf32>
    %cst_123 = arith.constant 1.000000e+00 : f32
    %503 = vector.broadcast %cst_123 : f32 to vector<2x32xf32>
    %504 = arith.addf %503, %502 : vector<2x32xf32>
    %505 = arith.divf %503, %504 : vector<2x32xf32>
    %506 = vector.extract_strided_slice %486 {offsets = [0, 64], sizes = [2, 32], strides = [1, 1]} : vector<2x96xf32> to vector<2x32xf32>
    %507 = vector.extract_strided_slice %489 {offsets = [0, 64], sizes = [2, 32], strides = [1, 1]} : vector<2x96xf32> to vector<2x32xf32>
    %508 = arith.mulf %497, %507 : vector<2x32xf32>
    %509 = arith.addf %506, %508 : vector<2x32xf32>
    %510 = math.tanh %509 : vector<2x32xf32>
    %cst_124 = arith.constant 1.000000e+00 : f32
    %511 = vector.broadcast %cst_124 : f32 to vector<2x32xf32>
    %512 = arith.subf %511, %505 : vector<2x32xf32>
    %513 = arith.mulf %512, %510 : vector<2x32xf32>
    %514 = arith.mulf %505, %483 : vector<2x32xf32>
    %515 = arith.addf %513, %514 : vector<2x32xf32>
    %c30 = arith.constant 30 : index
    %c0_125 = arith.constant 0 : index
    %516 = vector.load %arg10[%c30, %c0_125] : memref<32x32xf32, #tpu.memory_space<vmem>>, vector<2x32xf32>
    tpu.vector_store %arg10[%c30, %c0_125], %515 {strides = array<i32>} : memref<32x32xf32, #tpu.memory_space<vmem>>, vector<2x32xf32>,
    %c1_126 = arith.constant 1 : index
    %c0_127 = arith.constant 0 : index
    %c0_128 = arith.constant 0 : index
    %517 = vector.load %arg3[%c1_126, %c0_127, %c0_128] : memref<3x32x96xf32, #tpu.memory_space<vmem>>, vector<1x32x96xf32>
    %518 = vector.shape_cast %517 : vector<1x32x96xf32> to vector<32x96xf32>
    %c1_129 = arith.constant 1 : index
    %c0_130 = arith.constant 0 : index
    %c0_131 = arith.constant 0 : index
    %519 = vector.load %arg4[%c1_129, %c0_130, %c0_131] : memref<3x1x96xf32, #tpu.memory_space<vmem>>, vector<1x1x96xf32>
    %520 = vector.shape_cast %519 : vector<1x1x96xf32> to vector<1x96xf32>
    %cst_132 = arith.constant 0.000000e+00 : f32
    %521 = vector.broadcast %cst_132 : f32 to vector<2x32xf32>
    %c0_133 = arith.constant 0 : index
    %c0_134 = arith.constant 0 : index
    %c0_135 = arith.constant 0 : index
    %522 = vector.load %arg1[%c0_133, %c0_134, %c0_135] : memref<8x2x96xf32, #tpu.memory_space<vmem>>, vector<1x2x96xf32>
    %523 = vector.shape_cast %522 : vector<1x2x96xf32> to vector<2x96xf32>
    %cst_136 = arith.constant dense<0.000000e+00> : vector<2x96xf32>
    %524 = tpu.matmul %521, %518, %cst_136 {dimension_numbers = #tpu.dot_dimension_numbers<[1], [0], [0], [1], [0, 0, 1, 1], [], []>} : vector<2x32xf32>, vector<32x96xf32>, vector<2x96xf32> -> vector<2x96xf32>
    %525 = vector.broadcast %520 : vector<1x96xf32> to vector<2x96xf32>
    %526 = arith.addf %524, %525 : vector<2x96xf32>
    %527 = vector.extract_strided_slice %523 {offsets = [0, 0], sizes = [2, 32], strides = [1, 1]} : vector<2x96xf32> to vector<2x32xf32>
    %528 = vector.extract_strided_slice %526 {offsets = [0, 0], sizes = [2, 32], strides = [1, 1]} : vector<2x96xf32> to vector<2x32xf32>
    %529 = arith.addf %527, %528 : vector<2x32xf32>
    %530 = arith.negf %529 : vector<2x32xf32>
    %531 = math.exp %530 : vector<2x32xf32>
    %cst_137 = arith.constant 1.000000e+00 : f32
    %532 = vector.broadcast %cst_137 : f32 to vector<2x32xf32>
    %533 = arith.addf %532, %531 : vector<2x32xf32>
    %534 = arith.divf %532, %533 : vector<2x32xf32>
    %535 = vector.extract_strided_slice %523 {offsets = [0, 32], sizes = [2, 32], strides = [1, 1]} : vector<2x96xf32> to vector<2x32xf32>
    %536 = vector.extract_strided_slice %526 {offsets = [0, 32], sizes = [2, 32], strides = [1, 1]} : vector<2x96xf32> to vector<2x32xf32>
    %537 = arith.addf %535, %536 : vector<2x32xf32>
    %538 = arith.negf %537 : vector<2x32xf32>
    %539 = math.exp %538 : vector<2x32xf32>
    %cst_138 = arith.constant 1.000000e+00 : f32
    %540 = vector.broadcast %cst_138 : f32 to vector<2x32xf32>
    %541 = arith.addf %540, %539 : vector<2x32xf32>
    %542 = arith.divf %540, %541 : vector<2x32xf32>
    %543 = vector.extract_strided_slice %523 {offsets = [0, 64], sizes = [2, 32], strides = [1, 1]} : vector<2x96xf32> to vector<2x32xf32>
    %544 = vector.extract_strided_slice %526 {offsets = [0, 64], sizes = [2, 32], strides = [1, 1]} : vector<2x96xf32> to vector<2x32xf32>
    %545 = arith.mulf %534, %544 : vector<2x32xf32>
    %546 = arith.addf %543, %545 : vector<2x32xf32>
    %547 = math.tanh %546 : vector<2x32xf32>
    %cst_139 = arith.constant 1.000000e+00 : f32
    %548 = vector.broadcast %cst_139 : f32 to vector<2x32xf32>
    %549 = arith.subf %548, %542 : vector<2x32xf32>
    %550 = arith.mulf %549, %547 : vector<2x32xf32>
    %551 = arith.mulf %542, %521 : vector<2x32xf32>
    %552 = arith.addf %550, %551 : vector<2x32xf32>
    %c0_140 = arith.constant 0 : index
    %c0_141 = arith.constant 0 : index
    %553 = vector.load %arg11[%c0_140, %c0_141] : memref<16x32xf32, #tpu.memory_space<vmem>>, vector<2x32xf32>
    tpu.vector_store %arg11[%c0_140, %c0_141], %552 {strides = array<i32>} : memref<16x32xf32, #tpu.memory_space<vmem>>, vector<2x32xf32>,
    %c1_142 = arith.constant 1 : index
    %c0_143 = arith.constant 0 : index
    %c0_144 = arith.constant 0 : index
    %554 = vector.load %arg1[%c1_142, %c0_143, %c0_144] : memref<8x2x96xf32, #tpu.memory_space<vmem>>, vector<1x2x96xf32>
    %555 = vector.shape_cast %554 : vector<1x2x96xf32> to vector<2x96xf32>
    %cst_145 = arith.constant dense<0.000000e+00> : vector<2x96xf32>
    %556 = tpu.matmul %552, %518, %cst_145 {dimension_numbers = #tpu.dot_dimension_numbers<[1], [0], [0], [1], [0, 0, 1, 1], [], []>} : vector<2x32xf32>, vector<32x96xf32>, vector<2x96xf32> -> vector<2x96xf32>
    %557 = vector.broadcast %520 : vector<1x96xf32> to vector<2x96xf32>
    %558 = arith.addf %556, %557 : vector<2x96xf32>
    %559 = vector.extract_strided_slice %555 {offsets = [0, 0], sizes = [2, 32], strides = [1, 1]} : vector<2x96xf32> to vector<2x32xf32>
    %560 = vector.extract_strided_slice %558 {offsets = [0, 0], sizes = [2, 32], strides = [1, 1]} : vector<2x96xf32> to vector<2x32xf32>
    %561 = arith.addf %559, %560 : vector<2x32xf32>
    %562 = arith.negf %561 : vector<2x32xf32>
    %563 = math.exp %562 : vector<2x32xf32>
    %cst_146 = arith.constant 1.000000e+00 : f32
    %564 = vector.broadcast %cst_146 : f32 to vector<2x32xf32>
    %565 = arith.addf %564, %563 : vector<2x32xf32>
    %566 = arith.divf %564, %565 : vector<2x32xf32>
    %567 = vector.extract_strided_slice %555 {offsets = [0, 32], sizes = [2, 32], strides = [1, 1]} : vector<2x96xf32> to vector<2x32xf32>
    %568 = vector.extract_strided_slice %558 {offsets = [0, 32], sizes = [2, 32], strides = [1, 1]} : vector<2x96xf32> to vector<2x32xf32>
    %569 = arith.addf %567, %568 : vector<2x32xf32>
    %570 = arith.negf %569 : vector<2x32xf32>
    %571 = math.exp %570 : vector<2x32xf32>
    %cst_147 = arith.constant 1.000000e+00 : f32
    %572 = vector.broadcast %cst_147 : f32 to vector<2x32xf32>
    %573 = arith.addf %572, %571 : vector<2x32xf32>
    %574 = arith.divf %572, %573 : vector<2x32xf32>
    %575 = vector.extract_strided_slice %555 {offsets = [0, 64], sizes = [2, 32], strides = [1, 1]} : vector<2x96xf32> to vector<2x32xf32>
    %576 = vector.extract_strided_slice %558 {offsets = [0, 64], sizes = [2, 32], strides = [1, 1]} : vector<2x96xf32> to vector<2x32xf32>
    %577 = arith.mulf %566, %576 : vector<2x32xf32>
    %578 = arith.addf %575, %577 : vector<2x32xf32>
    %579 = math.tanh %578 : vector<2x32xf32>
    %cst_148 = arith.constant 1.000000e+00 : f32
    %580 = vector.broadcast %cst_148 : f32 to vector<2x32xf32>
    %581 = arith.subf %580, %574 : vector<2x32xf32>
    %582 = arith.mulf %581, %579 : vector<2x32xf32>
    %583 = arith.mulf %574, %552 : vector<2x32xf32>
    %584 = arith.addf %582, %583 : vector<2x32xf32>
    %c2_149 = arith.constant 2 : index
    %c0_150 = arith.constant 0 : index
    %585 = vector.load %arg11[%c2_149, %c0_150] : memref<16x32xf32, #tpu.memory_space<vmem>>, vector<2x32xf32>
    tpu.vector_store %arg11[%c2_149, %c0_150], %584 {strides = array<i32>} : memref<16x32xf32, #tpu.memory_space<vmem>>, vector<2x32xf32>,
    %c2_151 = arith.constant 2 : index
    %c0_152 = arith.constant 0 : index
    %c0_153 = arith.constant 0 : index
    %586 = vector.load %arg1[%c2_151, %c0_152, %c0_153] : memref<8x2x96xf32, #tpu.memory_space<vmem>>, vector<1x2x96xf32>
    %587 = vector.shape_cast %586 : vector<1x2x96xf32> to vector<2x96xf32>
    %cst_154 = arith.constant dense<0.000000e+00> : vector<2x96xf32>
    %588 = tpu.matmul %584, %518, %cst_154 {dimension_numbers = #tpu.dot_dimension_numbers<[1], [0], [0], [1], [0, 0, 1, 1], [], []>} : vector<2x32xf32>, vector<32x96xf32>, vector<2x96xf32> -> vector<2x96xf32>
    %589 = vector.broadcast %520 : vector<1x96xf32> to vector<2x96xf32>
    %590 = arith.addf %588, %589 : vector<2x96xf32>
    %591 = vector.extract_strided_slice %587 {offsets = [0, 0], sizes = [2, 32], strides = [1, 1]} : vector<2x96xf32> to vector<2x32xf32>
    %592 = vector.extract_strided_slice %590 {offsets = [0, 0], sizes = [2, 32], strides = [1, 1]} : vector<2x96xf32> to vector<2x32xf32>
    %593 = arith.addf %591, %592 : vector<2x32xf32>
    %594 = arith.negf %593 : vector<2x32xf32>
    %595 = math.exp %594 : vector<2x32xf32>
    %cst_155 = arith.constant 1.000000e+00 : f32
    %596 = vector.broadcast %cst_155 : f32 to vector<2x32xf32>
    %597 = arith.addf %596, %595 : vector<2x32xf32>
    %598 = arith.divf %596, %597 : vector<2x32xf32>
    %599 = vector.extract_strided_slice %587 {offsets = [0, 32], sizes = [2, 32], strides = [1, 1]} : vector<2x96xf32> to vector<2x32xf32>
    %600 = vector.extract_strided_slice %590 {offsets = [0, 32], sizes = [2, 32], strides = [1, 1]} : vector<2x96xf32> to vector<2x32xf32>
    %601 = arith.addf %599, %600 : vector<2x32xf32>
    %602 = arith.negf %601 : vector<2x32xf32>
    %603 = math.exp %602 : vector<2x32xf32>
    %cst_156 = arith.constant 1.000000e+00 : f32
    %604 = vector.broadcast %cst_156 : f32 to vector<2x32xf32>
    %605 = arith.addf %604, %603 : vector<2x32xf32>
    %606 = arith.divf %604, %605 : vector<2x32xf32>
    %607 = vector.extract_strided_slice %587 {offsets = [0, 64], sizes = [2, 32], strides = [1, 1]} : vector<2x96xf32> to vector<2x32xf32>
    %608 = vector.extract_strided_slice %590 {offsets = [0, 64], sizes = [2, 32], strides = [1, 1]} : vector<2x96xf32> to vector<2x32xf32>
    %609 = arith.mulf %598, %608 : vector<2x32xf32>
    %610 = arith.addf %607, %609 : vector<2x32xf32>
    %611 = math.tanh %610 : vector<2x32xf32>
    %cst_157 = arith.constant 1.000000e+00 : f32
    %612 = vector.broadcast %cst_157 : f32 to vector<2x32xf32>
    %613 = arith.subf %612, %606 : vector<2x32xf32>
    %614 = arith.mulf %613, %611 : vector<2x32xf32>
    %615 = arith.mulf %606, %584 : vector<2x32xf32>
    %616 = arith.addf %614, %615 : vector<2x32xf32>
    %c4_158 = arith.constant 4 : index
    %c0_159 = arith.constant 0 : index
    %617 = vector.load %arg11[%c4_158, %c0_159] : memref<16x32xf32, #tpu.memory_space<vmem>>, vector<2x32xf32>
    tpu.vector_store %arg11[%c4_158, %c0_159], %616 {strides = array<i32>} : memref<16x32xf32, #tpu.memory_space<vmem>>, vector<2x32xf32>,
    %c3_160 = arith.constant 3 : index
    %c0_161 = arith.constant 0 : index
    %c0_162 = arith.constant 0 : index
    %618 = vector.load %arg1[%c3_160, %c0_161, %c0_162] : memref<8x2x96xf32, #tpu.memory_space<vmem>>, vector<1x2x96xf32>
    %619 = vector.shape_cast %618 : vector<1x2x96xf32> to vector<2x96xf32>
    %cst_163 = arith.constant dense<0.000000e+00> : vector<2x96xf32>
    %620 = tpu.matmul %616, %518, %cst_163 {dimension_numbers = #tpu.dot_dimension_numbers<[1], [0], [0], [1], [0, 0, 1, 1], [], []>} : vector<2x32xf32>, vector<32x96xf32>, vector<2x96xf32> -> vector<2x96xf32>
    %621 = vector.broadcast %520 : vector<1x96xf32> to vector<2x96xf32>
    %622 = arith.addf %620, %621 : vector<2x96xf32>
    %623 = vector.extract_strided_slice %619 {offsets = [0, 0], sizes = [2, 32], strides = [1, 1]} : vector<2x96xf32> to vector<2x32xf32>
    %624 = vector.extract_strided_slice %622 {offsets = [0, 0], sizes = [2, 32], strides = [1, 1]} : vector<2x96xf32> to vector<2x32xf32>
    %625 = arith.addf %623, %624 : vector<2x32xf32>
    %626 = arith.negf %625 : vector<2x32xf32>
    %627 = math.exp %626 : vector<2x32xf32>
    %cst_164 = arith.constant 1.000000e+00 : f32
    %628 = vector.broadcast %cst_164 : f32 to vector<2x32xf32>
    %629 = arith.addf %628, %627 : vector<2x32xf32>
    %630 = arith.divf %628, %629 : vector<2x32xf32>
    %631 = vector.extract_strided_slice %619 {offsets = [0, 32], sizes = [2, 32], strides = [1, 1]} : vector<2x96xf32> to vector<2x32xf32>
    %632 = vector.extract_strided_slice %622 {offsets = [0, 32], sizes = [2, 32], strides = [1, 1]} : vector<2x96xf32> to vector<2x32xf32>
    %633 = arith.addf %631, %632 : vector<2x32xf32>
    %634 = arith.negf %633 : vector<2x32xf32>
    %635 = math.exp %634 : vector<2x32xf32>
    %cst_165 = arith.constant 1.000000e+00 : f32
    %636 = vector.broadcast %cst_165 : f32 to vector<2x32xf32>
    %637 = arith.addf %636, %635 : vector<2x32xf32>
    %638 = arith.divf %636, %637 : vector<2x32xf32>
    %639 = vector.extract_strided_slice %619 {offsets = [0, 64], sizes = [2, 32], strides = [1, 1]} : vector<2x96xf32> to vector<2x32xf32>
    %640 = vector.extract_strided_slice %622 {offsets = [0, 64], sizes = [2, 32], strides = [1, 1]} : vector<2x96xf32> to vector<2x32xf32>
    %641 = arith.mulf %630, %640 : vector<2x32xf32>
    %642 = arith.addf %639, %641 : vector<2x32xf32>
    %643 = math.tanh %642 : vector<2x32xf32>
    %cst_166 = arith.constant 1.000000e+00 : f32
    %644 = vector.broadcast %cst_166 : f32 to vector<2x32xf32>
    %645 = arith.subf %644, %638 : vector<2x32xf32>
    %646 = arith.mulf %645, %643 : vector<2x32xf32>
    %647 = arith.mulf %638, %616 : vector<2x32xf32>
    %648 = arith.addf %646, %647 : vector<2x32xf32>
    %c6_167 = arith.constant 6 : index
    %c0_168 = arith.constant 0 : index
    %649 = vector.load %arg11[%c6_167, %c0_168] : memref<16x32xf32, #tpu.memory_space<vmem>>, vector<2x32xf32>
    tpu.vector_store %arg11[%c6_167, %c0_168], %648 {strides = array<i32>} : memref<16x32xf32, #tpu.memory_space<vmem>>, vector<2x32xf32>,
    %c4_169 = arith.constant 4 : index
    %c0_170 = arith.constant 0 : index
    %c0_171 = arith.constant 0 : index
    %650 = vector.load %arg1[%c4_169, %c0_170, %c0_171] : memref<8x2x96xf32, #tpu.memory_space<vmem>>, vector<1x2x96xf32>
    %651 = vector.shape_cast %650 : vector<1x2x96xf32> to vector<2x96xf32>
    %cst_172 = arith.constant dense<0.000000e+00> : vector<2x96xf32>
    %652 = tpu.matmul %648, %518, %cst_172 {dimension_numbers = #tpu.dot_dimension_numbers<[1], [0], [0], [1], [0, 0, 1, 1], [], []>} : vector<2x32xf32>, vector<32x96xf32>, vector<2x96xf32> -> vector<2x96xf32>
    %653 = vector.broadcast %520 : vector<1x96xf32> to vector<2x96xf32>
    %654 = arith.addf %652, %653 : vector<2x96xf32>
    %655 = vector.extract_strided_slice %651 {offsets = [0, 0], sizes = [2, 32], strides = [1, 1]} : vector<2x96xf32> to vector<2x32xf32>
    %656 = vector.extract_strided_slice %654 {offsets = [0, 0], sizes = [2, 32], strides = [1, 1]} : vector<2x96xf32> to vector<2x32xf32>
    %657 = arith.addf %655, %656 : vector<2x32xf32>
    %658 = arith.negf %657 : vector<2x32xf32>
    %659 = math.exp %658 : vector<2x32xf32>
    %cst_173 = arith.constant 1.000000e+00 : f32
    %660 = vector.broadcast %cst_173 : f32 to vector<2x32xf32>
    %661 = arith.addf %660, %659 : vector<2x32xf32>
    %662 = arith.divf %660, %661 : vector<2x32xf32>
    %663 = vector.extract_strided_slice %651 {offsets = [0, 32], sizes = [2, 32], strides = [1, 1]} : vector<2x96xf32> to vector<2x32xf32>
    %664 = vector.extract_strided_slice %654 {offsets = [0, 32], sizes = [2, 32], strides = [1, 1]} : vector<2x96xf32> to vector<2x32xf32>
    %665 = arith.addf %663, %664 : vector<2x32xf32>
    %666 = arith.negf %665 : vector<2x32xf32>
    %667 = math.exp %666 : vector<2x32xf32>
    %cst_174 = arith.constant 1.000000e+00 : f32
    %668 = vector.broadcast %cst_174 : f32 to vector<2x32xf32>
    %669 = arith.addf %668, %667 : vector<2x32xf32>
    %670 = arith.divf %668, %669 : vector<2x32xf32>
    %671 = vector.extract_strided_slice %651 {offsets = [0, 64], sizes = [2, 32], strides = [1, 1]} : vector<2x96xf32> to vector<2x32xf32>
    %672 = vector.extract_strided_slice %654 {offsets = [0, 64], sizes = [2, 32], strides = [1, 1]} : vector<2x96xf32> to vector<2x32xf32>
    %673 = arith.mulf %662, %672 : vector<2x32xf32>
    %674 = arith.addf %671, %673 : vector<2x32xf32>
    %675 = math.tanh %674 : vector<2x32xf32>
    %cst_175 = arith.constant 1.000000e+00 : f32
    %676 = vector.broadcast %cst_175 : f32 to vector<2x32xf32>
    %677 = arith.subf %676, %670 : vector<2x32xf32>
    %678 = arith.mulf %677, %675 : vector<2x32xf32>
    %679 = arith.mulf %670, %648 : vector<2x32xf32>
    %680 = arith.addf %678, %679 : vector<2x32xf32>
    %c8_176 = arith.constant 8 : index
    %c0_177 = arith.constant 0 : index
    %681 = vector.load %arg11[%c8_176, %c0_177] : memref<16x32xf32, #tpu.memory_space<vmem>>, vector<2x32xf32>
    tpu.vector_store %arg11[%c8_176, %c0_177], %680 {strides = array<i32>} : memref<16x32xf32, #tpu.memory_space<vmem>>, vector<2x32xf32>,
    %c5_178 = arith.constant 5 : index
    %c0_179 = arith.constant 0 : index
    %c0_180 = arith.constant 0 : index
    %682 = vector.load %arg1[%c5_178, %c0_179, %c0_180] : memref<8x2x96xf32, #tpu.memory_space<vmem>>, vector<1x2x96xf32>
    %683 = vector.shape_cast %682 : vector<1x2x96xf32> to vector<2x96xf32>
    %cst_181 = arith.constant dense<0.000000e+00> : vector<2x96xf32>
    %684 = tpu.matmul %680, %518, %cst_181 {dimension_numbers = #tpu.dot_dimension_numbers<[1], [0], [0], [1], [0, 0, 1, 1], [], []>} : vector<2x32xf32>, vector<32x96xf32>, vector<2x96xf32> -> vector<2x96xf32>
    %685 = vector.broadcast %520 : vector<1x96xf32> to vector<2x96xf32>
    %686 = arith.addf %684, %685 : vector<2x96xf32>
    %687 = vector.extract_strided_slice %683 {offsets = [0, 0], sizes = [2, 32], strides = [1, 1]} : vector<2x96xf32> to vector<2x32xf32>
    %688 = vector.extract_strided_slice %686 {offsets = [0, 0], sizes = [2, 32], strides = [1, 1]} : vector<2x96xf32> to vector<2x32xf32>
    %689 = arith.addf %687, %688 : vector<2x32xf32>
    %690 = arith.negf %689 : vector<2x32xf32>
    %691 = math.exp %690 : vector<2x32xf32>
    %cst_182 = arith.constant 1.000000e+00 : f32
    %692 = vector.broadcast %cst_182 : f32 to vector<2x32xf32>
    %693 = arith.addf %692, %691 : vector<2x32xf32>
    %694 = arith.divf %692, %693 : vector<2x32xf32>
    %695 = vector.extract_strided_slice %683 {offsets = [0, 32], sizes = [2, 32], strides = [1, 1]} : vector<2x96xf32> to vector<2x32xf32>
    %696 = vector.extract_strided_slice %686 {offsets = [0, 32], sizes = [2, 32], strides = [1, 1]} : vector<2x96xf32> to vector<2x32xf32>
    %697 = arith.addf %695, %696 : vector<2x32xf32>
    %698 = arith.negf %697 : vector<2x32xf32>
    %699 = math.exp %698 : vector<2x32xf32>
    %cst_183 = arith.constant 1.000000e+00 : f32
    %700 = vector.broadcast %cst_183 : f32 to vector<2x32xf32>
    %701 = arith.addf %700, %699 : vector<2x32xf32>
    %702 = arith.divf %700, %701 : vector<2x32xf32>
    %703 = vector.extract_strided_slice %683 {offsets = [0, 64], sizes = [2, 32], strides = [1, 1]} : vector<2x96xf32> to vector<2x32xf32>
    %704 = vector.extract_strided_slice %686 {offsets = [0, 64], sizes = [2, 32], strides = [1, 1]} : vector<2x96xf32> to vector<2x32xf32>
    %705 = arith.mulf %694, %704 : vector<2x32xf32>
    %706 = arith.addf %703, %705 : vector<2x32xf32>
    %707 = math.tanh %706 : vector<2x32xf32>
    %cst_184 = arith.constant 1.000000e+00 : f32
    %708 = vector.broadcast %cst_184 : f32 to vector<2x32xf32>
    %709 = arith.subf %708, %702 : vector<2x32xf32>
    %710 = arith.mulf %709, %707 : vector<2x32xf32>
    %711 = arith.mulf %702, %680 : vector<2x32xf32>
    %712 = arith.addf %710, %711 : vector<2x32xf32>
    %c10_185 = arith.constant 10 : index
    %c0_186 = arith.constant 0 : index
    %713 = vector.load %arg11[%c10_185, %c0_186] : memref<16x32xf32, #tpu.memory_space<vmem>>, vector<2x32xf32>
    tpu.vector_store %arg11[%c10_185, %c0_186], %712 {strides = array<i32>} : memref<16x32xf32, #tpu.memory_space<vmem>>, vector<2x32xf32>,
    %c6_187 = arith.constant 6 : index
    %c0_188 = arith.constant 0 : index
    %c0_189 = arith.constant 0 : index
    %714 = vector.load %arg1[%c6_187, %c0_188, %c0_189] : memref<8x2x96xf32, #tpu.memory_space<vmem>>, vector<1x2x96xf32>
    %715 = vector.shape_cast %714 : vector<1x2x96xf32> to vector<2x96xf32>
    %cst_190 = arith.constant dense<0.000000e+00> : vector<2x96xf32>
    %716 = tpu.matmul %712, %518, %cst_190 {dimension_numbers = #tpu.dot_dimension_numbers<[1], [0], [0], [1], [0, 0, 1, 1], [], []>} : vector<2x32xf32>, vector<32x96xf32>, vector<2x96xf32> -> vector<2x96xf32>
    %717 = vector.broadcast %520 : vector<1x96xf32> to vector<2x96xf32>
    %718 = arith.addf %716, %717 : vector<2x96xf32>
    %719 = vector.extract_strided_slice %715 {offsets = [0, 0], sizes = [2, 32], strides = [1, 1]} : vector<2x96xf32> to vector<2x32xf32>
    %720 = vector.extract_strided_slice %718 {offsets = [0, 0], sizes = [2, 32], strides = [1, 1]} : vector<2x96xf32> to vector<2x32xf32>
    %721 = arith.addf %719, %720 : vector<2x32xf32>
    %722 = arith.negf %721 : vector<2x32xf32>
    %723 = math.exp %722 : vector<2x32xf32>
    %cst_191 = arith.constant 1.000000e+00 : f32
    %724 = vector.broadcast %cst_191 : f32 to vector<2x32xf32>
    %725 = arith.addf %724, %723 : vector<2x32xf32>
    %726 = arith.divf %724, %725 : vector<2x32xf32>
    %727 = vector.extract_strided_slice %715 {offsets = [0, 32], sizes = [2, 32], strides = [1, 1]} : vector<2x96xf32> to vector<2x32xf32>
    %728 = vector.extract_strided_slice %718 {offsets = [0, 32], sizes = [2, 32], strides = [1, 1]} : vector<2x96xf32> to vector<2x32xf32>
    %729 = arith.addf %727, %728 : vector<2x32xf32>
    %730 = arith.negf %729 : vector<2x32xf32>
    %731 = math.exp %730 : vector<2x32xf32>
    %cst_192 = arith.constant 1.000000e+00 : f32
    %732 = vector.broadcast %cst_192 : f32 to vector<2x32xf32>
    %733 = arith.addf %732, %731 : vector<2x32xf32>
    %734 = arith.divf %732, %733 : vector<2x32xf32>
    %735 = vector.extract_strided_slice %715 {offsets = [0, 64], sizes = [2, 32], strides = [1, 1]} : vector<2x96xf32> to vector<2x32xf32>
    %736 = vector.extract_strided_slice %718 {offsets = [0, 64], sizes = [2, 32], strides = [1, 1]} : vector<2x96xf32> to vector<2x32xf32>
    %737 = arith.mulf %726, %736 : vector<2x32xf32>
    %738 = arith.addf %735, %737 : vector<2x32xf32>
    %739 = math.tanh %738 : vector<2x32xf32>
    %cst_193 = arith.constant 1.000000e+00 : f32
    %740 = vector.broadcast %cst_193 : f32 to vector<2x32xf32>
    %741 = arith.subf %740, %734 : vector<2x32xf32>
    %742 = arith.mulf %741, %739 : vector<2x32xf32>
    %743 = arith.mulf %734, %712 : vector<2x32xf32>
    %744 = arith.addf %742, %743 : vector<2x32xf32>
    %c12_194 = arith.constant 12 : index
    %c0_195 = arith.constant 0 : index
    %745 = vector.load %arg11[%c12_194, %c0_195] : memref<16x32xf32, #tpu.memory_space<vmem>>, vector<2x32xf32>
    tpu.vector_store %arg11[%c12_194, %c0_195], %744 {strides = array<i32>} : memref<16x32xf32, #tpu.memory_space<vmem>>, vector<2x32xf32>,
    %c7_196 = arith.constant 7 : index
    %c0_197 = arith.constant 0 : index
    %c0_198 = arith.constant 0 : index
    %746 = vector.load %arg1[%c7_196, %c0_197, %c0_198] : memref<8x2x96xf32, #tpu.memory_space<vmem>>, vector<1x2x96xf32>
    %747 = vector.shape_cast %746 : vector<1x2x96xf32> to vector<2x96xf32>
    %cst_199 = arith.constant dense<0.000000e+00> : vector<2x96xf32>
    %748 = tpu.matmul %744, %518, %cst_199 {dimension_numbers = #tpu.dot_dimension_numbers<[1], [0], [0], [1], [0, 0, 1, 1], [], []>} : vector<2x32xf32>, vector<32x96xf32>, vector<2x96xf32> -> vector<2x96xf32>
    %749 = vector.broadcast %520 : vector<1x96xf32> to vector<2x96xf32>
    %750 = arith.addf %748, %749 : vector<2x96xf32>
    %751 = vector.extract_strided_slice %747 {offsets = [0, 0], sizes = [2, 32], strides = [1, 1]} : vector<2x96xf32> to vector<2x32xf32>
    %752 = vector.extract_strided_slice %750 {offsets = [0, 0], sizes = [2, 32], strides = [1, 1]} : vector<2x96xf32> to vector<2x32xf32>
    %753 = arith.addf %751, %752 : vector<2x32xf32>
    %754 = arith.negf %753 : vector<2x32xf32>
    %755 = math.exp %754 : vector<2x32xf32>
    %cst_200 = arith.constant 1.000000e+00 : f32
    %756 = vector.broadcast %cst_200 : f32 to vector<2x32xf32>
    %757 = arith.addf %756, %755 : vector<2x32xf32>
    %758 = arith.divf %756, %757 : vector<2x32xf32>
    %759 = vector.extract_strided_slice %747 {offsets = [0, 32], sizes = [2, 32], strides = [1, 1]} : vector<2x96xf32> to vector<2x32xf32>
    %760 = vector.extract_strided_slice %750 {offsets = [0, 32], sizes = [2, 32], strides = [1, 1]} : vector<2x96xf32> to vector<2x32xf32>
    %761 = arith.addf %759, %760 : vector<2x32xf32>
    %762 = arith.negf %761 : vector<2x32xf32>
    %763 = math.exp %762 : vector<2x32xf32>
    %cst_201 = arith.constant 1.000000e+00 : f32
    %764 = vector.broadcast %cst_201 : f32 to vector<2x32xf32>
    %765 = arith.addf %764, %763 : vector<2x32xf32>
    %766 = arith.divf %764, %765 : vector<2x32xf32>
    %767 = vector.extract_strided_slice %747 {offsets = [0, 64], sizes = [2, 32], strides = [1, 1]} : vector<2x96xf32> to vector<2x32xf32>
    %768 = vector.extract_strided_slice %750 {offsets = [0, 64], sizes = [2, 32], strides = [1, 1]} : vector<2x96xf32> to vector<2x32xf32>
    %769 = arith.mulf %758, %768 : vector<2x32xf32>
    %770 = arith.addf %767, %769 : vector<2x32xf32>
    %771 = math.tanh %770 : vector<2x32xf32>
    %cst_202 = arith.constant 1.000000e+00 : f32
    %772 = vector.broadcast %cst_202 : f32 to vector<2x32xf32>
    %773 = arith.subf %772, %766 : vector<2x32xf32>
    %774 = arith.mulf %773, %771 : vector<2x32xf32>
    %775 = arith.mulf %766, %744 : vector<2x32xf32>
    %776 = arith.addf %774, %775 : vector<2x32xf32>
    %c14_203 = arith.constant 14 : index
    %c0_204 = arith.constant 0 : index
    %777 = vector.load %arg11[%c14_203, %c0_204] : memref<16x32xf32, #tpu.memory_space<vmem>>, vector<2x32xf32>
    tpu.vector_store %arg11[%c14_203, %c0_204], %776 {strides = array<i32>} : memref<16x32xf32, #tpu.memory_space<vmem>>, vector<2x32xf32>,
    %c0_205 = arith.constant 0 : index
    %c0_206 = arith.constant 0 : index
    %778 = vector.load %arg2[%c0_205, %c0_206] : memref<16x32xf32, #tpu.memory_space<vmem>>, vector<16x32xf32>
    %c0_207 = arith.constant 0 : index
    %c0_208 = arith.constant 0 : index
    %779 = vector.load %arg10[%c0_207, %c0_208] : memref<32x32xf32, #tpu.memory_space<vmem>>, vector<32x32xf32>
    %cst_209 = arith.constant dense<0.000000e+00> : vector<16x32xf32>
    %780 = tpu.matmul %778, %779, %cst_209 {dimension_numbers = #tpu.dot_dimension_numbers<[1], [0], [0], [1], [0, 0, 1, 1], [], []>} : vector<16x32xf32>, vector<32x32xf32>, vector<16x32xf32> -> vector<16x32xf32>
    %c0_210 = arith.constant 0 : index
    %c0_211 = arith.constant 0 : index
    %781 = vector.load %arg11[%c0_210, %c0_211] : memref<16x32xf32, #tpu.memory_space<vmem>>, vector<16x32xf32>
    %c0_212 = arith.constant 0 : index
    %c0_213 = arith.constant 0 : index
    %c0_214 = arith.constant 0 : index
    %782 = vector.load %arg5[%c0_212, %c0_213, %c0_214] : memref<2x32x96xf32, #tpu.memory_space<vmem>>, vector<1x32x96xf32>
    %783 = vector.shape_cast %782 : vector<1x32x96xf32> to vector<32x96xf32>
    %cst_215 = arith.constant dense<0.000000e+00> : vector<16x96xf32>
    %784 = tpu.matmul %780, %783, %cst_215 {dimension_numbers = #tpu.dot_dimension_numbers<[1], [0], [0], [1], [0, 0, 1, 1], [], []>} : vector<16x32xf32>, vector<32x96xf32>, vector<16x96xf32> -> vector<16x96xf32>
    %c1_216 = arith.constant 1 : index
    %c0_217 = arith.constant 0 : index
    %c0_218 = arith.constant 0 : index
    %785 = vector.load %arg5[%c1_216, %c0_217, %c0_218] : memref<2x32x96xf32, #tpu.memory_space<vmem>>, vector<1x32x96xf32>
    %786 = vector.shape_cast %785 : vector<1x32x96xf32> to vector<32x96xf32>
    %cst_219 = arith.constant dense<0.000000e+00> : vector<16x96xf32>
    %787 = tpu.matmul %781, %786, %cst_219 {dimension_numbers = #tpu.dot_dimension_numbers<[1], [0], [0], [1], [0, 0, 1, 1], [], []>} : vector<16x32xf32>, vector<32x96xf32>, vector<16x96xf32> -> vector<16x96xf32>
    %788 = arith.addf %784, %787 : vector<16x96xf32>
    %c0_220 = arith.constant 0 : index
    %c0_221 = arith.constant 0 : index
    %789 = vector.load %arg6[%c0_220, %c0_221] : memref<1x96xf32, #tpu.memory_space<vmem>>, vector<1x96xf32>
    %790 = vector.broadcast %789 : vector<1x96xf32> to vector<16x96xf32>
    %791 = arith.addf %788, %790 : vector<16x96xf32>
    %c2_222 = arith.constant 2 : index
    %c0_223 = arith.constant 0 : index
    %c0_224 = arith.constant 0 : index
    %792 = vector.load %arg3[%c2_222, %c0_223, %c0_224] : memref<3x32x96xf32, #tpu.memory_space<vmem>>, vector<1x32x96xf32>
    %793 = vector.shape_cast %792 : vector<1x32x96xf32> to vector<32x96xf32>
    %c2_225 = arith.constant 2 : index
    %c0_226 = arith.constant 0 : index
    %c0_227 = arith.constant 0 : index
    %794 = vector.load %arg4[%c2_225, %c0_226, %c0_227] : memref<3x1x96xf32, #tpu.memory_space<vmem>>, vector<1x1x96xf32>
    %795 = vector.shape_cast %794 : vector<1x1x96xf32> to vector<1x96xf32>
    %cst_228 = arith.constant 0.000000e+00 : f32
    %796 = vector.broadcast %cst_228 : f32 to vector<2x32xf32>
    %797 = vector.extract_strided_slice %791 {offsets = [0, 0], sizes = [2, 96], strides = [1, 1]} : vector<16x96xf32> to vector<2x96xf32>
    %cst_229 = arith.constant dense<0.000000e+00> : vector<2x96xf32>
    %798 = tpu.matmul %796, %793, %cst_229 {dimension_numbers = #tpu.dot_dimension_numbers<[1], [0], [0], [1], [0, 0, 1, 1], [], []>} : vector<2x32xf32>, vector<32x96xf32>, vector<2x96xf32> -> vector<2x96xf32>
    %799 = vector.broadcast %795 : vector<1x96xf32> to vector<2x96xf32>
    %800 = arith.addf %798, %799 : vector<2x96xf32>
    %801 = vector.extract_strided_slice %797 {offsets = [0, 0], sizes = [2, 32], strides = [1, 1]} : vector<2x96xf32> to vector<2x32xf32>
    %802 = vector.extract_strided_slice %800 {offsets = [0, 0], sizes = [2, 32], strides = [1, 1]} : vector<2x96xf32> to vector<2x32xf32>
    %803 = arith.addf %801, %802 : vector<2x32xf32>
    %804 = arith.negf %803 : vector<2x32xf32>
    %805 = math.exp %804 : vector<2x32xf32>
    %cst_230 = arith.constant 1.000000e+00 : f32
    %806 = vector.broadcast %cst_230 : f32 to vector<2x32xf32>
    %807 = arith.addf %806, %805 : vector<2x32xf32>
    %808 = arith.divf %806, %807 : vector<2x32xf32>
    %809 = vector.extract_strided_slice %797 {offsets = [0, 32], sizes = [2, 32], strides = [1, 1]} : vector<2x96xf32> to vector<2x32xf32>
    %810 = vector.extract_strided_slice %800 {offsets = [0, 32], sizes = [2, 32], strides = [1, 1]} : vector<2x96xf32> to vector<2x32xf32>
    %811 = arith.addf %809, %810 : vector<2x32xf32>
    %812 = arith.negf %811 : vector<2x32xf32>
    %813 = math.exp %812 : vector<2x32xf32>
    %cst_231 = arith.constant 1.000000e+00 : f32
    %814 = vector.broadcast %cst_231 : f32 to vector<2x32xf32>
    %815 = arith.addf %814, %813 : vector<2x32xf32>
    %816 = arith.divf %814, %815 : vector<2x32xf32>
    %817 = vector.extract_strided_slice %797 {offsets = [0, 64], sizes = [2, 32], strides = [1, 1]} : vector<2x96xf32> to vector<2x32xf32>
    %818 = vector.extract_strided_slice %800 {offsets = [0, 64], sizes = [2, 32], strides = [1, 1]} : vector<2x96xf32> to vector<2x32xf32>
    %819 = arith.mulf %808, %818 : vector<2x32xf32>
    %820 = arith.addf %817, %819 : vector<2x32xf32>
    %821 = math.tanh %820 : vector<2x32xf32>
    %cst_232 = arith.constant 1.000000e+00 : f32
    %822 = vector.broadcast %cst_232 : f32 to vector<2x32xf32>
    %823 = arith.subf %822, %816 : vector<2x32xf32>
    %824 = arith.mulf %823, %821 : vector<2x32xf32>
    %825 = arith.mulf %816, %796 : vector<2x32xf32>
    %826 = arith.addf %824, %825 : vector<2x32xf32>
    %c0_233 = arith.constant 0 : index
    %c0_234 = arith.constant 0 : index
    %827 = vector.load %arg12[%c0_233, %c0_234] : memref<16x32xf32, #tpu.memory_space<vmem>>, vector<2x32xf32>
    tpu.vector_store %arg12[%c0_233, %c0_234], %826 {strides = array<i32>} : memref<16x32xf32, #tpu.memory_space<vmem>>, vector<2x32xf32>,
    %828 = vector.extract_strided_slice %791 {offsets = [2, 0], sizes = [2, 96], strides = [1, 1]} : vector<16x96xf32> to vector<2x96xf32>
    %cst_235 = arith.constant dense<0.000000e+00> : vector<2x96xf32>
    %829 = tpu.matmul %826, %793, %cst_235 {dimension_numbers = #tpu.dot_dimension_numbers<[1], [0], [0], [1], [0, 0, 1, 1], [], []>} : vector<2x32xf32>, vector<32x96xf32>, vector<2x96xf32> -> vector<2x96xf32>
    %830 = vector.broadcast %795 : vector<1x96xf32> to vector<2x96xf32>
    %831 = arith.addf %829, %830 : vector<2x96xf32>
    %832 = vector.extract_strided_slice %828 {offsets = [0, 0], sizes = [2, 32], strides = [1, 1]} : vector<2x96xf32> to vector<2x32xf32>
    %833 = vector.extract_strided_slice %831 {offsets = [0, 0], sizes = [2, 32], strides = [1, 1]} : vector<2x96xf32> to vector<2x32xf32>
    %834 = arith.addf %832, %833 : vector<2x32xf32>
    %835 = arith.negf %834 : vector<2x32xf32>
    %836 = math.exp %835 : vector<2x32xf32>
    %cst_236 = arith.constant 1.000000e+00 : f32
    %837 = vector.broadcast %cst_236 : f32 to vector<2x32xf32>
    %838 = arith.addf %837, %836 : vector<2x32xf32>
    %839 = arith.divf %837, %838 : vector<2x32xf32>
    %840 = vector.extract_strided_slice %828 {offsets = [0, 32], sizes = [2, 32], strides = [1, 1]} : vector<2x96xf32> to vector<2x32xf32>
    %841 = vector.extract_strided_slice %831 {offsets = [0, 32], sizes = [2, 32], strides = [1, 1]} : vector<2x96xf32> to vector<2x32xf32>
    %842 = arith.addf %840, %841 : vector<2x32xf32>
    %843 = arith.negf %842 : vector<2x32xf32>
    %844 = math.exp %843 : vector<2x32xf32>
    %cst_237 = arith.constant 1.000000e+00 : f32
    %845 = vector.broadcast %cst_237 : f32 to vector<2x32xf32>
    %846 = arith.addf %845, %844 : vector<2x32xf32>
    %847 = arith.divf %845, %846 : vector<2x32xf32>
    %848 = vector.extract_strided_slice %828 {offsets = [0, 64], sizes = [2, 32], strides = [1, 1]} : vector<2x96xf32> to vector<2x32xf32>
    %849 = vector.extract_strided_slice %831 {offsets = [0, 64], sizes = [2, 32], strides = [1, 1]} : vector<2x96xf32> to vector<2x32xf32>
    %850 = arith.mulf %839, %849 : vector<2x32xf32>
    %851 = arith.addf %848, %850 : vector<2x32xf32>
    %852 = math.tanh %851 : vector<2x32xf32>
    %cst_238 = arith.constant 1.000000e+00 : f32
    %853 = vector.broadcast %cst_238 : f32 to vector<2x32xf32>
    %854 = arith.subf %853, %847 : vector<2x32xf32>
    %855 = arith.mulf %854, %852 : vector<2x32xf32>
    %856 = arith.mulf %847, %826 : vector<2x32xf32>
    %857 = arith.addf %855, %856 : vector<2x32xf32>
    %c2_239 = arith.constant 2 : index
    %c0_240 = arith.constant 0 : index
    %858 = vector.load %arg12[%c2_239, %c0_240] : memref<16x32xf32, #tpu.memory_space<vmem>>, vector<2x32xf32>
    tpu.vector_store %arg12[%c2_239, %c0_240], %857 {strides = array<i32>} : memref<16x32xf32, #tpu.memory_space<vmem>>, vector<2x32xf32>,
    %859 = vector.extract_strided_slice %791 {offsets = [4, 0], sizes = [2, 96], strides = [1, 1]} : vector<16x96xf32> to vector<2x96xf32>
    %cst_241 = arith.constant dense<0.000000e+00> : vector<2x96xf32>
    %860 = tpu.matmul %857, %793, %cst_241 {dimension_numbers = #tpu.dot_dimension_numbers<[1], [0], [0], [1], [0, 0, 1, 1], [], []>} : vector<2x32xf32>, vector<32x96xf32>, vector<2x96xf32> -> vector<2x96xf32>
    %861 = vector.broadcast %795 : vector<1x96xf32> to vector<2x96xf32>
    %862 = arith.addf %860, %861 : vector<2x96xf32>
    %863 = vector.extract_strided_slice %859 {offsets = [0, 0], sizes = [2, 32], strides = [1, 1]} : vector<2x96xf32> to vector<2x32xf32>
    %864 = vector.extract_strided_slice %862 {offsets = [0, 0], sizes = [2, 32], strides = [1, 1]} : vector<2x96xf32> to vector<2x32xf32>
    %865 = arith.addf %863, %864 : vector<2x32xf32>
    %866 = arith.negf %865 : vector<2x32xf32>
    %867 = math.exp %866 : vector<2x32xf32>
    %cst_242 = arith.constant 1.000000e+00 : f32
    %868 = vector.broadcast %cst_242 : f32 to vector<2x32xf32>
    %869 = arith.addf %868, %867 : vector<2x32xf32>
    %870 = arith.divf %868, %869 : vector<2x32xf32>
    %871 = vector.extract_strided_slice %859 {offsets = [0, 32], sizes = [2, 32], strides = [1, 1]} : vector<2x96xf32> to vector<2x32xf32>
    %872 = vector.extract_strided_slice %862 {offsets = [0, 32], sizes = [2, 32], strides = [1, 1]} : vector<2x96xf32> to vector<2x32xf32>
    %873 = arith.addf %871, %872 : vector<2x32xf32>
    %874 = arith.negf %873 : vector<2x32xf32>
    %875 = math.exp %874 : vector<2x32xf32>
    %cst_243 = arith.constant 1.000000e+00 : f32
    %876 = vector.broadcast %cst_243 : f32 to vector<2x32xf32>
    %877 = arith.addf %876, %875 : vector<2x32xf32>
    %878 = arith.divf %876, %877 : vector<2x32xf32>
    %879 = vector.extract_strided_slice %859 {offsets = [0, 64], sizes = [2, 32], strides = [1, 1]} : vector<2x96xf32> to vector<2x32xf32>
    %880 = vector.extract_strided_slice %862 {offsets = [0, 64], sizes = [2, 32], strides = [1, 1]} : vector<2x96xf32> to vector<2x32xf32>
    %881 = arith.mulf %870, %880 : vector<2x32xf32>
    %882 = arith.addf %879, %881 : vector<2x32xf32>
    %883 = math.tanh %882 : vector<2x32xf32>
    %cst_244 = arith.constant 1.000000e+00 : f32
    %884 = vector.broadcast %cst_244 : f32 to vector<2x32xf32>
    %885 = arith.subf %884, %878 : vector<2x32xf32>
    %886 = arith.mulf %885, %883 : vector<2x32xf32>
    %887 = arith.mulf %878, %857 : vector<2x32xf32>
    %888 = arith.addf %886, %887 : vector<2x32xf32>
    %c4_245 = arith.constant 4 : index
    %c0_246 = arith.constant 0 : index
    %889 = vector.load %arg12[%c4_245, %c0_246] : memref<16x32xf32, #tpu.memory_space<vmem>>, vector<2x32xf32>
    tpu.vector_store %arg12[%c4_245, %c0_246], %888 {strides = array<i32>} : memref<16x32xf32, #tpu.memory_space<vmem>>, vector<2x32xf32>,
    %890 = vector.extract_strided_slice %791 {offsets = [6, 0], sizes = [2, 96], strides = [1, 1]} : vector<16x96xf32> to vector<2x96xf32>
    %cst_247 = arith.constant dense<0.000000e+00> : vector<2x96xf32>
    %891 = tpu.matmul %888, %793, %cst_247 {dimension_numbers = #tpu.dot_dimension_numbers<[1], [0], [0], [1], [0, 0, 1, 1], [], []>} : vector<2x32xf32>, vector<32x96xf32>, vector<2x96xf32> -> vector<2x96xf32>
    %892 = vector.broadcast %795 : vector<1x96xf32> to vector<2x96xf32>
    %893 = arith.addf %891, %892 : vector<2x96xf32>
    %894 = vector.extract_strided_slice %890 {offsets = [0, 0], sizes = [2, 32], strides = [1, 1]} : vector<2x96xf32> to vector<2x32xf32>
    %895 = vector.extract_strided_slice %893 {offsets = [0, 0], sizes = [2, 32], strides = [1, 1]} : vector<2x96xf32> to vector<2x32xf32>
    %896 = arith.addf %894, %895 : vector<2x32xf32>
    %897 = arith.negf %896 : vector<2x32xf32>
    %898 = math.exp %897 : vector<2x32xf32>
    %cst_248 = arith.constant 1.000000e+00 : f32
    %899 = vector.broadcast %cst_248 : f32 to vector<2x32xf32>
    %900 = arith.addf %899, %898 : vector<2x32xf32>
    %901 = arith.divf %899, %900 : vector<2x32xf32>
    %902 = vector.extract_strided_slice %890 {offsets = [0, 32], sizes = [2, 32], strides = [1, 1]} : vector<2x96xf32> to vector<2x32xf32>
    %903 = vector.extract_strided_slice %893 {offsets = [0, 32], sizes = [2, 32], strides = [1, 1]} : vector<2x96xf32> to vector<2x32xf32>
    %904 = arith.addf %902, %903 : vector<2x32xf32>
    %905 = arith.negf %904 : vector<2x32xf32>
    %906 = math.exp %905 : vector<2x32xf32>
    %cst_249 = arith.constant 1.000000e+00 : f32
    %907 = vector.broadcast %cst_249 : f32 to vector<2x32xf32>
    %908 = arith.addf %907, %906 : vector<2x32xf32>
    %909 = arith.divf %907, %908 : vector<2x32xf32>
    %910 = vector.extract_strided_slice %890 {offsets = [0, 64], sizes = [2, 32], strides = [1, 1]} : vector<2x96xf32> to vector<2x32xf32>
    %911 = vector.extract_strided_slice %893 {offsets = [0, 64], sizes = [2, 32], strides = [1, 1]} : vector<2x96xf32> to vector<2x32xf32>
    %912 = arith.mulf %901, %911 : vector<2x32xf32>
    %913 = arith.addf %910, %912 : vector<2x32xf32>
    %914 = math.tanh %913 : vector<2x32xf32>
    %cst_250 = arith.constant 1.000000e+00 : f32
    %915 = vector.broadcast %cst_250 : f32 to vector<2x32xf32>
    %916 = arith.subf %915, %909 : vector<2x32xf32>
    %917 = arith.mulf %916, %914 : vector<2x32xf32>
    %918 = arith.mulf %909, %888 : vector<2x32xf32>
    %919 = arith.addf %917, %918 : vector<2x32xf32>
    %c6_251 = arith.constant 6 : index
    %c0_252 = arith.constant 0 : index
    %920 = vector.load %arg12[%c6_251, %c0_252] : memref<16x32xf32, #tpu.memory_space<vmem>>, vector<2x32xf32>
    tpu.vector_store %arg12[%c6_251, %c0_252], %919 {strides = array<i32>} : memref<16x32xf32, #tpu.memory_space<vmem>>, vector<2x32xf32>,
    %921 = vector.extract_strided_slice %791 {offsets = [8, 0], sizes = [2, 96], strides = [1, 1]} : vector<16x96xf32> to vector<2x96xf32>
    %cst_253 = arith.constant dense<0.000000e+00> : vector<2x96xf32>
    %922 = tpu.matmul %919, %793, %cst_253 {dimension_numbers = #tpu.dot_dimension_numbers<[1], [0], [0], [1], [0, 0, 1, 1], [], []>} : vector<2x32xf32>, vector<32x96xf32>, vector<2x96xf32> -> vector<2x96xf32>
    %923 = vector.broadcast %795 : vector<1x96xf32> to vector<2x96xf32>
    %924 = arith.addf %922, %923 : vector<2x96xf32>
    %925 = vector.extract_strided_slice %921 {offsets = [0, 0], sizes = [2, 32], strides = [1, 1]} : vector<2x96xf32> to vector<2x32xf32>
    %926 = vector.extract_strided_slice %924 {offsets = [0, 0], sizes = [2, 32], strides = [1, 1]} : vector<2x96xf32> to vector<2x32xf32>
    %927 = arith.addf %925, %926 : vector<2x32xf32>
    %928 = arith.negf %927 : vector<2x32xf32>
    %929 = math.exp %928 : vector<2x32xf32>
    %cst_254 = arith.constant 1.000000e+00 : f32
    %930 = vector.broadcast %cst_254 : f32 to vector<2x32xf32>
    %931 = arith.addf %930, %929 : vector<2x32xf32>
    %932 = arith.divf %930, %931 : vector<2x32xf32>
    %933 = vector.extract_strided_slice %921 {offsets = [0, 32], sizes = [2, 32], strides = [1, 1]} : vector<2x96xf32> to vector<2x32xf32>
    %934 = vector.extract_strided_slice %924 {offsets = [0, 32], sizes = [2, 32], strides = [1, 1]} : vector<2x96xf32> to vector<2x32xf32>
    %935 = arith.addf %933, %934 : vector<2x32xf32>
    %936 = arith.negf %935 : vector<2x32xf32>
    %937 = math.exp %936 : vector<2x32xf32>
    %cst_255 = arith.constant 1.000000e+00 : f32
    %938 = vector.broadcast %cst_255 : f32 to vector<2x32xf32>
    %939 = arith.addf %938, %937 : vector<2x32xf32>
    %940 = arith.divf %938, %939 : vector<2x32xf32>
    %941 = vector.extract_strided_slice %921 {offsets = [0, 64], sizes = [2, 32], strides = [1, 1]} : vector<2x96xf32> to vector<2x32xf32>
    %942 = vector.extract_strided_slice %924 {offsets = [0, 64], sizes = [2, 32], strides = [1, 1]} : vector<2x96xf32> to vector<2x32xf32>
    %943 = arith.mulf %932, %942 : vector<2x32xf32>
    %944 = arith.addf %941, %943 : vector<2x32xf32>
    %945 = math.tanh %944 : vector<2x32xf32>
    %cst_256 = arith.constant 1.000000e+00 : f32
    %946 = vector.broadcast %cst_256 : f32 to vector<2x32xf32>
    %947 = arith.subf %946, %940 : vector<2x32xf32>
    %948 = arith.mulf %947, %945 : vector<2x32xf32>
    %949 = arith.mulf %940, %919 : vector<2x32xf32>
    %950 = arith.addf %948, %949 : vector<2x32xf32>
    %c8_257 = arith.constant 8 : index
    %c0_258 = arith.constant 0 : index
    %951 = vector.load %arg12[%c8_257, %c0_258] : memref<16x32xf32, #tpu.memory_space<vmem>>, vector<2x32xf32>
    tpu.vector_store %arg12[%c8_257, %c0_258], %950 {strides = array<i32>} : memref<16x32xf32, #tpu.memory_space<vmem>>, vector<2x32xf32>,
    %952 = vector.extract_strided_slice %791 {offsets = [10, 0], sizes = [2, 96], strides = [1, 1]} : vector<16x96xf32> to vector<2x96xf32>
    %cst_259 = arith.constant dense<0.000000e+00> : vector<2x96xf32>
    %953 = tpu.matmul %950, %793, %cst_259 {dimension_numbers = #tpu.dot_dimension_numbers<[1], [0], [0], [1], [0, 0, 1, 1], [], []>} : vector<2x32xf32>, vector<32x96xf32>, vector<2x96xf32> -> vector<2x96xf32>
    %954 = vector.broadcast %795 : vector<1x96xf32> to vector<2x96xf32>
    %955 = arith.addf %953, %954 : vector<2x96xf32>
    %956 = vector.extract_strided_slice %952 {offsets = [0, 0], sizes = [2, 32], strides = [1, 1]} : vector<2x96xf32> to vector<2x32xf32>
    %957 = vector.extract_strided_slice %955 {offsets = [0, 0], sizes = [2, 32], strides = [1, 1]} : vector<2x96xf32> to vector<2x32xf32>
    %958 = arith.addf %956, %957 : vector<2x32xf32>
    %959 = arith.negf %958 : vector<2x32xf32>
    %960 = math.exp %959 : vector<2x32xf32>
    %cst_260 = arith.constant 1.000000e+00 : f32
    %961 = vector.broadcast %cst_260 : f32 to vector<2x32xf32>
    %962 = arith.addf %961, %960 : vector<2x32xf32>
    %963 = arith.divf %961, %962 : vector<2x32xf32>
    %964 = vector.extract_strided_slice %952 {offsets = [0, 32], sizes = [2, 32], strides = [1, 1]} : vector<2x96xf32> to vector<2x32xf32>
    %965 = vector.extract_strided_slice %955 {offsets = [0, 32], sizes = [2, 32], strides = [1, 1]} : vector<2x96xf32> to vector<2x32xf32>
    %966 = arith.addf %964, %965 : vector<2x32xf32>
    %967 = arith.negf %966 : vector<2x32xf32>
    %968 = math.exp %967 : vector<2x32xf32>
    %cst_261 = arith.constant 1.000000e+00 : f32
    %969 = vector.broadcast %cst_261 : f32 to vector<2x32xf32>
    %970 = arith.addf %969, %968 : vector<2x32xf32>
    %971 = arith.divf %969, %970 : vector<2x32xf32>
    %972 = vector.extract_strided_slice %952 {offsets = [0, 64], sizes = [2, 32], strides = [1, 1]} : vector<2x96xf32> to vector<2x32xf32>
    %973 = vector.extract_strided_slice %955 {offsets = [0, 64], sizes = [2, 32], strides = [1, 1]} : vector<2x96xf32> to vector<2x32xf32>
    %974 = arith.mulf %963, %973 : vector<2x32xf32>
    %975 = arith.addf %972, %974 : vector<2x32xf32>
    %976 = math.tanh %975 : vector<2x32xf32>
    %cst_262 = arith.constant 1.000000e+00 : f32
    %977 = vector.broadcast %cst_262 : f32 to vector<2x32xf32>
    %978 = arith.subf %977, %971 : vector<2x32xf32>
    %979 = arith.mulf %978, %976 : vector<2x32xf32>
    %980 = arith.mulf %971, %950 : vector<2x32xf32>
    %981 = arith.addf %979, %980 : vector<2x32xf32>
    %c10_263 = arith.constant 10 : index
    %c0_264 = arith.constant 0 : index
    %982 = vector.load %arg12[%c10_263, %c0_264] : memref<16x32xf32, #tpu.memory_space<vmem>>, vector<2x32xf32>
    tpu.vector_store %arg12[%c10_263, %c0_264], %981 {strides = array<i32>} : memref<16x32xf32, #tpu.memory_space<vmem>>, vector<2x32xf32>,
    %983 = vector.extract_strided_slice %791 {offsets = [12, 0], sizes = [2, 96], strides = [1, 1]} : vector<16x96xf32> to vector<2x96xf32>
    %cst_265 = arith.constant dense<0.000000e+00> : vector<2x96xf32>
    %984 = tpu.matmul %981, %793, %cst_265 {dimension_numbers = #tpu.dot_dimension_numbers<[1], [0], [0], [1], [0, 0, 1, 1], [], []>} : vector<2x32xf32>, vector<32x96xf32>, vector<2x96xf32> -> vector<2x96xf32>
    %985 = vector.broadcast %795 : vector<1x96xf32> to vector<2x96xf32>
    %986 = arith.addf %984, %985 : vector<2x96xf32>
    %987 = vector.extract_strided_slice %983 {offsets = [0, 0], sizes = [2, 32], strides = [1, 1]} : vector<2x96xf32> to vector<2x32xf32>
    %988 = vector.extract_strided_slice %986 {offsets = [0, 0], sizes = [2, 32], strides = [1, 1]} : vector<2x96xf32> to vector<2x32xf32>
    %989 = arith.addf %987, %988 : vector<2x32xf32>
    %990 = arith.negf %989 : vector<2x32xf32>
    %991 = math.exp %990 : vector<2x32xf32>
    %cst_266 = arith.constant 1.000000e+00 : f32
    %992 = vector.broadcast %cst_266 : f32 to vector<2x32xf32>
    %993 = arith.addf %992, %991 : vector<2x32xf32>
    %994 = arith.divf %992, %993 : vector<2x32xf32>
    %995 = vector.extract_strided_slice %983 {offsets = [0, 32], sizes = [2, 32], strides = [1, 1]} : vector<2x96xf32> to vector<2x32xf32>
    %996 = vector.extract_strided_slice %986 {offsets = [0, 32], sizes = [2, 32], strides = [1, 1]} : vector<2x96xf32> to vector<2x32xf32>
    %997 = arith.addf %995, %996 : vector<2x32xf32>
    %998 = arith.negf %997 : vector<2x32xf32>
    %999 = math.exp %998 : vector<2x32xf32>
    %cst_267 = arith.constant 1.000000e+00 : f32
    %1000 = vector.broadcast %cst_267 : f32 to vector<2x32xf32>
    %1001 = arith.addf %1000, %999 : vector<2x32xf32>
    %1002 = arith.divf %1000, %1001 : vector<2x32xf32>
    %1003 = vector.extract_strided_slice %983 {offsets = [0, 64], sizes = [2, 32], strides = [1, 1]} : vector<2x96xf32> to vector<2x32xf32>
    %1004 = vector.extract_strided_slice %986 {offsets = [0, 64], sizes = [2, 32], strides = [1, 1]} : vector<2x96xf32> to vector<2x32xf32>
    %1005 = arith.mulf %994, %1004 : vector<2x32xf32>
    %1006 = arith.addf %1003, %1005 : vector<2x32xf32>
    %1007 = math.tanh %1006 : vector<2x32xf32>
    %cst_268 = arith.constant 1.000000e+00 : f32
    %1008 = vector.broadcast %cst_268 : f32 to vector<2x32xf32>
    %1009 = arith.subf %1008, %1002 : vector<2x32xf32>
    %1010 = arith.mulf %1009, %1007 : vector<2x32xf32>
    %1011 = arith.mulf %1002, %981 : vector<2x32xf32>
    %1012 = arith.addf %1010, %1011 : vector<2x32xf32>
    %c12_269 = arith.constant 12 : index
    %c0_270 = arith.constant 0 : index
    %1013 = vector.load %arg12[%c12_269, %c0_270] : memref<16x32xf32, #tpu.memory_space<vmem>>, vector<2x32xf32>
    tpu.vector_store %arg12[%c12_269, %c0_270], %1012 {strides = array<i32>} : memref<16x32xf32, #tpu.memory_space<vmem>>, vector<2x32xf32>,
    %1014 = vector.extract_strided_slice %791 {offsets = [14, 0], sizes = [2, 96], strides = [1, 1]} : vector<16x96xf32> to vector<2x96xf32>
    %cst_271 = arith.constant dense<0.000000e+00> : vector<2x96xf32>
    %1015 = tpu.matmul %1012, %793, %cst_271 {dimension_numbers = #tpu.dot_dimension_numbers<[1], [0], [0], [1], [0, 0, 1, 1], [], []>} : vector<2x32xf32>, vector<32x96xf32>, vector<2x96xf32> -> vector<2x96xf32>
    %1016 = vector.broadcast %795 : vector<1x96xf32> to vector<2x96xf32>
    %1017 = arith.addf %1015, %1016 : vector<2x96xf32>
    %1018 = vector.extract_strided_slice %1014 {offsets = [0, 0], sizes = [2, 32], strides = [1, 1]} : vector<2x96xf32> to vector<2x32xf32>
    %1019 = vector.extract_strided_slice %1017 {offsets = [0, 0], sizes = [2, 32], strides = [1, 1]} : vector<2x96xf32> to vector<2x32xf32>
    %1020 = arith.addf %1018, %1019 : vector<2x32xf32>
    %1021 = arith.negf %1020 : vector<2x32xf32>
    %1022 = math.exp %1021 : vector<2x32xf32>
    %cst_272 = arith.constant 1.000000e+00 : f32
    %1023 = vector.broadcast %cst_272 : f32 to vector<2x32xf32>
    %1024 = arith.addf %1023, %1022 : vector<2x32xf32>
    %1025 = arith.divf %1023, %1024 : vector<2x32xf32>
    %1026 = vector.extract_strided_slice %1014 {offsets = [0, 32], sizes = [2, 32], strides = [1, 1]} : vector<2x96xf32> to vector<2x32xf32>
    %1027 = vector.extract_strided_slice %1017 {offsets = [0, 32], sizes = [2, 32], strides = [1, 1]} : vector<2x96xf32> to vector<2x32xf32>
    %1028 = arith.addf %1026, %1027 : vector<2x32xf32>
    %1029 = arith.negf %1028 : vector<2x32xf32>
    %1030 = math.exp %1029 : vector<2x32xf32>
    %cst_273 = arith.constant 1.000000e+00 : f32
    %1031 = vector.broadcast %cst_273 : f32 to vector<2x32xf32>
    %1032 = arith.addf %1031, %1030 : vector<2x32xf32>
    %1033 = arith.divf %1031, %1032 : vector<2x32xf32>
    %1034 = vector.extract_strided_slice %1014 {offsets = [0, 64], sizes = [2, 32], strides = [1, 1]} : vector<2x96xf32> to vector<2x32xf32>
    %1035 = vector.extract_strided_slice %1017 {offsets = [0, 64], sizes = [2, 32], strides = [1, 1]} : vector<2x96xf32> to vector<2x32xf32>
    %1036 = arith.mulf %1025, %1035 : vector<2x32xf32>
    %1037 = arith.addf %1034, %1036 : vector<2x32xf32>
    %1038 = math.tanh %1037 : vector<2x32xf32>
    %cst_274 = arith.constant 1.000000e+00 : f32
    %1039 = vector.broadcast %cst_274 : f32 to vector<2x32xf32>
    %1040 = arith.subf %1039, %1033 : vector<2x32xf32>
    %1041 = arith.mulf %1040, %1038 : vector<2x32xf32>
    %1042 = arith.mulf %1033, %1012 : vector<2x32xf32>
    %1043 = arith.addf %1041, %1042 : vector<2x32xf32>
    %c14_275 = arith.constant 14 : index
    %c0_276 = arith.constant 0 : index
    %1044 = vector.load %arg12[%c14_275, %c0_276] : memref<16x32xf32, #tpu.memory_space<vmem>>, vector<2x32xf32>
    tpu.vector_store %arg12[%c14_275, %c0_276], %1043 {strides = array<i32>} : memref<16x32xf32, #tpu.memory_space<vmem>>, vector<2x32xf32>,
    %c0_277 = arith.constant 0 : index
    %c0_278 = arith.constant 0 : index
    %1045 = vector.load %arg12[%c0_277, %c0_278] : memref<16x32xf32, #tpu.memory_space<vmem>>, vector<16x32xf32>
    %c0_279 = arith.constant 0 : index
    %c0_280 = arith.constant 0 : index
    %1046 = vector.load %arg7[%c0_279, %c0_280] : memref<1x32xf32, #tpu.memory_space<vmem>>, vector<1x32xf32>
    %1047 = vector.broadcast %1046 : vector<1x32xf32> to vector<16x32xf32>
    %1048 = arith.mulf %1045, %1047 : vector<16x32xf32>
    %cst_281 = arith.constant dense<0.000000e+00> : vector<16xf32>
    %1049 = vector.multi_reduction <add>, %1048, %cst_281 [1] : vector<16x32xf32> to vector<16xf32>
    %1050 = vector.shape_cast %1049 : vector<16xf32> to vector<16x1xf32>
    %c0_282 = arith.constant 0 : index
    %c0_283 = arith.constant 0 : index
    %1051 = vector.load %arg8[%c0_282, %c0_283] : memref<1x1xf32, #tpu.memory_space<vmem>>, vector<1x1xf32>
    %1052 = vector.broadcast %1051 : vector<1x1xf32> to vector<16x1xf32>
    %1053 = arith.addf %1050, %1052 : vector<16x1xf32>
    %c0_284 = arith.constant 0 : index
    %c0_285 = arith.constant 0 : index
    %1054 = vector.load %arg9[%c0_284, %c0_285] : memref<16x1xf32, #tpu.memory_space<vmem>>, vector<16x1xf32>
    tpu.vector_store %arg9[%c0_284, %c0_285], %1053 {strides = array<i32>} : memref<16x1xf32, #tpu.memory_space<vmem>>, vector<16x1xf32>,
    return
  }
}

</mosaic_0001>

<bundles_post_ra>
// kernel: cwner_forward.1
= control target key start
LH: loop header
LB: loop body
LE: loop exit
PB: predicated region body
PF: predicated region fallthrough
CT: control target
= control target key end

     0   :  { %v2705_v4 = vmov 0.0   ;;  %s2706_s19 = smov 64   ;;  %s2707_s22 = smov 96   ;;  %vm110_vm4 = vcmask 254976   ;;  %vm43_vm5 = vcmask 261120   ;;  %s3356_s3 = inlined_call_operand.vmem [shape: f32[3,32,96], index: 3, kind: input, shape index: {}]   ;;  %s3357_s4 = inlined_call_operand.vmem [shape: f32[3,1,96], index: 4, kind: input, shape index: {}]   ;;  %s3358_s0 = inlined_call_operand.vmem [shape: f32[16,2,96], index: 0, kind: input, shape index: {}]   ;;  %s3359_s1 = inlined_call_operand.vmem [shape: f32[8,2,96], index: 1, kind: input, shape index: {}]   ;;  %s3360_s5 = inlined_call_operand.vmem [shape: f32[2,32,96], index: 5, kind: input, shape index: {}]   ;;  %s3361_s2 = inlined_call_operand.vmem [shape: f32[16,32], index: 2, kind: input, shape index: {}]   ;;  %s3362_s6 = inlined_call_operand.vmem [shape: f32[1,96], index: 6, kind: input, shape index: {}]   ;;  %s3363_s7 = inlined_call_operand.vmem [shape: f32[1,32], index: 7, kind: input, shape index: {}]   ;;  %s3364_s8 = inlined_call_operand.<no memory space> [shape: f32[1,1], index: 8, kind: input, shape index: {}]   ;;  %s3365_s9 = inlined_call_operand.vmem [shape: f32[16,1], index: 9, kind: output, shape index: {}]  }
   0x1   :  { %v2761_v0 = vld [vmem:[%s3356_s3 + $0x18] sm:$0xff]  ;;  %v2766_v1 = vld [vmem:[%s3356_s3 + $0x10] sm:$0xff]  ;;  %v2773_v2 = vld [vmem:[%s3356_s3 + $0x8] sm:$0xff] }
   0x2   :  { %59 = vmatpush.msra.mxu0 %v2761_v0  ;;  %128 = vmatpush.msra.mxu1 %v2761_v0  ;;  %v2782_v3 = vld [vmem:[%s3356_s3] sm:$0xff] }
   0x3   :  { %196 = vmatpush.msra.mxu2 %v2761_v0  ;;  %264 = vmatpush.msra.mxu3 %v2761_v0  ;;  %v2818_v5 = vld [vmem:[%s3357_s4] ss:$0 sm:$0xff]  ;;  %v2400_v36 = vld [vmem:[%s3358_s0 + $0x2] sm:$0x3] }
   0x4   :  { %60 = vmatpush.msra.mxu0 %v2766_v1  ;;  %129 = vmatpush.msra.mxu1 %v2766_v1  ;;  %v39_v8 = vld [vmem:[%s3358_s0] sm:$0x3] }
   0x5   :  { %197 = vmatpush.msra.mxu2 %v2766_v1  ;;  %265 = vmatpush.msra.mxu3 %v2766_v1 }
   0x6   :  { %61 = vmatpush.msra.mxu0 %v2773_v2  ;;  %130 = vmatpush.msra.mxu1 %v2773_v2 }
   0x7   :  { %198 = vmatpush.msra.mxu2 %v2773_v2  ;;  %266 = vmatpush.msra.mxu3 %v2773_v2 }
   0x8   :  { %62 = vmatpush.msra.mxu0 %v2782_v3  ;;  %131 = vmatpush.msra.mxu1 %v2782_v3 }
   0x9   :  { %63 = vmatmul.f32.vlgmr.msra.gmra.mxu0 %v2705_v4  ;;  %199 = vmatpush.msra.mxu2 %v2782_v3 }
   0xa   :  { %267 = vmatpush.msra.mxu3 %v2782_v3  ;;  %332 = vmatpush.msrb.mxu0 %v2761_v0 }
   0xb   :  { %400 = vmatpush.msrb.mxu1 %v2761_v0  ;;  %468 = vmatpush.msrb.mxu2 %v2761_v0 }
   0xc   :  { %333 = vmatpush.msrb.mxu0 %v2766_v1  ;;  %536 = vmatpush.msrb.mxu3 %v2761_v0 }
   0xd   :  { %401 = vmatpush.msrb.mxu1 %v2766_v1  ;;  %469 = vmatpush.msrb.mxu2 %v2766_v1 }
   0xe   :  { %334 = vmatpush.msrb.mxu0 %v2773_v2  ;;  %537 = vmatpush.msrb.mxu3 %v2766_v1 }
   0xf   :  { %402 = vmatpush.msrb.mxu1 %v2773_v2  ;;  %470 = vmatpush.msrb.mxu2 %v2773_v2 }
  0x10   :  { %335 = vmatpush.msrb.mxu0 %v2782_v3  ;;  %538 = vmatpush.msrb.mxu3 %v2773_v2 }
  0x11   :  { %403 = vmatpush.msrb.mxu1 %v2782_v3  ;;  %471 = vmatpush.msrb.mxu2 %v2782_v3 }
  0x12   :  { %539 = vmatpush.msrb.mxu3 %v2782_v3  ;;  %604 = vmatpush.msra.mxu0 %v2761_v0 }
  0x14   :  { %605 = vmatpush.msra.mxu0 %v2766_v1 }
  0x16   :  { %606 = vmatpush.msra.mxu0 %v2773_v2 }
  0x18   :  { %607 = vmatpush.msra.mxu0 %v2782_v3 }
  0x86   :  { %v64_v6 = vpop.f32.mrf.mxu0 }
  0x87   :  { %v65_v7 = vadd.f32 %v2818_v5, %v64_v6  ;;  %v2403_v6 = vld [vmem:[%s3358_s0 + $0x4] sm:$0x3] }
  0x89   :  { %88 = vrot.lane.b32.xlu0 %v65_v7, %s2706_s19  ;;  %v67_v9 = vadd.f32 %v65_v7, %v39_v8 }
  0x8b   :  { %v2399_v10 = vmul.f32 -1.442695, %v67_v9 }
  0x8d   :  { %2511 = vpow2.f32 %v2399_v10 }
  0x93   :  { %v2512_v11 = vpop.eup %2511 }
  0x94   :  { %v71_v12 = vadd.f32 1.0, %v2512_v11 }
  0x96   :  { %2513 = vrcp.f32 %v71_v12  ;;  %v83_v18 = vand.u32 2147483648, %v71_v12  ;;  %vm77_vm1 = vweird.f32 %v71_v12  ;;  %v81_v19 = vand.u32 2147483647, %v71_v12 }
  0x98   :  { %v84_v21 = vor.u32 1.1754944e-38, %v83_v18  ;;  %vm82_vm3 = vcmp.eq.f32.partialorder %v81_v19, 8.507059e+37 }
  0x9c   :  { %v2514_v13 = vpop.eup %2513 }
  0x9d   :  { %v73_v14 = vmul.f32 %v2514_v13, %v71_v12  ;;  %vm78_vm0 = vweird.f32 %v2514_v13 }
  0x9e   :  { %vm79_vm2 = vmor %vm77_vm1, %vm78_vm0 }
  0x9f   :  { %v74_v15 = vsub.f32 1.0, %v73_v14 }
  0xa1   :  { %v75_v16 = vmul.f32 %v2514_v13, %v74_v15 }
  0xa3   :  { %v76_v17 = vadd.f32 %v2514_v13, %v75_v16 }
  0xa5   :  { %v80_v20 = vsel %vm79_vm2, %v2514_v13, %v76_v17 }
  0xa6   :  { %v85_v23 = vsel %vm82_vm3, %v84_v21, %v80_v20 }
  0xa7   :  { %v98_v28 = vsub.f32 1.0, %v85_v23  ;;  %v104_v30 = vmul.f32 0.0, %v85_v23 }
  0xfb   :  { %v89_v22 = vpop.permute.xlu0 %88 }
  0xfc   :  { %v91_v24 = vmul.f32 %v89_v22, %v85_v23 }
  0xfe   :  { %93 = vrot.lane.b32.xlu0 %v91_v24, %s2706_s19 }
 0x170   :  { %v94_v25 = vpop.permute.xlu0 %93 }
 0x171   :  { %v96_v26 = vadd.f32 %v94_v25, %v39_v8 }
 0x173   :  { %2515 = vtanh.f32 %v96_v26 }
 0x179   :  { %v2516_v27 = vpop.eup %2515 }
 0x17a   :  { %100 = vrot.lane.b32.xlu1 %v2516_v27, %s2707_s22 }
 0x1ec   :  { %v101_v29 = vpop.permute.xlu1 %100 }
 0x1ed   :  { %v103_v31 = vmul.f32 %v101_v29, %v98_v28 }
 0x1ef   :  { %v105_v32 = vadd.f32 %v104_v30, %v103_v31 }
 0x1f1   :  { %107 = vrot.lane.b32.xlu1 %v105_v32, %s2707_s22 }
 0x263   :  { %v108_v33 = vpop.permute.xlu1 %107 }
 0x264   :  { %111 = vst.msk [vmem:[#allocation2] sm:$0x3] %vm110_vm4, %v108_v33  ;;  %2401 = vmatmul.msk.f32.vlgmr.msra.gmra.mxu1 %vm43_vm5, %v108_v33 }
 0x265   :  { %672 = vmatpush.msra.mxu1 %v2761_v0 }
 0x267   :  { %673 = vmatpush.msra.mxu1 %v2766_v1 }
 0x269   :  { %674 = vmatpush.msra.mxu1 %v2773_v2 }
 0x26b   :  { %675 = vmatpush.msra.mxu1 %v2782_v3 }
 0x2e1   :  { %v133_v34 = vpop.f32.mrf.mxu1 }
 0x2e2   :  { %v134_v35 = vadd.f32 %v2818_v5, %v133_v34  ;;  %v2406_v34 = vld [vmem:[%s3358_s0 + $0x6] sm:$0x3] }
 0x2e4   :  { %157 = vrot.lane.b32.xlu2 %v134_v35, %s2706_s19  ;;  %v136_v37 = vadd.f32 %v2400_v36, %v134_v35 }
 0x2e6   :  { %v2402_v38 = vmul.f32 -1.442695, %v136_v37 }
 0x2e8   :  { %2517 = vpow2.f32 %v2402_v38 }
 0x2ee   :  { %v2518_v39 = vpop.eup %2517 }
 0x2ef   :  { %v140_v40 = vadd.f32 1.0, %v2518_v39 }
 0x2f1   :  { %2519 = vrcp.f32 %v140_v40  ;;  %v152_v46 = vand.u32 2147483648, %v140_v40  ;;  %vm146_vm7 = vweird.f32 %v140_v40  ;;  %v150_v47 = vand.u32 2147483647, %v140_v40 }
 0x2f3   :  { %v153_v49 = vor.u32 1.1754944e-38, %v152_v46  ;;  %vm151_vm9 = vcmp.eq.f32.partialorder %v150_v47, 8.507059e+37 }
 0x2f7   :  { %v2520_v41 = vpop.eup %2519 }
 0x2f8   :  { %v142_v42 = vmul.f32 %v2520_v41, %v140_v40  ;;  %vm147_vm6 = vweird.f32 %v2520_v41 }
 0x2f9   :  { %vm148_vm8 = vmor %vm146_vm7, %vm147_vm6 }
 0x2fa   :  { %v143_v43 = vsub.f32 1.0, %v142_v42 }
 0x2fc   :  { %v144_v44 = vmul.f32 %v2520_v41, %v143_v43 }
 0x2fe   :  { %v145_v45 = vadd.f32 %v2520_v41, %v144_v44 }
 0x300   :  { %v149_v48 = vsel %vm148_vm8, %v2520_v41, %v145_v45 }
 0x301   :  { %v154_v51 = vsel %vm151_vm9, %v153_v49, %v149_v48 }
 0x302   :  { %v167_v56 = vsub.f32 1.0, %v154_v51  ;;  %v173_v58 = vmul.f32 %v154_v51, %v105_v32 }
 0x33e   :  { %v158_v50 = vpop.permute.xlu2 %157 }
 0x33f   :  { %v160_v52 = vmul.f32 %v158_v50, %v154_v51 }
 0x341   :  { %162 = vrot.lane.b32.xlu2 %v160_v52, %s2706_s19 }
 0x39b   :  { %v163_v53 = vpop.permute.xlu2 %162 }
 0x39c   :  { %v165_v54 = vadd.f32 %v2400_v36, %v163_v53 }
 0x39e   :  { %2521 = vtanh.f32 %v165_v54 }
 0x3a4   :  { %v2522_v55 = vpop.eup %2521 }
 0x3a5   :  { %169 = vrot.lane.b32.xlu0 %v2522_v55, %s2707_s22 }
 0x417   :  { %v170_v57 = vpop.permute.xlu0 %169 }
 0x418   :  { %v172_v59 = vmul.f32 %v170_v57, %v167_v56 }
 0x41a   :  { %v174_v60 = vadd.f32 %v173_v58, %v172_v59 }
 0x41c   :  { %176 = vrot.lane.b32.xlu1 %v174_v60, %s2707_s22 }
 0x48e   :  { %v177_v61 = vpop.permute.xlu1 %176 }
 0x48f   :  { %179 = vst.msk [vmem:[#allocation2 + $0x2] sm:$0x3] %vm110_vm4, %v177_v61  ;;  %2404 = vmatmul.msk.f32.vlgmr.msra.gmra.mxu2 %vm43_vm5, %v177_v61 }
 0x490   :  { %740 = vmatpush.msra.mxu2 %v2761_v0 }
 0x492   :  { %741 = vmatpush.msra.mxu2 %v2766_v1 }
 0x494   :  { %742 = vmatpush.msra.mxu2 %v2773_v2 }
 0x496   :  { %743 = vmatpush.msra.mxu2 %v2782_v3 }
 0x512   :  { %v201_v62 = vpop.f32.mrf.mxu2 }
 0x513   :  { %v202_v63 = vadd.f32 %v2818_v5, %v201_v62  ;;  %v2409_v62 = vld [vmem:[%s3358_s0 + $0x8] sm:$0x3] }
 0x515   :  { %225 = vrot.lane.b32.xlu2 %v202_v63, %s2706_s19  ;;  %v204_v7 = vadd.f32 %v2403_v6, %v202_v63 }
 0x517   :  { %v2405_v8 = vmul.f32 -1.442695, %v204_v7 }
 0x519   :  { %2523 = vpow2.f32 %v2405_v8 }
 0x51f   :  { %v2524_v9 = vpop.eup %2523 }
 0x520   :  { %v208_v10 = vadd.f32 1.0, %v2524_v9 }
 0x522   :  { %2525 = vrcp.f32 %v208_v10  ;;  %v220_v16 = vand.u32 2147483648, %v208_v10  ;;  %vm214_vm11 = vweird.f32 %v208_v10  ;;  %v218_v17 = vand.u32 2147483647, %v208_v10 }
 0x524   :  { %v221_v19 = vor.u32 1.1754944e-38, %v220_v16  ;;  %vm219_vm13 = vcmp.eq.f32.partialorder %v218_v17, 8.507059e+37 }
 0x528   :  { %v2526_v11 = vpop.eup %2525 }
 0x529   :  { %v210_v12 = vmul.f32 %v2526_v11, %v208_v10  ;;  %vm215_vm10 = vweird.f32 %v2526_v11 }
 0x52a   :  { %vm216_vm12 = vmor %vm214_vm11, %vm215_vm10 }
 0x52b   :  { %v211_v13 = vsub.f32 1.0, %v210_v12 }
 0x52d   :  { %v212_v14 = vmul.f32 %v2526_v11, %v211_v13 }
 0x52f   :  { %v213_v15 = vadd.f32 %v2526_v11, %v212_v14 }
 0x531   :  { %v217_v18 = vsel %vm216_vm12, %v2526_v11, %v213_v15 }
 0x532   :  { %v222_v21 = vsel %vm219_vm13, %v221_v19, %v217_v18 }
 0x533   :  { %v235_v26 = vsub.f32 1.0, %v222_v21  ;;  %v241_v28 = vmul.f32 %v222_v21, %v174_v60 }
 0x56f   :  { %v226_v20 = vpop.permute.xlu2 %225 }
 0x570   :  { %v228_v22 = vmul.f32 %v226_v20, %v222_v21 }
 0x572   :  { %230 = vrot.lane.b32.xlu0 %v228_v22, %s2706_s19 }
 0x5e4   :  { %v231_v23 = vpop.permute.xlu0 %230 }
 0x5e5   :  { %v233_v24 = vadd.f32 %v2403_v6, %v231_v23 }
 0x5e7   :  { %2527 = vtanh.f32 %v233_v24 }
 0x5ed   :  { %v2528_v25 = vpop.eup %2527 }
 0x5ee   :  { %237 = vrot.lane.b32.xlu1 %v2528_v25, %s2707_s22 }
 0x660   :  { %v238_v27 = vpop.permute.xlu1 %237 }
 0x661   :  { %v240_v29 = vmul.f32 %v238_v27, %v235_v26 }
 0x663   :  { %v242_v30 = vadd.f32 %v241_v28, %v240_v29 }
 0x665   :  { %244 = vrot.lane.b32.xlu2 %v242_v30, %s2707_s22 }
 0x6bf   :  { %v245_v31 = vpop.permute.xlu2 %244 }
 0x6c0   :  { %247 = vst.msk [vmem:[#allocation2 + $0x4] sm:$0x3] %vm110_vm4, %v245_v31  ;;  %2407 = vmatmul.msk.f32.vlgmr.msra.gmra.mxu3 %vm43_vm5, %v245_v31 }
 0x6c1   :  { %808 = vmatpush.msra.mxu3 %v2761_v0 }
 0x6c3   :  { %809 = vmatpush.msra.mxu3 %v2766_v1 }
 0x6c5   :  { %810 = vmatpush.msra.mxu3 %v2773_v2 }
 0x6c7   :  { %811 = vmatpush.msra.mxu3 %v2782_v3 }
 0x743   :  { %v269_v32 = vpop.f32.mrf.mxu3 }
 0x744   :  { %v270_v33 = vadd.f32 %v2818_v5, %v269_v32  ;;  %v2412_v32 = vld [vmem:[%s3358_s0 + $0xa] sm:$0x3] }
 0x746   :  { %293 = vrot.lane.b32.xlu0 %v270_v33, %s2706_s19  ;;  %v272_v35 = vadd.f32 %v2406_v34, %v270_v33 }
 0x748   :  { %v2408_v36 = vmul.f32 -1.442695, %v272_v35 }
 0x74a   :  { %2529 = vpow2.f32 %v2408_v36 }
 0x750   :  { %v2530_v37 = vpop.eup %2529 }
 0x751   :  { %v276_v38 = vadd.f32 1.0, %v2530_v37 }
 0x753   :  { %2531 = vrcp.f32 %v276_v38  ;;  %v288_v44 = vand.u32 2147483648, %v276_v38  ;;  %vm282_vm15 = vweird.f32 %v276_v38  ;;  %v286_v45 = vand.u32 2147483647, %v276_v38 }
 0x755   :  { %v289_v47 = vor.u32 1.1754944e-38, %v288_v44  ;;  %vm287_vm1 = vcmp.eq.f32.partialorder %v286_v45, 8.507059e+37 }
 0x759   :  { %v2532_v39 = vpop.eup %2531 }
 0x75a   :  { %v278_v40 = vmul.f32 %v2532_v39, %v276_v38  ;;  %vm283_vm14 = vweird.f32 %v2532_v39 }
 0x75b   :  { %vm284_vm0 = vmor %vm282_vm15, %vm283_vm14 }
 0x75c   :  { %v279_v41 = vsub.f32 1.0, %v278_v40 }
 0x75e   :  { %v280_v42 = vmul.f32 %v2532_v39, %v279_v41 }
 0x760   :  { %v281_v43 = vadd.f32 %v2532_v39, %v280_v42 }
 0x762   :  { %v285_v46 = vsel %vm284_vm0, %v2532_v39, %v281_v43 }
 0x763   :  { %v290_v49 = vsel %vm287_vm1, %v289_v47, %v285_v46 }
 0x764   :  { %v303_v54 = vsub.f32 1.0, %v290_v49  ;;  %v309_v56 = vmul.f32 %v290_v49, %v242_v30 }
 0x7b8   :  { %v294_v48 = vpop.permute.xlu0 %293 }
 0x7b9   :  { %v296_v50 = vmul.f32 %v294_v48, %v290_v49 }
 0x7bb   :  { %298 = vrot.lane.b32.xlu1 %v296_v50, %s2706_s19 }
 0x82d   :  { %v299_v51 = vpop.permute.xlu1 %298 }
 0x82e   :  { %v301_v52 = vadd.f32 %v2406_v34, %v299_v51 }
 0x830   :  { %2533 = vtanh.f32 %v301_v52 }
 0x836   :  { %v2534_v53 = vpop.eup %2533 }
 0x837   :  { %305 = vrot.lane.b32.xlu2 %v2534_v53, %s2707_s22 }
 0x891   :  { %v306_v55 = vpop.permute.xlu2 %305 }
 0x892   :  { %v308_v57 = vmul.f32 %v306_v55, %v303_v54 }
 0x894   :  { %v310_v58 = vadd.f32 %v309_v56, %v308_v57 }
 0x896   :  { %312 = vrot.lane.b32.xlu0 %v310_v58, %s2707_s22 }
 0x908   :  { %v313_v59 = vpop.permute.xlu0 %312 }
 0x909   :  { %315 = vst.msk [vmem:[#allocation2 + $0x6] sm:$0x3] %vm110_vm4, %v313_v59  ;;  %2410 = vmatmul.msk.f32.vlgmr.msrb.gmra.mxu0 %vm43_vm5, %v313_v59 }
 0x90a   :  { %876 = vmatpush.msrb.mxu0 %v2761_v0 }
 0x90c   :  { %877 = vmatpush.msrb.mxu0 %v2766_v1 }
 0x90e   :  { %878 = vmatpush.msrb.mxu0 %v2773_v2 }
 0x910   :  { %879 = vmatpush.msrb.mxu0 %v2782_v3 }
 0x986   :  { %v337_v60 = vpop.f32.mrf.mxu0 }
 0x987   :  { %v338_v61 = vadd.f32 %v2818_v5, %v337_v60  ;;  %v2415_v60 = vld [vmem:[%s3358_s0 + $0xc] sm:$0x3] }
 0x989   :  { %361 = vrot.lane.b32.xlu1 %v338_v61, %s2706_s19  ;;  %v340_v63 = vadd.f32 %v2409_v62, %v338_v61 }
 0x98b   :  { %v2411_v6 = vmul.f32 -1.442695, %v340_v63 }
 0x98d   :  { %2535 = vpow2.f32 %v2411_v6 }
 0x993   :  { %v2536_v7 = vpop.eup %2535 }
 0x994   :  { %v344_v8 = vadd.f32 1.0, %v2536_v7 }
 0x996   :  { %2537 = vrcp.f32 %v344_v8  ;;  %v356_v14 = vand.u32 2147483648, %v344_v8  ;;  %vm350_vm3 = vweird.f32 %v344_v8  ;;  %v354_v15 = vand.u32 2147483647, %v344_v8 }
 0x998   :  { %v357_v17 = vor.u32 1.1754944e-38, %v356_v14  ;;  %vm355_vm7 = vcmp.eq.f32.partialorder %v354_v15, 8.507059e+37 }
 0x99c   :  { %v2538_v9 = vpop.eup %2537 }
 0x99d   :  { %v346_v10 = vmul.f32 %v2538_v9, %v344_v8  ;;  %vm351_vm2 = vweird.f32 %v2538_v9 }
 0x99e   :  { %vm352_vm6 = vmor %vm350_vm3, %vm351_vm2 }
 0x99f   :  { %v347_v11 = vsub.f32 1.0, %v346_v10 }
 0x9a1   :  { %v348_v12 = vmul.f32 %v2538_v9, %v347_v11 }
 0x9a3   :  { %v349_v13 = vadd.f32 %v2538_v9, %v348_v12 }
 0x9a5   :  { %v353_v16 = vsel %vm352_vm6, %v2538_v9, %v349_v13 }
 0x9a6   :  { %v358_v19 = vsel %vm355_vm7, %v357_v17, %v353_v16 }
 0x9a7   :  { %v371_v24 = vsub.f32 1.0, %v358_v19  ;;  %v377_v26 = vmul.f32 %v358_v19, %v310_v58 }
 0x9fb   :  { %v362_v18 = vpop.permute.xlu1 %361 }
 0x9fc   :  { %v364_v20 = vmul.f32 %v362_v18, %v358_v19 }
 0x9fe   :  { %366 = vrot.lane.b32.xlu2 %v364_v20, %s2706_s19 }
 0xa58   :  { %v367_v21 = vpop.permute.xlu2 %366 }
 0xa59   :  { %v369_v22 = vadd.f32 %v2409_v62, %v367_v21 }
 0xa5b   :  { %2539 = vtanh.f32 %v369_v22 }
 0xa61   :  { %v2540_v23 = vpop.eup %2539 }
 0xa62   :  { %373 = vrot.lane.b32.xlu0 %v2540_v23, %s2707_s22 }
 0xad4   :  { %v374_v25 = vpop.permute.xlu0 %373 }
 0xad5   :  { %v376_v27 = vmul.f32 %v374_v25, %v371_v24 }
 0xad7   :  { %v378_v28 = vadd.f32 %v377_v26, %v376_v27 }
 0xad9   :  { %380 = vrot.lane.b32.xlu1 %v378_v28, %s2707_s22 }
 0xb4b   :  { %v381_v29 = vpop.permute.xlu1 %380 }
 0xb4c   :  { %383 = vst.msk [vmem:[#allocation2 + $0x8] sm:$0x3] %vm110_vm4, %v381_v29  ;;  %2413 = vmatmul.msk.f32.vlgmr.msrb.gmra.mxu1 %vm43_vm5, %v381_v29 }
 0xb4d   :  { %944 = vmatpush.msrb.mxu1 %v2761_v0 }
 0xb4f   :  { %945 = vmatpush.msrb.mxu1 %v2766_v1 }
 0xb51   :  { %946 = vmatpush.msrb.mxu1 %v2773_v2 }
 0xb53   :  { %947 = vmatpush.msrb.mxu1 %v2782_v3 }
 0xbc9   :  { %v405_v30 = vpop.f32.mrf.mxu1 }
 0xbca   :  { %v406_v31 = vadd.f32 %v2818_v5, %v405_v30  ;;  %v2418_v30 = vld [vmem:[%s3358_s0 + $0xe] sm:$0x3] }
 0xbcc   :  { %429 = vrot.lane.b32.xlu2 %v406_v31, %s2706_s19  ;;  %v408_v33 = vadd.f32 %v2412_v32, %v406_v31 }
 0xbce   :  { %v2414_v34 = vmul.f32 -1.442695, %v408_v33 }
 0xbd0   :  { %2541 = vpow2.f32 %v2414_v34 }
 0xbd6   :  { %v2542_v35 = vpop.eup %2541 }
 0xbd7   :  { %v412_v36 = vadd.f32 1.0, %v2542_v35 }
 0xbd9   :  { %2543 = vrcp.f32 %v412_v36  ;;  %v424_v42 = vand.u32 2147483648, %v412_v36  ;;  %vm418_vm9 = vweird.f32 %v412_v36  ;;  %v422_v43 = vand.u32 2147483647, %v412_v36 }
 0xbdb   :  { %v425_v45 = vor.u32 1.1754944e-38, %v424_v42  ;;  %vm423_vm11 = vcmp.eq.f32.partialorder %v422_v43, 8.507059e+37 }
 0xbdf   :  { %v2544_v37 = vpop.eup %2543 }
 0xbe0   :  { %v414_v38 = vmul.f32 %v2544_v37, %v412_v36  ;;  %vm419_vm8 = vweird.f32 %v2544_v37 }
 0xbe1   :  { %vm420_vm10 = vmor %vm418_vm9, %vm419_vm8 }
 0xbe2   :  { %v415_v39 = vsub.f32 1.0, %v414_v38 }
 0xbe4   :  { %v416_v40 = vmul.f32 %v2544_v37, %v415_v39 }
 0xbe6   :  { %v417_v41 = vadd.f32 %v2544_v37, %v416_v40 }
 0xbe8   :  { %v421_v44 = vsel %vm420_vm10, %v2544_v37, %v417_v41 }
 0xbe9   :  { %v426_v47 = vsel %vm423_vm11, %v425_v45, %v421_v44 }
 0xbea   :  { %v439_v52 = vsub.f32 1.0, %v426_v47  ;;  %v445_v54 = vmul.f32 %v426_v47, %v378_v28 }
 0xc26   :  { %v430_v46 = vpop.permute.xlu2 %429 }
 0xc27   :  { %v432_v48 = vmul.f32 %v430_v46, %v426_v47 }
 0xc29   :  { %434 = vrot.lane.b32.xlu0 %v432_v48, %s2706_s19 }
 0xc9b   :  { %v435_v49 = vpop.permute.xlu0 %434 }
 0xc9c   :  { %v437_v50 = vadd.f32 %v2412_v32, %v435_v49 }
 0xc9e   :  { %2545 = vtanh.f32 %v437_v50 }
 0xca4   :  { %v2546_v51 = vpop.eup %2545 }
 0xca5   :  { %441 = vrot.lane.b32.xlu1 %v2546_v51, %s2707_s22 }
 0xd17   :  { %v442_v53 = vpop.permute.xlu1 %441 }
 0xd18   :  { %v444_v55 = vmul.f32 %v442_v53, %v439_v52 }
 0xd1a   :  { %v446_v56 = vadd.f32 %v445_v54, %v444_v55  ;;  %v2421_v54 = vld [vmem:[%s3358_s0 + $0x10] sm:$0x3] }
 0xd1c   :  { %448 = vrot.lane.b32.xlu2 %v446_v56, %s2707_s22 }
 0xd76   :  { %v449_v57 = vpop.permute.xlu2 %448 }
 0xd77   :  { %451 = vst.msk [vmem:[#allocation2 + $0xa] sm:$0x3] %vm110_vm4, %v449_v57  ;;  %2416 = vmatmul.msk.f32.vlgmr.msrb.gmra.mxu2 %vm43_vm5, %v449_v57 }
 0xd78   :  { %1012 = vmatpush.msrb.mxu2 %v2761_v0 }
 0xd7a   :  { %1013 = vmatpush.msrb.mxu2 %v2766_v1 }
 0xd7c   :  { %1014 = vmatpush.msrb.mxu2 %v2773_v2 }
 0xd7e   :  { %1015 = vmatpush.msrb.mxu2 %v2782_v3 }
 0xdfa   :  { %v473_v58 = vpop.f32.mrf.mxu2 }
 0xdfb   :  { %v474_v59 = vadd.f32 %v2818_v5, %v473_v58 }
 0xdfd   :  { %497 = vrot.lane.b32.xlu0 %v474_v59, %s2706_s19  ;;  %v476_v61 = vadd.f32 %v2415_v60, %v474_v59 }
 0xdff   :  { %v2417_v62 = vmul.f32 -1.442695, %v476_v61 }
 0xe01   :  { %2547 = vpow2.f32 %v2417_v62 }
 0xe07   :  { %v2548_v63 = vpop.eup %2547 }
 0xe08   :  { %v480_v6 = vadd.f32 1.0, %v2548_v63 }
 0xe0a   :  { %2549 = vrcp.f32 %v480_v6  ;;  %v492_v12 = vand.u32 2147483648, %v480_v6  ;;  %vm486_vm13 = vweird.f32 %v480_v6  ;;  %v490_v13 = vand.u32 2147483647, %v480_v6 }
 0xe0c   :  { %v493_v15 = vor.u32 1.1754944e-38, %v492_v12  ;;  %vm491_vm15 = vcmp.eq.f32.partialorder %v490_v13, 8.507059e+37 }
 0xe10   :  { %v2550_v7 = vpop.eup %2549 }
 0xe11   :  { %v482_v8 = vmul.f32 %v2550_v7, %v480_v6  ;;  %vm487_vm12 = vweird.f32 %v2550_v7 }
 0xe12   :  { %vm488_vm14 = vmor %vm486_vm13, %vm487_vm12 }
 0xe13   :  { %v483_v9 = vsub.f32 1.0, %v482_v8 }
 0xe15   :  { %v484_v10 = vmul.f32 %v2550_v7, %v483_v9 }
 0xe17   :  { %v485_v11 = vadd.f32 %v2550_v7, %v484_v10 }
 0xe19   :  { %v489_v14 = vsel %vm488_vm14, %v2550_v7, %v485_v11 }
 0xe1a   :  { %v494_v17 = vsel %vm491_vm15, %v493_v15, %v489_v14 }
 0xe1b   :  { %v507_v22 = vsub.f32 1.0, %v494_v17  ;;  %v513_v24 = vmul.f32 %v494_v17, %v446_v56 }
 0xe6f   :  { %v498_v16 = vpop.permute.xlu0 %497 }
 0xe70   :  { %v500_v18 = vmul.f32 %v498_v16, %v494_v17 }
 0xe72   :  { %502 = vrot.lane.b32.xlu1 %v500_v18, %s2706_s19 }
 0xee4   :  { %v503_v19 = vpop.permute.xlu1 %502 }
 0xee5   :  { %v505_v20 = vadd.f32 %v2415_v60, %v503_v19 }
 0xee7   :  { %2551 = vtanh.f32 %v505_v20 }
 0xeed   :  { %v2552_v21 = vpop.eup %2551 }
 0xeee   :  { %509 = vrot.lane.b32.xlu2 %v2552_v21, %s2707_s22 }
 0xf48   :  { %v510_v23 = vpop.permute.xlu2 %509 }
 0xf49   :  { %v512_v25 = vmul.f32 %v510_v23, %v507_v22 }
 0xf4b   :  { %v514_v26 = vadd.f32 %v513_v24, %v512_v25  ;;  %v2424_v24 = vld [vmem:[%s3358_s0 + $0x12] sm:$0x3] }
 0xf4d   :  { %516 = vrot.lane.b32.xlu0 %v514_v26, %s2707_s22 }
 0xfbf   :  { %v517_v27 = vpop.permute.xlu0 %516 }
 0xfc0   :  { %519 = vst.msk [vmem:[#allocation2 + $0xc] sm:$0x3] %vm110_vm4, %v517_v27  ;;  %2419 = vmatmul.msk.f32.vlgmr.msrb.gmra.mxu3 %vm43_vm5, %v517_v27 }
 0xfc1   :  { %1080 = vmatpush.msrb.mxu3 %v2761_v0 }
 0xfc3   :  { %1081 = vmatpush.msrb.mxu3 %v2766_v1 }
 0xfc5   :  { %1082 = vmatpush.msrb.mxu3 %v2773_v2 }
 0xfc7   :  { %1083 = vmatpush.msrb.mxu3 %v2782_v3 }
0x1043   :  { %v541_v28 = vpop.f32.mrf.mxu3 }
0x1044   :  { %v542_v29 = vadd.f32 %v2818_v5, %v541_v28 }
0x1046   :  { %565 = vrot.lane.b32.xlu1 %v542_v29, %s2706_s19  ;;  %v544_v31 = vadd.f32 %v2418_v30, %v542_v29 }
0x1048   :  { %v2420_v32 = vmul.f32 -1.442695, %v544_v31 }
0x104a   :  { %2553 = vpow2.f32 %v2420_v32 }
0x1050   :  { %v2554_v33 = vpop.eup %2553 }
0x1051   :  { %v548_v0 = vadd.f32 1.0, %v2554_v33 }
0x1053   :  { %2555 = vrcp.f32 %v548_v0  ;;  %v560_v36 = vand.u32 2147483648, %v548_v0  ;;  %vm554_vm1 = vweird.f32 %v548_v0  ;;  %v558_v37 = vand.u32 2147483647, %v548_v0 }
0x1055   :  { %v561_v39 = vor.u32 1.1754944e-38, %v560_v36  ;;  %vm559_vm3 = vcmp.eq.f32.partialorder %v558_v37, 8.507059e+37 }
0x1059   :  { %v2556_v1 = vpop.eup %2555 }
0x105a   :  { %v550_v34 = vmul.f32 %v2556_v1, %v548_v0  ;;  %vm555_vm0 = vweird.f32 %v2556_v1 }
0x105b   :  { %vm556_vm2 = vmor %vm554_vm1, %vm555_vm0 }
0x105c   :  { %v551_v2 = vsub.f32 1.0, %v550_v34 }
0x105e   :  { %v552_v35 = vmul.f32 %v2556_v1, %v551_v2 }
0x1060   :  { %v553_v3 = vadd.f32 %v2556_v1, %v552_v35 }
0x1062   :  { %v557_v38 = vsel %vm556_vm2, %v2556_v1, %v553_v3 }
0x1063   :  { %v562_v41 = vsel %vm559_vm3, %v561_v39, %v557_v38 }
0x1064   :  { %v575_v46 = vsub.f32 1.0, %v562_v41  ;;  %v581_v48 = vmul.f32 %v562_v41, %v514_v26 }
0x10b8   :  { %v566_v40 = vpop.permute.xlu1 %565 }
0x10b9   :  { %v568_v42 = vmul.f32 %v566_v40, %v562_v41 }
0x10bb   :  { %570 = vrot.lane.b32.xlu2 %v568_v42, %s2706_s19 }
0x1115   :  { %v571_v43 = vpop.permute.xlu2 %570 }
0x1116   :  { %v573_v44 = vadd.f32 %v2418_v30, %v571_v43 }
0x1118   :  { %2557 = vtanh.f32 %v573_v44 }
0x111e   :  { %v2558_v45 = vpop.eup %2557 }
0x111f   :  { %577 = vrot.lane.b32.xlu0 %v2558_v45, %s2707_s22 }
0x1191   :  { %v578_v47 = vpop.permute.xlu0 %577 }
0x1192   :  { %v580_v49 = vmul.f32 %v578_v47, %v575_v46 }
0x1194   :  { %v582_v50 = vadd.f32 %v581_v48, %v580_v49  ;;  %v2427_v48 = vld [vmem:[%s3358_s0 + $0x14] sm:$0x3] }
0x1196   :  { %584 = vrot.lane.b32.xlu1 %v582_v50, %s2707_s22 }
0x1208   :  { %v585_v51 = vpop.permute.xlu1 %584 }
0x1209   :  { %587 = vst.msk [vmem:[#allocation2 + $0xe] sm:$0x3] %vm110_vm4, %v585_v51  ;;  %2422 = vmatmul.msk.f32.vlgmr.msra.gmra.mxu0 %vm43_vm5, %v585_v51 }
0x1286   :  { %v609_v52 = vpop.f32.mrf.mxu0 }
0x1287   :  { %v610_v53 = vadd.f32 %v2818_v5, %v609_v52 }
0x1289   :  { %633 = vrot.lane.b32.xlu2 %v610_v53, %s2706_s19  ;;  %v612_v55 = vadd.f32 %v2421_v54, %v610_v53 }
0x128b   :  { %v2423_v56 = vmul.f32 -1.442695, %v612_v55 }
0x128d   :  { %2559 = vpow2.f32 %v2423_v56 }
0x1293   :  { %v2560_v57 = vpop.eup %2559 }
0x1294   :  { %v616_v58 = vadd.f32 1.0, %v2560_v57 }
0x1296   :  { %2561 = vrcp.f32 %v616_v58  ;;  %v628_v6 = vand.u32 2147483648, %v616_v58  ;;  %vm622_vm7 = vweird.f32 %v616_v58  ;;  %v626_v7 = vand.u32 2147483647, %v616_v58 }
0x1298   :  { %v629_v9 = vor.u32 1.1754944e-38, %v628_v6  ;;  %vm627_vm9 = vcmp.eq.f32.partialorder %v626_v7, 8.507059e+37 }
0x129c   :  { %v2562_v59 = vpop.eup %2561 }
0x129d   :  { %v618_v60 = vmul.f32 %v2562_v59, %v616_v58  ;;  %vm623_vm6 = vweird.f32 %v2562_v59 }
0x129e   :  { %vm624_vm8 = vmor %vm622_vm7, %vm623_vm6 }
0x129f   :  { %v619_v61 = vsub.f32 1.0, %v618_v60 }
0x12a1   :  { %v620_v62 = vmul.f32 %v2562_v59, %v619_v61 }
0x12a3   :  { %v621_v63 = vadd.f32 %v2562_v59, %v620_v62 }
0x12a5   :  { %v625_v8 = vsel %vm624_vm8, %v2562_v59, %v621_v63 }
0x12a6   :  { %v630_v11 = vsel %vm627_vm9, %v629_v9, %v625_v8 }
0x12a7   :  { %v643_v16 = vsub.f32 1.0, %v630_v11  ;;  %v649_v18 = vmul.f32 %v630_v11, %v582_v50 }
0x12e3   :  { %v634_v10 = vpop.permute.xlu2 %633 }
0x12e4   :  { %v636_v12 = vmul.f32 %v634_v10, %v630_v11 }
0x12e6   :  { %638 = vrot.lane.b32.xlu0 %v636_v12, %s2706_s19 }
0x1358   :  { %v639_v13 = vpop.permute.xlu0 %638 }
0x1359   :  { %v641_v14 = vadd.f32 %v2421_v54, %v639_v13 }
0x135b   :  { %2563 = vtanh.f32 %v641_v14 }
0x1361   :  { %v2564_v15 = vpop.eup %2563 }
0x1362   :  { %645 = vrot.lane.b32.xlu1 %v2564_v15, %s2707_s22 }
0x13d4   :  { %v646_v17 = vpop.permute.xlu1 %645 }
0x13d5   :  { %v648_v19 = vmul.f32 %v646_v17, %v643_v16 }
0x13d7   :  { %v650_v20 = vadd.f32 %v649_v18, %v648_v19  ;;  %v2430_v18 = vld [vmem:[%s3358_s0 + $0x16] sm:$0x3] }
0x13d9   :  { %652 = vrot.lane.b32.xlu2 %v650_v20, %s2707_s22 }
0x1433   :  { %v653_v21 = vpop.permute.xlu2 %652 }
0x1434   :  { %655 = vst.msk [vmem:[#allocation2 + $0x10] sm:$0x3] %vm110_vm4, %v653_v21  ;;  %2425 = vmatmul.msk.f32.vlgmr.msra.gmra.mxu1 %vm43_vm5, %v653_v21 }
0x14b1   :  { %v677_v22 = vpop.f32.mrf.mxu1 }
0x14b2   :  { %v678_v23 = vadd.f32 %v2818_v5, %v677_v22 }
0x14b4   :  { %701 = vrot.lane.b32.xlu0 %v678_v23, %s2706_s19  ;;  %v680_v25 = vadd.f32 %v2424_v24, %v678_v23 }
0x14b6   :  { %v2426_v26 = vmul.f32 -1.442695, %v680_v25 }
0x14b8   :  { %2565 = vpow2.f32 %v2426_v26 }
0x14be   :  { %v2566_v27 = vpop.eup %2565 }
0x14bf   :  { %v684_v28 = vadd.f32 1.0, %v2566_v27 }
0x14c1   :  { %2567 = vrcp.f32 %v684_v28  ;;  %v696_v0 = vand.u32 2147483648, %v684_v28  ;;  %vm690_vm11 = vweird.f32 %v684_v28  ;;  %v694_v1 = vand.u32 2147483647, %v684_v28 }
0x14c3   :  { %v697_v2 = vor.u32 1.1754944e-38, %v696_v0  ;;  %vm695_vm13 = vcmp.eq.f32.partialorder %v694_v1, 8.507059e+37 }
0x14c7   :  { %v2568_v29 = vpop.eup %2567 }
0x14c8   :  { %v686_v30 = vmul.f32 %v2568_v29, %v684_v28  ;;  %vm691_vm10 = vweird.f32 %v2568_v29 }
0x14c9   :  { %vm692_vm12 = vmor %vm690_vm11, %vm691_vm10 }
0x14ca   :  { %v687_v31 = vsub.f32 1.0, %v686_v30 }
0x14cc   :  { %v688_v32 = vmul.f32 %v2568_v29, %v687_v31 }
0x14ce   :  { %v689_v33 = vadd.f32 %v2568_v29, %v688_v32 }
0x14d0   :  { %v693_v34 = vsel %vm692_vm12, %v2568_v29, %v689_v33 }
0x14d1   :  { %v698_v3 = vsel %vm695_vm13, %v697_v2, %v693_v34 }
0x14d2   :  { %v711_v40 = vsub.f32 1.0, %v698_v3  ;;  %v717_v42 = vmul.f32 %v698_v3, %v650_v20 }
0x1526   :  { %v702_v35 = vpop.permute.xlu0 %701 }
0x1527   :  { %v704_v36 = vmul.f32 %v702_v35, %v698_v3 }
0x1529   :  { %706 = vrot.lane.b32.xlu1 %v704_v36, %s2706_s19 }
0x159b   :  { %v707_v37 = vpop.permute.xlu1 %706 }
0x159c   :  { %v709_v38 = vadd.f32 %v2424_v24, %v707_v37 }
0x159e   :  { %2569 = vtanh.f32 %v709_v38  ;;  %v2972_v38 = vld [vmem:[%s3356_s3 + $0x38] sm:$0xff] }
0x159f   :  { %1155 = vmatpush.msra.mxu0 %v2972_v38  ;;  %1223 = vmatpush.msra.mxu1 %v2972_v38 }
0x15a4   :  { %v2570_v39 = vpop.eup %2569 }
0x15a5   :  { %713 = vrot.lane.b32.xlu2 %v2570_v39, %s2707_s22  ;;  %v2977_v39 = vld [vmem:[%s3356_s3 + $0x30] sm:$0xff] }
0x15a6   :  { %1156 = vmatpush.msra.mxu0 %v2977_v39  ;;  %1224 = vmatpush.msra.mxu1 %v2977_v39 }
0x15ff   :  { %v714_v41 = vpop.permute.xlu2 %713 }
0x1600   :  { %v716_v43 = vmul.f32 %v714_v41, %v711_v40  ;;  %v2984_v40 = vld [vmem:[%s3356_s3 + $0x28] sm:$0xff]  ;;  %v2993_v41 = vld [vmem:[%s3356_s3 + $0x20] sm:$0xff] }
0x1601   :  { %1157 = vmatpush.msra.mxu0 %v2984_v40  ;;  %1225 = vmatpush.msra.mxu1 %v2984_v40 }
0x1602   :  { %v718_v44 = vadd.f32 %v717_v42, %v716_v43 }
0x1603   :  { %1158 = vmatpush.msra.mxu0 %v2993_v41  ;;  %1226 = vmatpush.msra.mxu1 %v2993_v41 }
0x1604   :  { %720 = vrot.lane.b32.xlu0 %v718_v44, %s2707_s22 }
0x1676   :  { %v721_v45 = vpop.permute.xlu0 %720 }
0x1677   :  { %723 = vst.msk [vmem:[#allocation2 + $0x12] sm:$0x3] %vm110_vm4, %v721_v45  ;;  %2428 = vmatmul.msk.f32.vlgmr.msra.gmra.mxu2 %vm43_vm5, %v721_v45 }
0x1678   :  { %1291 = vmatpush.msra.mxu2 %v2972_v38 }
0x167a   :  { %1292 = vmatpush.msra.mxu2 %v2977_v39 }
0x167c   :  { %1293 = vmatpush.msra.mxu2 %v2984_v40 }
0x167e   :  { %1294 = vmatpush.msra.mxu2 %v2993_v41 }
0x16fa   :  { %v745_v46 = vpop.f32.mrf.mxu2 }
0x16fb   :  { %v746_v47 = vadd.f32 %v2818_v5, %v745_v46  ;;  %v3022_v46 = vld [vmem:[%s3357_s4 + $0x1] ss:$0 sm:$0xff] }
0x16fd   :  { %769 = vrot.lane.b32.xlu1 %v746_v47, %s2706_s19  ;;  %v748_v49 = vadd.f32 %v2427_v48, %v746_v47 }
0x16ff   :  { %v2429_v50 = vmul.f32 -1.442695, %v748_v49  ;;  %v2433_v49 = vld [vmem:[%s3358_s0 + $0x18] sm:$0x3] }
0x1701   :  { %2571 = vpow2.f32 %v2429_v50 }
0x1707   :  { %v2572_v51 = vpop.eup %2571 }
0x1708   :  { %v752_v52 = vadd.f32 1.0, %v2572_v51 }
0x170a   :  { %2573 = vrcp.f32 %v752_v52  ;;  %v764_v58 = vand.u32 2147483648, %v752_v52  ;;  %vm758_vm15 = vweird.f32 %v752_v52  ;;  %v762_v59 = vand.u32 2147483647, %v752_v52 }
0x170c   :  { %v765_v61 = vor.u32 1.1754944e-38, %v764_v58  ;;  %vm763_vm1 = vcmp.eq.f32.partialorder %v762_v59, 8.507059e+37 }
0x1710   :  { %v2574_v53 = vpop.eup %2573 }
0x1711   :  { %v754_v54 = vmul.f32 %v2574_v53, %v752_v52  ;;  %vm759_vm14 = vweird.f32 %v2574_v53  ;;  %v1139_v52 = vld [vmem:[%s3359_s1] sm:$0x3] }
0x1712   :  { %vm760_vm0 = vmor %vm758_vm15, %vm759_vm14 }
0x1713   :  { %v755_v55 = vsub.f32 1.0, %v754_v54 }
0x1715   :  { %v756_v56 = vmul.f32 %v2574_v53, %v755_v55 }
0x1717   :  { %v757_v57 = vadd.f32 %v2574_v53, %v756_v56 }
0x1719   :  { %v761_v60 = vsel %vm760_vm0, %v2574_v53, %v757_v57 }
0x171a   :  { %v766_v63 = vsel %vm763_vm1, %v765_v61, %v761_v60 }
0x171b   :  { %v779_v10 = vsub.f32 1.0, %v766_v63  ;;  %v785_v12 = vmul.f32 %v766_v63, %v718_v44  ;;  %v3015_v44 = vld [vmem:[%s3357_s4] ss:$0 sm:$0xff] }
0x176f   :  { %v770_v62 = vpop.permute.xlu1 %769 }
0x1770   :  { %v772_v6 = vmul.f32 %v770_v62, %v766_v63 }
0x1772   :  { %774 = vrot.lane.b32.xlu2 %v772_v6, %s2706_s19 }
0x17cc   :  { %v775_v7 = vpop.permute.xlu2 %774 }
0x17cd   :  { %v777_v8 = vadd.f32 %v2427_v48, %v775_v7 }
0x17cf   :  { %2575 = vtanh.f32 %v777_v8 }
0x17d5   :  { %v2576_v9 = vpop.eup %2575 }
0x17d6   :  { %781 = vrot.lane.b32.xlu0 %v2576_v9, %s2707_s22 }
0x1848   :  { %v782_v11 = vpop.permute.xlu0 %781 }
0x1849   :  { %v784_v13 = vmul.f32 %v782_v11, %v779_v10 }
0x184b   :  { %v786_v14 = vadd.f32 %v785_v12, %v784_v13 }
0x184d   :  { %788 = vrot.lane.b32.xlu1 %v786_v14, %s2707_s22 }
0x18bf   :  { %v789_v15 = vpop.permute.xlu1 %788 }
0x18c0   :  { %791 = vst.msk [vmem:[#allocation2 + $0x14] sm:$0x3] %vm110_vm4, %v789_v15  ;;  %2431 = vmatmul.msk.f32.vlgmr.msra.gmra.mxu3 %vm43_vm5, %v789_v15 }
0x18c1   :  { %1359 = vmatpush.msra.mxu3 %v2972_v38 }
0x18c3   :  { %1360 = vmatpush.msra.mxu3 %v2977_v39 }
0x18c5   :  { %1361 = vmatpush.msra.mxu3 %v2984_v40 }
0x18c7   :  { %1362 = vmatpush.msra.mxu3 %v2993_v41 }
0x1943   :  { %v813_v16 = vpop.f32.mrf.mxu3 }
0x1944   :  { %v814_v17 = vadd.f32 %v2818_v5, %v813_v16 }
0x1946   :  { %837 = vrot.lane.b32.xlu2 %v814_v17, %s2706_s19  ;;  %v816_v19 = vadd.f32 %v2430_v18, %v814_v17 }
0x1948   :  { %v2432_v20 = vmul.f32 -1.442695, %v816_v19 }
0x194a   :  { %2577 = vpow2.f32 %v2432_v20 }
0x1950   :  { %v2578_v21 = vpop.eup %2577 }
0x1951   :  { %v820_v22 = vadd.f32 1.0, %v2578_v21 }
0x1953   :  { %2579 = vrcp.f32 %v820_v22  ;;  %v832_v28 = vand.u32 2147483648, %v820_v22  ;;  %vm826_vm3 = vweird.f32 %v820_v22  ;;  %v830_v5 = vand.u32 2147483647, %v820_v22 }
0x1955   :  { %v833_v30 = vor.u32 1.1754944e-38, %v832_v28  ;;  %vm831_vm7 = vcmp.eq.f32.partialorder %v830_v5, 8.507059e+37 }
0x1959   :  { %v2580_v23 = vpop.eup %2579 }
0x195a   :  { %v822_v24 = vmul.f32 %v2580_v23, %v820_v22  ;;  %vm827_vm2 = vweird.f32 %v2580_v23 }
0x195b   :  { %vm828_vm6 = vmor %vm826_vm3, %vm827_vm2 }
0x195c   :  { %v823_v25 = vsub.f32 1.0, %v822_v24 }
0x195e   :  { %v824_v26 = vmul.f32 %v2580_v23, %v823_v25 }
0x1960   :  { %v825_v27 = vadd.f32 %v2580_v23, %v824_v26 }
0x1962   :  { %v829_v29 = vsel %vm828_vm6, %v2580_v23, %v825_v27 }
0x1963   :  { %v834_v32 = vsel %vm831_vm7, %v833_v30, %v829_v29 }
0x1964   :  { %v847_v2 = vsub.f32 1.0, %v834_v32  ;;  %v853_v3 = vmul.f32 %v834_v32, %v786_v14 }
0x19a0   :  { %v838_v31 = vpop.permute.xlu2 %837 }
0x19a1   :  { %v840_v33 = vmul.f32 %v838_v31, %v834_v32 }
0x19a3   :  { %842 = vrot.lane.b32.xlu0 %v840_v33, %s2706_s19 }
0x1a15   :  { %v843_v0 = vpop.permute.xlu0 %842 }
0x1a16   :  { %v845_v1 = vadd.f32 %v2430_v18, %v843_v0 }
0x1a18   :  { %2581 = vtanh.f32 %v845_v1 }
0x1a1e   :  { %v2582_v34 = vpop.eup %2581 }
0x1a1f   :  { %849 = vrot.lane.b32.xlu1 %v2582_v34, %s2707_s22 }
0x1a91   :  { %v850_v35 = vpop.permute.xlu1 %849 }
0x1a92   :  { %v852_v36 = vmul.f32 %v850_v35, %v847_v2 }
0x1a94   :  { %v2965_v37 = vadd.f32 %v853_v3, %v852_v36 }
0x1a96   :  { %856 = vrot.lane.b32.xlu2 %v2965_v37, %s2707_s22 }
0x1af0   :  { %v857_v42 = vpop.permute.xlu2 %856 }
0x1af1   :  { %859 = vst.msk [vmem:[#allocation2 + $0x16] sm:$0x3] %vm110_vm4, %v857_v42  ;;  %2434 = vmatmul.msk.f32.vlgmr.msrb.gmra.mxu0 %vm43_vm5, %v857_v42 }
0x1af2   :  { %1427 = vmatpush.msrb.mxu0 %v2972_v38 }
0x1af4   :  { %1428 = vmatpush.msrb.mxu0 %v2977_v39 }
0x1af6   :  { %1429 = vmatpush.msrb.mxu0 %v2984_v40 }
0x1af8   :  { %1430 = vmatpush.msrb.mxu0 %v2993_v41 }
0x1af9   :  { %1159 = vmatmul.f32.vlgmr.msra.gmra.mxu0 %v2705_v4 }
0x1b6e   :  { %v881_v43 = vpop.f32.mrf.mxu0 }
0x1b6f   :  { %v882_v45 = vadd.f32 %v3015_v44, %v881_v43 }
0x1b71   :  { %905 = vrot.lane.b32.xlu0 %v882_v45, %s2706_s19  ;;  %v884_v50 = vadd.f32 %v2433_v49, %v882_v45 }
0x1b73   :  { %v2435_v51 = vmul.f32 -1.442695, %v884_v50 }
0x1b75   :  { %2583 = vpow2.f32 %v2435_v51 }
0x1b76   :  { %v1160_v47 = vpop.f32.mrf.mxu0 }
0x1b77   :  { %v1161_v48 = vadd.f32 %v3022_v46, %v1160_v47 }
0x1b79   :  { %1184 = vrot.lane.b32.xlu1 %v1161_v48, %s2706_s19  ;;  %v1163_v53 = vadd.f32 %v1161_v48, %v1139_v52  ;;  %v2436_v48 = vld [vmem:[%s3358_s0 + $0x1a] sm:$0x3] }
0x1b7b   :  { %v2450_v54 = vmul.f32 -1.442695, %v1163_v53  ;;  %v2584_v55 = vpop.eup %2583 }
0x1b7c   :  { %v888_v56 = vadd.f32 1.0, %v2584_v55 }
0x1b7d   :  { %2585 = vpow2.f32 %v2450_v54  ;;  %v2451_v54 = vld [vmem:[%s3359_s1 + $0x2] sm:$0x3] }
0x1b7e   :  { %2587 = vrcp.f32 %v888_v56  ;;  %v900_v9 = vand.u32 2147483648, %v888_v56  ;;  %vm894_vm9 = vweird.f32 %v888_v56  ;;  %v898_v10 = vand.u32 2147483647, %v888_v56 }
0x1b80   :  { %v901_v13 = vor.u32 1.1754944e-38, %v900_v9  ;;  %vm899_vm11 = vcmp.eq.f32.partialorder %v898_v10, 8.507059e+37 }
0x1b83   :  { %v2586_v57 = vpop.eup %2585 }
0x1b84   :  { %v1167_v58 = vadd.f32 1.0, %v2586_v57  ;;  %v2588_v59 = vpop.eup %2587 }
0x1b85   :  { %v890_v60 = vmul.f32 %v2588_v59, %v888_v56  ;;  %vm895_vm8 = vweird.f32 %v2588_v59 }
0x1b86   :  { %2589 = vrcp.f32 %v1167_v58  ;;  %vm896_vm10 = vmor %vm894_vm9, %vm895_vm8  ;;  %v1179_v18 = vand.u32 2147483648, %v1167_v58  ;;  %vm1173_vm13 = vweird.f32 %v1167_v58  ;;  %v1177_v19 = vand.u32 2147483647, %v1167_v58 }
0x1b87   :  { %v891_v61 = vsub.f32 1.0, %v890_v60 }
0x1b88   :  { %v1180_v21 = vor.u32 1.1754944e-38, %v1179_v18  ;;  %vm1178_vm15 = vcmp.eq.f32.partialorder %v1177_v19, 8.507059e+37 }
0x1b89   :  { %v892_v63 = vmul.f32 %v2588_v59, %v891_v61 }
0x1b8b   :  { %v893_v7 = vadd.f32 %v2588_v59, %v892_v63 }
0x1b8c   :  { %v2590_v62 = vpop.eup %2589 }
0x1b8d   :  { %v1169_v6 = vmul.f32 %v2590_v62, %v1167_v58  ;;  %v897_v11 = vsel %vm896_vm10, %v2588_v59, %v893_v7  ;;  %vm1174_vm12 = vweird.f32 %v2590_v62 }
0x1b8e   :  { %v902_v15 = vsel %vm899_vm11, %v901_v13, %v897_v11  ;;  %vm1175_vm14 = vmor %vm1173_vm13, %vm1174_vm12 }
0x1b8f   :  { %v1170_v8 = vsub.f32 1.0, %v1169_v6  ;;  %v915_v30 = vsub.f32 1.0, %v902_v15  ;;  %v921_v32 = vmul.f32 %v902_v15, %v2965_v37 }
0x1b91   :  { %v1171_v12 = vmul.f32 %v2590_v62, %v1170_v8 }
0x1b93   :  { %v1172_v17 = vadd.f32 %v2590_v62, %v1171_v12 }
0x1b95   :  { %v1176_v20 = vsel %vm1175_vm14, %v2590_v62, %v1172_v17 }
0x1b96   :  { %v1181_v23 = vsel %vm1178_vm15, %v1180_v21, %v1176_v20 }
0x1b97   :  { %v1194_v1 = vsub.f32 1.0, %v1181_v23  ;;  %v1200_v2 = vmul.f32 0.0, %v1181_v23 }
0x1be3   :  { %v906_v14 = vpop.permute.xlu0 %905 }
0x1be4   :  { %v908_v16 = vmul.f32 %v906_v14, %v902_v15 }
0x1be6   :  { %910 = vrot.lane.b32.xlu2 %v908_v16, %s2706_s19 }
0x1beb   :  { %v1185_v22 = vpop.permute.xlu1 %1184 }
0x1bec   :  { %v1187_v24 = vmul.f32 %v1185_v22, %v1181_v23 }
0x1bee   :  { %1189 = vrot.lane.b32.xlu0 %v1187_v24, %s2706_s19 }
0x1c40   :  { %v911_v25 = vpop.permute.xlu2 %910 }
0x1c41   :  { %v913_v26 = vadd.f32 %v2433_v49, %v911_v25 }
0x1c43   :  { %2591 = vtanh.f32 %v913_v26 }
0x1c49   :  { %v2592_v27 = vpop.eup %2591 }
0x1c4a   :  { %917 = vrot.lane.b32.xlu1 %v2592_v27, %s2707_s22 }
0x1c60   :  { %v1190_v28 = vpop.permute.xlu0 %1189 }
0x1c61   :  { %v1192_v5 = vadd.f32 %v1190_v28, %v1139_v52 }
0x1c63   :  { %2593 = vtanh.f32 %v1192_v5 }
0x1c69   :  { %v2594_v29 = vpop.eup %2593 }
0x1c6a   :  { %1196 = vrot.lane.b32.xlu2 %v2594_v29, %s2707_s22 }
0x1cbc   :  { %v918_v31 = vpop.permute.xlu1 %917 }
0x1cbd   :  { %v920_v33 = vmul.f32 %v918_v31, %v915_v30 }
0x1cbf   :  { %v3037_v0 = vadd.f32 %v921_v32, %v920_v33 }
0x1cc1   :  { %924 = vrot.lane.b32.xlu0 %v3037_v0, %s2707_s22 }
0x1cc4   :  { %v1197_v34 = vpop.permute.xlu2 %1196 }
0x1cc5   :  { %v1199_v35 = vmul.f32 %v1197_v34, %v1194_v1 }
0x1cc7   :  { %v3041_v3 = vadd.f32 %v1200_v2, %v1199_v35 }
0x1cc9   :  { %1203 = vrot.lane.b32.xlu1 %v3041_v3, %s2707_s22 }
0x1d33   :  { %v925_v36 = vpop.permute.xlu0 %924 }
0x1d34   :  { %927 = vst.msk [vmem:[#allocation2 + $0x18] sm:$0x3] %vm110_vm4, %v925_v36  ;;  %2437 = vmatmul.msk.f32.vlgmr.msrb.gmra.mxu1 %vm43_vm5, %v925_v36 }
0x1d35   :  { %1495 = vmatpush.msrb.mxu1 %v2972_v38 }
0x1d37   :  { %1496 = vmatpush.msrb.mxu1 %v2977_v39 }
0x1d39   :  { %1497 = vmatpush.msrb.mxu1 %v2984_v40 }
0x1d3b   :  { %v1204_v37 = vpop.permute.xlu1 %1203  ;;  %1498 = vmatpush.msrb.mxu1 %v2993_v41 }
0x1d3c   :  { %1206 = vst.msk [vmem:[#allocation3] sm:$0x3] %vm110_vm4, %v1204_v37  ;;  %2452 = vmatmul.msk.f32.vlgmr.msra.gmra.mxu1 %vm43_vm5, %v1204_v37 }
0x1db1   :  { %v949_v42 = vpop.f32.mrf.mxu1 }
0x1db2   :  { %v950_v43 = vadd.f32 %v3015_v44, %v949_v42 }
0x1db4   :  { %973 = vrot.lane.b32.xlu2 %v950_v43, %s2706_s19  ;;  %v952_v49 = vadd.f32 %v2436_v48, %v950_v43 }
0x1db6   :  { %v2438_v50 = vmul.f32 -1.442695, %v952_v49 }
0x1db8   :  { %2595 = vpow2.f32 %v2438_v50  ;;  %v2454_v50 = vld [vmem:[%s3359_s1 + $0x4] sm:$0x3] }
0x1db9   :  { %v1228_v45 = vpop.f32.mrf.mxu1 }
0x1dba   :  { %v1229_v47 = vadd.f32 %v3022_v46, %v1228_v45 }
0x1dbc   :  { %1252 = vrot.lane.b32.xlu0 %v1229_v47, %s2706_s19  ;;  %v1231_v56 = vadd.f32 %v2451_v54, %v1229_v47  ;;  %v2439_v47 = vld [vmem:[%s3358_s0 + $0x1c] sm:$0x3] }
0x1dbe   :  { %v2596_v51 = vpop.eup %2595  ;;  %v2453_v58 = vmul.f32 -1.442695, %v1231_v56 }
0x1dbf   :  { %v956_v52 = vadd.f32 1.0, %v2596_v51 }
0x1dc1   :  { %2597 = vrcp.f32 %v956_v52  ;;  %v968_v61 = vand.u32 2147483648, %v956_v52  ;;  %vm962_vm1 = vweird.f32 %v956_v52  ;;  %v966_v62 = vand.u32 2147483647, %v956_v52 }
0x1dc2   :  { %2599 = vpow2.f32 %v2453_v58 }
0x1dc3   :  { %v969_v7 = vor.u32 1.1754944e-38, %v968_v61  ;;  %vm967_vm3 = vcmp.eq.f32.partialorder %v966_v62, 8.507059e+37 }
0x1dc7   :  { %v2598_v53 = vpop.eup %2597 }
0x1dc8   :  { %v958_v55 = vmul.f32 %v2598_v53, %v956_v52  ;;  %vm963_vm0 = vweird.f32 %v2598_v53  ;;  %v2600_v63 = vpop.eup %2599 }
0x1dc9   :  { %vm964_vm2 = vmor %vm962_vm1, %vm963_vm0  ;;  %v1235_v8 = vadd.f32 1.0, %v2600_v63 }
0x1dca   :  { %v959_v57 = vsub.f32 1.0, %v958_v55 }
0x1dcb   :  { %2601 = vrcp.f32 %v1235_v8  ;;  %v1247_v17 = vand.u32 2147483648, %v1235_v8  ;;  %vm1241_vm7 = vweird.f32 %v1235_v8  ;;  %v1245_v18 = vand.u32 2147483647, %v1235_v8 }
0x1dcc   :  { %v960_v59 = vmul.f32 %v2598_v53, %v959_v57 }
0x1dcd   :  { %v1248_v20 = vor.u32 1.1754944e-38, %v1247_v17  ;;  %vm1246_vm9 = vcmp.eq.f32.partialorder %v1245_v18, 8.507059e+37 }
0x1dce   :  { %v961_v60 = vadd.f32 %v2598_v53, %v960_v59 }
0x1dd0   :  { %v965_v6 = vsel %vm964_vm2, %v2598_v53, %v961_v60 }
0x1dd1   :  { %v970_v9 = vsel %vm967_vm3, %v969_v7, %v965_v6  ;;  %v2602_v12 = vpop.eup %2601 }
0x1dd2   :  { %v1237_v13 = vmul.f32 %v2602_v12, %v1235_v8  ;;  %vm1242_vm6 = vweird.f32 %v2602_v12  ;;  %v983_v29 = vsub.f32 1.0, %v970_v9  ;;  %v989_v31 = vmul.f32 %v970_v9, %v3037_v0 }
0x1dd3   :  { %vm1243_vm8 = vmor %vm1241_vm7, %vm1242_vm6 }
0x1dd4   :  { %v1238_v14 = vsub.f32 1.0, %v1237_v13 }
0x1dd6   :  { %v1239_v15 = vmul.f32 %v2602_v12, %v1238_v14 }
0x1dd8   :  { %v1240_v16 = vadd.f32 %v2602_v12, %v1239_v15 }
0x1dda   :  { %v1244_v19 = vsel %vm1243_vm8, %v2602_v12, %v1240_v16 }
0x1ddb   :  { %v1249_v22 = vsel %vm1246_vm9, %v1248_v20, %v1244_v19 }
0x1ddc   :  { %v1262_v1 = vsub.f32 1.0, %v1249_v22  ;;  %v1268_v2 = vmul.f32 %v1249_v22, %v3041_v3 }
0x1e0e   :  { %v974_v10 = vpop.permute.xlu2 %973 }
0x1e0f   :  { %v976_v11 = vmul.f32 %v974_v10, %v970_v9 }
0x1e11   :  { %978 = vrot.lane.b32.xlu1 %v976_v11, %s2706_s19 }
0x1e2e   :  { %v1253_v21 = vpop.permute.xlu0 %1252 }
0x1e2f   :  { %v1255_v23 = vmul.f32 %v1253_v21, %v1249_v22 }
0x1e31   :  { %1257 = vrot.lane.b32.xlu2 %v1255_v23, %s2706_s19 }
0x1e83   :  { %v979_v24 = vpop.permute.xlu1 %978 }
0x1e84   :  { %v981_v25 = vadd.f32 %v2436_v48, %v979_v24 }
0x1e86   :  { %2603 = vtanh.f32 %v981_v25 }
0x1e8b   :  { %v1258_v26 = vpop.permute.xlu2 %1257 }
0x1e8c   :  { %v2604_v27 = vpop.eup %2603  ;;  %v1260_v28 = vadd.f32 %v2451_v54, %v1258_v26 }
0x1e8d   :  { %985 = vrot.lane.b32.xlu0 %v2604_v27, %s2707_s22 }
0x1e8e   :  { %2605 = vtanh.f32 %v1260_v28 }
0x1e94   :  { %v2606_v5 = vpop.eup %2605 }
0x1e95   :  { %1264 = vrot.lane.b32.xlu1 %v2606_v5, %s2707_s22 }
0x1eff   :  { %v986_v30 = vpop.permute.xlu0 %985 }
0x1f00   :  { %v988_v32 = vmul.f32 %v986_v30, %v983_v29 }
0x1f02   :  { %v3068_v33 = vadd.f32 %v989_v31, %v988_v32 }
0x1f04   :  { %992 = vrot.lane.b32.xlu2 %v3068_v33, %s2707_s22 }
0x1f07   :  { %v1265_v34 = vpop.permute.xlu1 %1264 }
0x1f08   :  { %v1267_v35 = vmul.f32 %v1265_v34, %v1262_v1 }
0x1f0a   :  { %v3073_v36 = vadd.f32 %v1268_v2, %v1267_v35 }
0x1f0c   :  { %1271 = vrot.lane.b32.xlu0 %v3073_v36, %s2707_s22 }
0x1f5e   :  { %v993_v37 = vpop.permute.xlu2 %992 }
0x1f5f   :  { %995 = vst.msk [vmem:[#allocation2 + $0x1a] sm:$0x3] %vm110_vm4, %v993_v37  ;;  %2440 = vmatmul.msk.f32.vlgmr.msrb.gmra.mxu2 %vm43_vm5, %v993_v37 }
0x1f60   :  { %1563 = vmatpush.msrb.mxu2 %v2972_v38 }
0x1f62   :  { %1564 = vmatpush.msrb.mxu2 %v2977_v39 }
0x1f64   :  { %1565 = vmatpush.msrb.mxu2 %v2984_v40 }
0x1f66   :  { %1566 = vmatpush.msrb.mxu2 %v2993_v41 }
0x1f7e   :  { %v1272_v0 = vpop.permute.xlu0 %1271 }
0x1f7f   :  { %1274 = vst.msk [vmem:[#allocation3 + $0x2] sm:$0x3] %vm110_vm4, %v1272_v0  ;;  %2455 = vmatmul.msk.f32.vlgmr.msra.gmra.mxu2 %vm43_vm5, %v1272_v0 }
0x1fe2   :  { %v1017_v3 = vpop.f32.mrf.mxu2 }
0x1fe3   :  { %v1018_v42 = vadd.f32 %v3015_v44, %v1017_v3 }
0x1fe5   :  { %1041 = vrot.lane.b32.xlu1 %v1018_v42, %s2706_s19  ;;  %v1020_v48 = vadd.f32 %v2439_v47, %v1018_v42 }
0x1fe7   :  { %v2441_v49 = vmul.f32 -1.442695, %v1020_v48 }
0x1fe9   :  { %2607 = vpow2.f32 %v2441_v49 }
0x1fef   :  { %v2608_v53 = vpop.eup %2607 }
0x1ff0   :  { %v1024_v54 = vadd.f32 1.0, %v2608_v53 }
0x1ff2   :  { %v1036_v7 = vand.u32 2147483648, %v1024_v54  ;;  %vm1030_vm11 = vweird.f32 %v1024_v54  ;;  %v1034_v8 = vand.u32 2147483647, %v1024_v54 }
0x1ff4   :  { %v1037_v11 = vor.u32 1.1754944e-38, %v1036_v7  ;;  %vm1035_vm13 = vcmp.eq.f32.partialorder %v1034_v8, 8.507059e+37 }
0x2002   :  { %v1296_v43 = vpop.f32.mrf.mxu2 }
0x2003   :  { %v1297_v45 = vadd.f32 %v3022_v46, %v1296_v43 }
0x2005   :  { %1320 = vrot.lane.b32.xlu2 %v1297_v45, %s2706_s19  ;;  %v1299_v51 = vadd.f32 %v2454_v50, %v1297_v45 }
0x2007   :  { %v2456_v52 = vmul.f32 -1.442695, %v1299_v51 }
0x2009   :  { %2609 = vpow2.f32 %v2456_v52 }
0x200a   :  { %2611 = vrcp.f32 %v1024_v54 }
0x200f   :  { %v2610_v55 = vpop.eup %2609 }
0x2010   :  { %v1303_v56 = vadd.f32 1.0, %v2610_v55  ;;  %v2612_v57 = vpop.eup %2611 }
0x2011   :  { %v1026_v58 = vmul.f32 %v2612_v57, %v1024_v54  ;;  %vm1031_vm10 = vweird.f32 %v2612_v57 }
0x2012   :  { %2613 = vrcp.f32 %v1303_v56  ;;  %vm1032_vm12 = vmor %vm1030_vm11, %vm1031_vm10  ;;  %v1315_v16 = vand.u32 2147483648, %v1303_v56  ;;  %vm1309_vm15 = vweird.f32 %v1303_v56  ;;  %v1313_v17 = vand.u32 2147483647, %v1303_v56 }
0x2013   :  { %v1027_v59 = vsub.f32 1.0, %v1026_v58 }
0x2014   :  { %v1316_v19 = vor.u32 1.1754944e-38, %v1315_v16  ;;  %vm1314_vm1 = vcmp.eq.f32.partialorder %v1313_v17, 8.507059e+37 }
0x2015   :  { %v1028_v61 = vmul.f32 %v2612_v57, %v1027_v59 }
0x2017   :  { %v1029_v63 = vadd.f32 %v2612_v57, %v1028_v61 }
0x2018   :  { %v2614_v60 = vpop.eup %2613 }
0x2019   :  { %v1305_v62 = vmul.f32 %v2614_v60, %v1303_v56  ;;  %v1033_v9 = vsel %vm1032_vm12, %v2612_v57, %v1029_v63  ;;  %vm1310_vm14 = vweird.f32 %v2614_v60 }
0x201a   :  { %v1038_v13 = vsel %vm1035_vm13, %v1037_v11, %v1033_v9  ;;  %vm1311_vm0 = vmor %vm1309_vm15, %vm1310_vm14  ;;  %v2460_v11 = vld [vmem:[%s3359_s1 + $0x8] sm:$0x3] }
0x201b   :  { %v1306_v6 = vsub.f32 1.0, %v1305_v62  ;;  %v1051_v5 = vsub.f32 1.0, %v1038_v13  ;;  %v1057_v30 = vmul.f32 %v1038_v13, %v3068_v33 }
0x201d   :  { %v1307_v10 = vmul.f32 %v2614_v60, %v1306_v6 }
0x201f   :  { %v1308_v15 = vadd.f32 %v2614_v60, %v1307_v10 }
0x2021   :  { %v1312_v18 = vsel %vm1311_vm0, %v2614_v60, %v1308_v15 }
0x2022   :  { %v1317_v21 = vsel %vm1314_vm1, %v1316_v19, %v1312_v18 }
0x2023   :  { %v1330_v1 = vsub.f32 1.0, %v1317_v21  ;;  %v1336_v2 = vmul.f32 %v1317_v21, %v3073_v36 }
0x2057   :  { %v1042_v12 = vpop.permute.xlu1 %1041 }
0x2058   :  { %v1044_v14 = vmul.f32 %v1042_v12, %v1038_v13 }
0x205a   :  { %1046 = vrot.lane.b32.xlu0 %v1044_v14, %s2706_s19 }
0x205f   :  { %v1321_v20 = vpop.permute.xlu2 %1320 }
0x2060   :  { %v1323_v22 = vmul.f32 %v1321_v20, %v1317_v21 }
0x2062   :  { %1325 = vrot.lane.b32.xlu1 %v1323_v22, %s2706_s19 }
0x20cc   :  { %v1047_v23 = vpop.permute.xlu0 %1046 }
0x20cd   :  { %v1049_v24 = vadd.f32 %v2439_v47, %v1047_v23 }
0x20cf   :  { %2615 = vtanh.f32 %v1049_v24 }
0x20d4   :  { %v1326_v25 = vpop.permute.xlu1 %1325 }
0x20d5   :  { %v2616_v26 = vpop.eup %2615  ;;  %v1328_v27 = vadd.f32 %v2454_v50, %v1326_v25 }
0x20d6   :  { %1053 = vrot.lane.b32.xlu2 %v2616_v26, %s2707_s22 }
0x20d7   :  { %2617 = vtanh.f32 %v1328_v27 }
0x20dd   :  { %v2618_v28 = vpop.eup %2617 }
0x20de   :  { %1332 = vrot.lane.b32.xlu0 %v2618_v28, %s2707_s22 }
0x2130   :  { %v1054_v29 = vpop.permute.xlu2 %1053 }
0x2131   :  { %v1056_v31 = vmul.f32 %v1054_v29, %v1051_v5 }
0x2133   :  { %v3100_v32 = vadd.f32 %v1057_v30, %v1056_v31 }
0x2135   :  { %1060 = vrot.lane.b32.xlu1 %v3100_v32, %s2707_s22 }
0x2150   :  { %v1333_v34 = vpop.permute.xlu0 %1332 }
0x2151   :  { %v1335_v35 = vmul.f32 %v1333_v34, %v1330_v1 }
0x2153   :  { %v1337_v37 = vadd.f32 %v1336_v2, %v1335_v35  ;;  %v2477_v35 = vld [vmem:[%s3360_s5 + $0x38] sm:$0xff] }
0x2154   :  { %1747 = vmatpush.msra.mxu1 %v2477_v35 }
0x2155   :  { %1339 = vrot.lane.b32.xlu2 %v1337_v37, %s2707_s22 }
0x21a7   :  { %v1061_v0 = vpop.permute.xlu1 %1060 }
0x21a8   :  { %1063 = vst.msk [vmem:[#allocation2 + $0x1c] sm:$0x3] %vm110_vm4, %v1061_v0  ;;  %2443 = vmatmul.msk.f32.vlgmr.msrb.gmra.mxu3 %vm43_vm5, %v1061_v0  ;;  %v2475_v0 = vld [vmem:[%s3360_s5 + $0x28] sm:$0xff] }
0x21a9   :  { %1631 = vmatpush.msrb.mxu3 %v2972_v38  ;;  %v2457_v38 = vld [vmem:[%s3359_s1 + $0x6] sm:$0x3] }
0x21ab   :  { %1632 = vmatpush.msrb.mxu3 %v2977_v39 }
0x21ad   :  { %1633 = vmatpush.msrb.mxu3 %v2984_v40 }
0x21af   :  { %v1340_v33 = vpop.permute.xlu2 %1339  ;;  %1634 = vmatpush.msrb.mxu3 %v2993_v41 }
0x21b0   :  { %1342 = vst.msk [vmem:[#allocation3 + $0x4] sm:$0x3] %vm110_vm4, %v1340_v33  ;;  %2458 = vmatmul.msk.f32.vlgmr.msra.gmra.mxu3 %vm43_vm5, %v1340_v33  ;;  %v2474_v33 = vld [vmem:[%s3360_s5 + $0x20] sm:$0xff] }
0x222b   :  { %v3114_v36 = vpop.f32.mrf.mxu3 }
0x2233   :  { %v1364_v3 = vpop.f32.mrf.mxu3 }
0x2234   :  { %v1365_v42 = vadd.f32 %v3022_v46, %v1364_v3 }
0x2236   :  { %1388 = vrot.lane.b32.xlu0 %v1365_v42, %s2706_s19  ;;  %v1367_v39 = vadd.f32 %v2457_v38, %v1365_v42 }
0x2238   :  { %v2459_v40 = vmul.f32 -1.442695, %v1367_v39 }
0x223a   :  { %2619 = vpow2.f32 %v2459_v40  ;;  %v2463_v40 = vld [vmem:[%s3359_s1 + $0xa] sm:$0x3] }
0x2240   :  { %v2620_v43 = vpop.eup %2619 }
0x2241   :  { %v1371_v41 = vadd.f32 1.0, %v2620_v43 }
0x2243   :  { %2621 = vrcp.f32 %v1371_v41  ;;  %v1383_v51 = vand.u32 2147483648, %v1371_v41  ;;  %vm1377_vm3 = vweird.f32 %v1371_v41  ;;  %v1381_v52 = vand.u32 2147483647, %v1371_v41 }
0x2245   :  { %v1384_v54 = vor.u32 1.1754944e-38, %v1383_v51  ;;  %vm1382_vm7 = vcmp.eq.f32.partialorder %v1381_v52, 8.507059e+37 }
0x2249   :  { %v2622_v45 = vpop.eup %2621 }
0x224a   :  { %v1373_v47 = vmul.f32 %v2622_v45, %v1371_v41  ;;  %vm1378_vm2 = vweird.f32 %v2622_v45 }
0x224b   :  { %vm1379_vm6 = vmor %vm1377_vm3, %vm1378_vm2 }
0x224c   :  { %v1374_v48 = vsub.f32 1.0, %v1373_v47 }
0x224e   :  { %v1375_v49 = vmul.f32 %v2622_v45, %v1374_v48 }
0x2250   :  { %v1376_v50 = vadd.f32 %v2622_v45, %v1375_v49 }
0x2252   :  { %v1380_v53 = vsel %vm1379_vm6, %v2622_v45, %v1376_v50 }
0x2253   :  { %v1385_v56 = vsel %vm1382_vm7, %v1384_v54, %v1380_v53 }
0x2254   :  { %v1398_v61 = vsub.f32 1.0, %v1385_v56  ;;  %v1404_v63 = vmul.f32 %v1385_v56, %v1337_v37  ;;  %v2476_v37 = vld [vmem:[%s3360_s5 + $0x30] sm:$0xff] }
0x2255   :  { %1748 = vmatpush.msra.mxu1 %v2476_v37 }
0x2257   :  { %1749 = vmatpush.msra.mxu1 %v2475_v0 }
0x2259   :  { %1750 = vmatpush.msra.mxu1 %v2474_v33  ;;  %v1687_v33 = vld [vmem:[#allocation2 + $0x10] sm:$0xff] }
0x22a8   :  { %v1389_v55 = vpop.permute.xlu0 %1388 }
0x22a9   :  { %v1391_v57 = vmul.f32 %v1389_v55, %v1385_v56 }
0x22ab   :  { %1393 = vrot.lane.b32.xlu1 %v1391_v57, %s2706_s19 }
0x231d   :  { %v1394_v58 = vpop.permute.xlu1 %1393 }
0x231e   :  { %v1396_v59 = vadd.f32 %v2457_v38, %v1394_v58 }
0x2320   :  { %2623 = vtanh.f32 %v1396_v59 }
0x2326   :  { %v2624_v60 = vpop.eup %2623 }
0x2327   :  { %1400 = vrot.lane.b32.xlu2 %v2624_v60, %s2707_s22  ;;  %v1086_v60 = vadd.f32 %v3015_v44, %v3114_v36 }
0x2381   :  { %v1401_v62 = vpop.permute.xlu2 %1400 }
0x2382   :  { %v1403_v6 = vmul.f32 %v1401_v62, %v1398_v61  ;;  %v2442_v61 = vld [vmem:[%s3358_s0 + $0x1e] sm:$0x3] }
0x2383   :  { %v1088_v62 = vadd.f32 %v2442_v61, %v1086_v60 }
0x2384   :  { %v1405_v7 = vadd.f32 %v1404_v63, %v1403_v6 }
0x2385   :  { %v2444_v63 = vmul.f32 -1.442695, %v1088_v62 }
0x2386   :  { %1407 = vrot.lane.b32.xlu0 %v1405_v7, %s2707_s22 }
0x23f8   :  { %v1408_v8 = vpop.permute.xlu0 %1407 }
0x23f9   :  { %1410 = vst.msk [vmem:[#allocation3 + $0x6] sm:$0x3] %vm110_vm4, %v1408_v8  ;;  %2461 = vmatmul.msk.f32.vlgmr.msrb.gmra.mxu0 %vm43_vm5, %v1408_v8 }
0x2400   :  { %v1718_v42 = vld [vmem:[#allocation3] sm:$0xff] }
0x2476   :  { %v1432_v9 = vpop.f32.mrf.mxu0 }
0x2477   :  { %v1433_v10 = vadd.f32 %v3022_v46, %v1432_v9 }
0x2479   :  { %1456 = vrot.lane.b32.xlu1 %v1433_v10, %s2706_s19  ;;  %v1435_v12 = vadd.f32 %v2460_v11, %v1433_v10 }
0x247b   :  { %v2462_v13 = vmul.f32 -1.442695, %v1435_v12 }
0x247d   :  { %2625 = vpow2.f32 %v2462_v13 }
0x2483   :  { %v2626_v14 = vpop.eup %2625 }
0x2484   :  { %v1439_v15 = vadd.f32 1.0, %v2626_v14 }
0x2486   :  { %2627 = vrcp.f32 %v1439_v15  ;;  %v1451_v21 = vand.u32 2147483648, %v1439_v15  ;;  %vm1445_vm9 = vweird.f32 %v1439_v15  ;;  %v1449_v22 = vand.u32 2147483647, %v1439_v15 }
0x2488   :  { %v1452_v24 = vor.u32 1.1754944e-38, %v1451_v21  ;;  %vm1450_vm11 = vcmp.eq.f32.partialorder %v1449_v22, 8.507059e+37 }
0x248c   :  { %v2628_v16 = vpop.eup %2627 }
0x248d   :  { %v1441_v17 = vmul.f32 %v2628_v16, %v1439_v15  ;;  %vm1446_vm8 = vweird.f32 %v2628_v16 }
0x248e   :  { %vm1447_vm10 = vmor %vm1445_vm9, %vm1446_vm8 }
0x248f   :  { %v1442_v18 = vsub.f32 1.0, %v1441_v17 }
0x2491   :  { %v1443_v19 = vmul.f32 %v2628_v16, %v1442_v18 }
0x2493   :  { %v1444_v20 = vadd.f32 %v2628_v16, %v1443_v19 }
0x2495   :  { %v1448_v23 = vsel %vm1447_vm10, %v2628_v16, %v1444_v20 }
0x2496   :  { %v1453_v26 = vsel %vm1450_vm11, %v1452_v24, %v1448_v23 }
0x2497   :  { %v1466_v30 = vsub.f32 1.0, %v1453_v26  ;;  %v1472_v1 = vmul.f32 %v1453_v26, %v1405_v7 }
0x24eb   :  { %v1457_v25 = vpop.permute.xlu1 %1456 }
0x24ec   :  { %v1459_v27 = vmul.f32 %v1457_v25, %v1453_v26 }
0x24ee   :  { %1461 = vrot.lane.b32.xlu2 %v1459_v27, %s2706_s19 }
0x2548   :  { %v1462_v28 = vpop.permute.xlu2 %1461 }
0x2549   :  { %v1464_v5 = vadd.f32 %v2460_v11, %v1462_v28 }
0x254b   :  { %2629 = vtanh.f32 %v1464_v5 }
0x2551   :  { %v2630_v29 = vpop.eup %2629 }
0x2552   :  { %1468 = vrot.lane.b32.xlu0 %v2630_v29, %s2707_s22 }
0x25c4   :  { %v1469_v31 = vpop.permute.xlu0 %1468 }
0x25c5   :  { %v1471_v34 = vmul.f32 %v1469_v31, %v1466_v30 }
0x25c7   :  { %v3133_v2 = vadd.f32 %v1472_v1, %v1471_v34 }
0x25c9   :  { %1475 = vrot.lane.b32.xlu1 %v3133_v2, %s2707_s22 }
0x263b   :  { %v1476_v3 = vpop.permute.xlu1 %1475 }
0x263c   :  { %1478 = vst.msk [vmem:[#allocation3 + $0x8] sm:$0x3] %vm110_vm4, %v1476_v3  ;;  %2464 = vmatmul.msk.f32.vlgmr.msrb.gmra.mxu1 %vm43_vm5, %v1476_v3  ;;  %v1686_v3 = vld [vmem:[#allocation2 + $0x8] sm:$0xff] }
0x2644   :  { %2478 = vmatmul.msk.f32.vlgmr.msra.gmra.mxu1 %vm43_vm5, %v1718_v42  ;;  %v1685_v42 = vld [vmem:[#allocation2] sm:$0xff] }
0x26b9   :  { %v1500_v38 = vpop.f32.mrf.mxu1 }
0x26ba   :  { %v1501_v39 = vadd.f32 %v3022_v46, %v1500_v38 }
0x26bc   :  { %1524 = vrot.lane.b32.xlu2 %v1501_v39, %s2706_s19  ;;  %v1503_v43 = vadd.f32 %v2463_v40, %v1501_v39 }
0x26be   :  { %v2465_v41 = vmul.f32 -1.442695, %v1503_v43 }
0x26c0   :  { %2631 = vpow2.f32 %v2465_v41  ;;  %v1723_v41 = vld [vmem:[%s3360_s5 + $0x18] sm:$0xff] }
0x26c1   :  { %1776 = vmatpush.msra.mxu2 %v1723_v41 }
0x26c6   :  { %v2632_v45 = vpop.eup %2631 }
0x26c7   :  { %v1507_v47 = vadd.f32 1.0, %v2632_v45  ;;  %v1722_v45 = vld [vmem:[%s3360_s5 + $0x10] sm:$0xff] }
0x26c8   :  { %1777 = vmatpush.msra.mxu2 %v1722_v45 }
0x26c9   :  { %2633 = vrcp.f32 %v1507_v47  ;;  %v1519_v53 = vand.u32 2147483648, %v1507_v47  ;;  %vm1513_vm13 = vweird.f32 %v1507_v47  ;;  %v1517_v54 = vand.u32 2147483647, %v1507_v47 }
0x26ca   :  { %2635 = vpow2.f32 %v2444_v63 }
0x26cb   :  { %v1520_v56 = vor.u32 1.1754944e-38, %v1519_v53  ;;  %vm1518_vm15 = vcmp.eq.f32.partialorder %v1517_v54, 8.507059e+37 }
0x26cf   :  { %v2634_v48 = vpop.eup %2633 }
0x26d0   :  { %v1509_v49 = vmul.f32 %v2634_v48, %v1507_v47  ;;  %vm1514_vm12 = vweird.f32 %v2634_v48  ;;  %v2636_v6 = vpop.eup %2635  ;;  %v1721_v47 = vld [vmem:[%s3360_s5 + $0x8] sm:$0xff] }
0x26d1   :  { %vm1515_vm14 = vmor %vm1513_vm13, %vm1514_vm12  ;;  %v1092_v7 = vadd.f32 1.0, %v2636_v6  ;;  %1778 = vmatpush.msra.mxu2 %v1721_v47 }
0x26d2   :  { %v1510_v50 = vsub.f32 1.0, %v1509_v49 }
0x26d3   :  { %2637 = vrcp.f32 %v1092_v7  ;;  %v1104_v14 = vand.u32 2147483648, %v1092_v7  ;;  %vm1098_vm1 = vweird.f32 %v1092_v7  ;;  %v1102_v15 = vand.u32 2147483647, %v1092_v7 }
0x26d4   :  { %v1511_v51 = vmul.f32 %v2634_v48, %v1510_v50 }
0x26d5   :  { %v1105_v17 = vor.u32 1.1754944e-38, %v1104_v14  ;;  %vm1103_vm3 = vcmp.eq.f32.partialorder %v1102_v15, 8.507059e+37 }
0x26d6   :  { %v1512_v52 = vadd.f32 %v2634_v48, %v1511_v51 }
0x26d8   :  { %v1516_v55 = vsel %vm1515_vm14, %v2634_v48, %v1512_v52  ;;  %v1720_v52 = vld [vmem:[%s3360_s5] sm:$0xff] }
0x26d9   :  { %v1521_v58 = vsel %vm1518_vm15, %v1520_v56, %v1516_v55  ;;  %v2638_v8 = vpop.eup %2637  ;;  %1779 = vmatpush.msra.mxu2 %v1720_v52 }
0x26da   :  { %v1094_v9 = vmul.f32 %v2638_v8, %v1092_v7  ;;  %vm1099_vm0 = vweird.f32 %v2638_v8  ;;  %v1534_v21 = vsub.f32 1.0, %v1521_v58  ;;  %v1540_v23 = vmul.f32 %v1521_v58, %v3133_v2 }
0x26db   :  { %vm1100_vm2 = vmor %vm1098_vm1, %vm1099_vm0 }
0x26dc   :  { %v1095_v11 = vsub.f32 1.0, %v1094_v9 }
0x26de   :  { %v1096_v13 = vmul.f32 %v2638_v8, %v1095_v11 }
0x26e0   :  { %v1097_v44 = vadd.f32 %v2638_v8, %v1096_v13  ;;  %v2484_v13 = vld [vmem:[%s3356_s3 + $0x50] sm:$0xff] }
0x26e2   :  { %v1101_v16 = vsel %vm1100_vm2, %v2638_v8, %v1097_v44  ;;  %v2483_v44 = vld [vmem:[%s3356_s3 + $0x48] sm:$0xff] }
0x26e3   :  { %v1106_v19 = vsel %vm1103_vm3, %v1105_v17, %v1101_v16  ;;  %v3226_v16 = vld [vmem:[%s3357_s4 + $0x2] ss:$0 sm:$0xff] }
0x26e4   :  { %v1119_v29 = vsub.f32 1.0, %v1106_v19  ;;  %v1125_v31 = vmul.f32 %v1106_v19, %v3100_v32  ;;  %v1683_v32 = vld [vmem:[%s3361_s2] sm:$0xff] }
0x2716   :  { %v1525_v57 = vpop.permute.xlu2 %1524 }
0x2717   :  { %v1527_v59 = vmul.f32 %v1525_v57, %v1521_v58 }
0x2719   :  { %1529 = vrot.lane.b32.xlu0 %v1527_v59, %s2706_s19 }
0x2721   :  { %1109 = vrot.lane.b32.xlu0 %v1086_v60, %s2706_s19 }
0x278b   :  { %v1530_v10 = vpop.permute.xlu0 %1529 }
0x278c   :  { %v1532_v12 = vadd.f32 %v2463_v40, %v1530_v10 }
0x278e   :  { %2639 = vtanh.f32 %v1532_v12  ;;  %v2485_v12 = vld [vmem:[%s3356_s3 + $0x58] sm:$0xff] }
0x278f   :  { %1815 = vmatpush.msra.mxu3 %v2485_v12  ;;  %2029 = vmatpush.msrb.mxu1 %v2485_v12 }
0x2791   :  { %1816 = vmatpush.msra.mxu3 %v2484_v13  ;;  %2030 = vmatpush.msrb.mxu1 %v2484_v13 }
0x2793   :  { %v1110_v18 = vpop.permute.xlu0 %1109  ;;  %1817 = vmatpush.msra.mxu3 %v2483_v44  ;;  %2031 = vmatpush.msrb.mxu1 %v2483_v44 }
0x2794   :  { %v2640_v36 = vpop.eup %2639  ;;  %v1112_v20 = vmul.f32 %v1110_v18, %v1106_v19 }
0x2795   :  { %1536 = vrot.lane.b32.xlu1 %v2640_v36, %s2707_s22  ;;  %v2482_v36 = vld [vmem:[%s3356_s3 + $0x40] sm:$0xff] }
0x2796   :  { %1818 = vmatpush.msra.mxu3 %v2482_v36  ;;  %2032 = vmatpush.msrb.mxu1 %v2482_v36 }
0x2798   :  { %2316 = vmatpush.msra.mxu1 %v2485_v12 }
0x279a   :  { %2317 = vmatpush.msra.mxu1 %v2484_v13 }
0x279c   :  { %2318 = vmatpush.msra.mxu1 %v2483_v44 }
0x279d   :  { %1114 = vrot.lane.b32.xlu1 %v1112_v20, %s2706_s19  ;;  %v1752_v20 = vpop.f32.mrf.mxu1 }
0x279e   :  { %2319 = vmatpush.msra.mxu1 %v2482_v36 }
0x2807   :  { %v1537_v22 = vpop.permute.xlu1 %1536 }
0x2808   :  { %v1539_v24 = vmul.f32 %v1537_v22, %v1534_v21 }
0x280a   :  { %v3167_v25 = vadd.f32 %v1540_v23, %v1539_v24 }
0x280c   :  { %1543 = vrot.lane.b32.xlu2 %v3167_v25, %s2707_s22 }
0x280f   :  { %v1115_v26 = vpop.permute.xlu1 %1114 }
0x2810   :  { %v1117_v27 = vadd.f32 %v2442_v61, %v1115_v26 }
0x2812   :  { %2641 = vtanh.f32 %v1117_v27 }
0x2818   :  { %v2642_v28 = vpop.eup %2641 }
0x2819   :  { %1121 = vrot.lane.b32.xlu2 %v2642_v28, %s2707_s22 }
0x2866   :  { %v1544_v5 = vpop.permute.xlu2 %1543 }
0x2867   :  { %1546 = vst.msk [vmem:[#allocation3 + $0xa] sm:$0x3] %vm110_vm4, %v1544_v5  ;;  %2467 = vmatmul.msk.f32.vlgmr.msrb.gmra.mxu2 %vm43_vm5, %v1544_v5 }
0x2868   :  { %2103 = vmatpush.msrb.mxu2 %v2485_v12 }
0x286a   :  { %2104 = vmatpush.msrb.mxu2 %v2484_v13 }
0x286c   :  { %2105 = vmatpush.msrb.mxu2 %v2483_v44 }
0x286e   :  { %2106 = vmatpush.msrb.mxu2 %v2482_v36 }
0x2873   :  { %v1122_v30 = vpop.permute.xlu2 %1121 }
0x2874   :  { %v1124_v1 = vmul.f32 %v1122_v30, %v1119_v29 }
0x2876   :  { %v1126_v34 = vadd.f32 %v1125_v31, %v1124_v1 }
0x2878   :  { %1128 = vrot.lane.b32.xlu1 %v1126_v34, %s2707_s22 }
0x28ea   :  { %v1568_v2 = vpop.f32.mrf.mxu2  ;;  %v1129_v35 = vpop.permute.xlu1 %1128 }
0x28eb   :  { %v1569_v37 = vadd.f32 %v3022_v46, %v1568_v2  ;;  %1131 = vst.msk [vmem:[#allocation2 + $0x1e] sm:$0x3] %vm110_vm4, %v1129_v35  ;;  %v2466_v46 = vld [vmem:[%s3359_s1 + $0xc] sm:$0x3] }
0x28ed   :  { %1592 = vrot.lane.b32.xlu0 %v1569_v37, %s2706_s19  ;;  %v1571_v38 = vadd.f32 %v2466_v46, %v1569_v37 }
0x28ef   :  { %v2468_v39 = vmul.f32 -1.442695, %v1571_v38 }
0x28f1   :  { %2643 = vpow2.f32 %v2468_v39 }
0x28f2   :  { %v1688_v0 = vld [vmem:[#allocation2 + $0x18] sm:$0xff] }
0x28f3   :  { %1707 = vmatpush.msra.mxu0 %v1688_v0 }
0x28f5   :  { %1708 = vmatpush.msra.mxu0 %v1687_v33 }
0x28f7   :  { %1709 = vmatpush.msra.mxu0 %v1686_v3  ;;  %v2644_v40 = vpop.eup %2643 }
0x28f8   :  { %v1575_v43 = vadd.f32 1.0, %v2644_v40 }
0x28f9   :  { %1710 = vmatpush.msra.mxu0 %v1685_v42 }
0x28fa   :  { %2472 = vmatmul.msk.f32.vlgmr.msra.gmra.mxu0 %vm43_vm5, %v1683_v32  ;;  %2645 = vrcp.f32 %v1575_v43  ;;  %v1587_v54 = vand.u32 2147483648, %v1575_v43  ;;  %vm1581_vm7 = vweird.f32 %v1575_v43  ;;  %v1585_v55 = vand.u32 2147483647, %v1575_v43 }
0x28fb   :  { %1955 = vmatpush.msrb.mxu0 %v2485_v12 }
0x28fc   :  { %v1588_v57 = vor.u32 1.1754944e-38, %v1587_v54  ;;  %vm1586_vm9 = vcmp.eq.f32.partialorder %v1585_v55, 8.507059e+37 }
0x28fd   :  { %1956 = vmatpush.msrb.mxu0 %v2484_v13 }
0x28ff   :  { %1957 = vmatpush.msrb.mxu0 %v2483_v44 }
0x2900   :  { %v2646_v48 = vpop.eup %2645 }
0x2901   :  { %v1577_v49 = vmul.f32 %v2646_v48, %v1575_v43  ;;  %vm1582_vm6 = vweird.f32 %v2646_v48  ;;  %1958 = vmatpush.msrb.mxu0 %v2482_v36 }
0x2902   :  { %vm1583_vm8 = vmor %vm1581_vm7, %vm1582_vm6 }
0x2903   :  { %v1578_v50 = vsub.f32 1.0, %v1577_v49  ;;  %2243 = vmatpush.msra.mxu0 %v2485_v12 }
0x2905   :  { %v1579_v51 = vmul.f32 %v2646_v48, %v1578_v50  ;;  %2244 = vmatpush.msra.mxu0 %v2484_v13 }
0x2907   :  { %v1580_v53 = vadd.f32 %v2646_v48, %v1579_v51  ;;  %2245 = vmatpush.msra.mxu0 %v2483_v44 }
0x2909   :  { %v1584_v56 = vsel %vm1583_vm8, %v2646_v48, %v1580_v53  ;;  %2246 = vmatpush.msra.mxu0 %v2482_v36 }
0x290a   :  { %v1589_v58 = vsel %vm1586_vm9, %v1588_v57, %v1584_v56 }
0x290b   :  { %v1602_v7 = vsub.f32 1.0, %v1589_v58  ;;  %v1608_v9 = vmul.f32 %v1589_v58, %v3167_v25 }
0x295f   :  { %v1593_v59 = vpop.permute.xlu0 %1592 }
0x2960   :  { %v1595_v60 = vmul.f32 %v1593_v59, %v1589_v58 }
0x2962   :  { %1597 = vrot.lane.b32.xlu2 %v1595_v60, %s2706_s19 }
0x2977   :  { %v1712_v61 = vpop.f32.mrf.mxu0 }
0x2978   :  { %2480 = vmatmul.msk.f32.vlgmr.msra.gmra.mxu2 %vm43_vm5, %v1712_v61 }
0x29bc   :  { %v1598_v62 = vpop.permute.xlu2 %1597 }
0x29bd   :  { %v1600_v63 = vadd.f32 %v2466_v46, %v1598_v62 }
0x29bf   :  { %2647 = vtanh.f32 %v1600_v63 }
0x29c5   :  { %v2648_v6 = vpop.eup %2647 }
0x29c6   :  { %1604 = vrot.lane.b32.xlu0 %v2648_v6, %s2707_s22  ;;  %v2704_v6 = vld [vmem:[%s3357_s4 + $0x1] ss:$0 sm:$0xff] }
0x29fb   :  { %v1781_v19 = vpop.f32.mrf.mxu2 }
0x29fc   :  { %v1782_v21 = vadd.f32 %v1781_v19, %v1752_v20 }
0x2a38   :  { %v1605_v8 = vpop.permute.xlu0 %1604 }
0x2a39   :  { %v1607_v10 = vmul.f32 %v1605_v8, %v1602_v7 }
0x2a3b   :  { %v3202_v11 = vadd.f32 %v1608_v9, %v1607_v10 }
0x2a3d   :  { %1611 = vrot.lane.b32.xlu1 %v3202_v11, %s2707_s22 }
0x2aaf   :  { %v1612_v14 = vpop.permute.xlu1 %1611 }
0x2ab0   :  { %1614 = vst.msk [vmem:[#allocation3 + $0xc] sm:$0x3] %vm110_vm4, %v1612_v14  ;;  %2470 = vmatmul.msk.f32.vlgmr.msrb.gmra.mxu3 %vm43_vm5, %v1612_v14 }
0x2ab1   :  { %1881 = vmatpush.msrb.mxu3 %v2485_v12 }
0x2ab3   :  { %1882 = vmatpush.msrb.mxu3 %v2484_v13 }
0x2ab5   :  { %1883 = vmatpush.msrb.mxu3 %v2483_v44 }
0x2ab7   :  { %1884 = vmatpush.msrb.mxu3 %v2482_v36 }
0x2ab8   :  { %1819 = vmatmul.f32.vlgmr.msra.gmra.mxu3 %v2705_v4  ;;  %v3233_v4 = vld [vmem:[%s3362_s6] ss:$0 sm:$0xff] }
0x2ab9   :  { %2170 = vmatpush.msra.mxu3 %v2485_v12  ;;  %v3236_v22 = vadd.f32 %v3233_v4, %v1782_v21  ;;  %v2469_v12 = vld [vmem:[%s3359_s1 + $0xe] sm:$0x3] }
0x2abb   :  { %2171 = vmatpush.msra.mxu3 %v2484_v13 }
0x2abd   :  { %2172 = vmatpush.msra.mxu3 %v2483_v44 }
0x2abf   :  { %2173 = vmatpush.msra.mxu3 %v2482_v36 }
0x2b33   :  { %v3221_v15 = vpop.f32.mrf.mxu3 }
0x2b34   :  { %v1637_v7 = vadd.f32 %v2704_v6, %v3221_v15  ;;  %v1684_v15 = vld [vmem:[%s3361_s2 + $0x8] sm:$0xff] }
0x2b35   :  { %2473 = vmatmul.msk.f32.gmra.mxu0 %vm43_vm5, %v1684_v15 }
0x2b36   :  { %v1639_v13 = vadd.f32 %v2469_v12, %v1637_v7 }
0x2b38   :  { %v2471_v44 = vmul.f32 -1.442695, %v1639_v13 }
0x2b3b   :  { %v1820_v17 = vpop.f32.mrf.mxu3 }
0x2b3c   :  { %v1821_v18 = vadd.f32 %v3226_v16, %v1820_v17 }
0x2b3e   :  { %1844 = vrot.lane.b32.xlu2 %v1821_v18, %s2706_s19  ;;  %v1823_v23 = vadd.f32 %v1821_v18, %v3236_v22 }
0x2b40   :  { %v2487_v24 = vmul.f32 -1.442695, %v1823_v23 }
0x2b42   :  { %2649 = vpow2.f32 %v2487_v24 }
0x2b48   :  { %v2650_v25 = vpop.eup %2649 }
0x2b49   :  { %v1827_v26 = vadd.f32 1.0, %v2650_v25 }
0x2b4b   :  { %2651 = vrcp.f32 %v1827_v26  ;;  %v1839_v31 = vand.u32 2147483648, %v1827_v26  ;;  %vm1833_vm11 = vweird.f32 %v1827_v26  ;;  %v1837_v1 = vand.u32 2147483647, %v1827_v26 }
0x2b4d   :  { %v1840_v2 = vor.u32 1.1754944e-38, %v1839_v31  ;;  %vm1838_vm13 = vcmp.eq.f32.partialorder %v1837_v1, 8.507059e+37 }
0x2b51   :  { %v2652_v27 = vpop.eup %2651 }
0x2b52   :  { %v1829_v28 = vmul.f32 %v2652_v27, %v1827_v26  ;;  %vm1834_vm10 = vweird.f32 %v2652_v27 }
0x2b53   :  { %vm1835_vm12 = vmor %vm1833_vm11, %vm1834_vm10 }
0x2b54   :  { %v1830_v5 = vsub.f32 1.0, %v1829_v28 }
0x2b56   :  { %v1831_v29 = vmul.f32 %v2652_v27, %v1830_v5 }
0x2b58   :  { %v1832_v30 = vadd.f32 %v2652_v27, %v1831_v29 }
0x2b5a   :  { %v1836_v34 = vsel %vm1835_vm12, %v2652_v27, %v1832_v30 }
0x2b5b   :  { %v1841_v37 = vsel %vm1838_vm13, %v1840_v2, %v1836_v34 }
0x2b5c   :  { %v1854_v42 = vsub.f32 1.0, %v1841_v37  ;;  %v1860_v38 = vmul.f32 0.0, %v1841_v37 }
0x2b98   :  { %v1845_v35 = vpop.permute.xlu2 %1844 }
0x2b99   :  { %v1847_v0 = vmul.f32 %v1845_v35, %v1841_v37 }
0x2b9b   :  { %1849 = vrot.lane.b32.xlu0 %v1847_v0, %s2706_s19 }
0x2bb2   :  { %v1715_v37 = vpop.f32.mrf.mxu0 }
0x2bb3   :  { %2481 = vmatmul.msk.f32.gmra.mxu2 %vm43_vm5, %v1715_v37 }
0x2c0d   :  { %v1850_v33 = vpop.permute.xlu0 %1849 }
0x2c0e   :  { %v1852_v3 = vadd.f32 %v1850_v33, %v3236_v22 }
0x2c10   :  { %2653 = vtanh.f32 %v1852_v3 }
0x2c16   :  { %v2654_v32 = vpop.eup %2653 }
0x2c17   :  { %1856 = vrot.lane.b32.xlu1 %v2654_v32, %s2707_s22 }
0x2c89   :  { %v1857_v46 = vpop.permute.xlu1 %1856 }
0x2c8a   :  { %v1859_v39 = vmul.f32 %v1857_v46, %v1854_v42 }
0x2c8c   :  { %v1861_v40 = vadd.f32 %v1860_v38, %v1859_v39 }
0x2c8e   :  { %1863 = vrot.lane.b32.xlu2 %v1861_v40, %s2707_s22  ;;  %v1928_v20 = vrot.slane %v1861_v40, 6 }
0x2ce8   :  { %v1864_v43 = vpop.permute.xlu2 %1863 }
0x2ce9   :  { %1866 = vst.msk [vmem:[#allocation4] sm:$0x3] %vm110_vm4, %v1864_v43  ;;  %2488 = vmatmul.msk.f32.vlgmr.msrb.gmra.mxu3 %vm43_vm5, %v1864_v43 }
0x2d6c   :  { %v1886_v41 = vpop.f32.mrf.mxu3 }
0x2d6d   :  { %v1887_v45 = vadd.f32 %v3226_v16, %v1886_v41 }
0x2d6f   :  { %v1890_v47 = vrot.slane %v1887_v45, 6 }
0x2d71   :  { %1912 = vrot.lane.b32.xlu0 %v1890_v47, %s2706_s19  ;;  %v1892_v48 = vadd.f32 %v1890_v47, %v3236_v22 }
0x2d73   :  { %v2489_v49 = vmul.f32 -1.442695, %v1892_v48 }
0x2d75   :  { %2655 = vpow2.f32 %v2489_v49 }
0x2d7b   :  { %v2656_v50 = vpop.eup %2655 }
0x2d7c   :  { %v1896_v51 = vadd.f32 1.0, %v2656_v50 }
0x2d7e   :  { %2657 = vrcp.f32 %v1896_v51  ;;  %v1908_v57 = vand.u32 2147483648, %v1896_v51  ;;  %vm1902_vm15 = vweird.f32 %v1896_v51  ;;  %v1906_v58 = vand.u32 2147483647, %v1896_v51 }
0x2d80   :  { %v1909_v60 = vor.u32 1.1754944e-38, %v1908_v57  ;;  %vm1907_vm1 = vcmp.eq.f32.partialorder %v1906_v58, 8.507059e+37 }
0x2d84   :  { %v2658_v52 = vpop.eup %2657 }
0x2d85   :  { %v1898_v53 = vmul.f32 %v2658_v52, %v1896_v51  ;;  %vm1903_vm14 = vweird.f32 %v2658_v52 }
0x2d86   :  { %vm1904_vm0 = vmor %vm1902_vm15, %vm1903_vm14 }
0x2d87   :  { %v1899_v54 = vsub.f32 1.0, %v1898_v53 }
0x2d89   :  { %v1900_v55 = vmul.f32 %v2658_v52, %v1899_v54 }
0x2d8b   :  { %v1901_v56 = vadd.f32 %v2658_v52, %v1900_v55 }
0x2d8d   :  { %v1905_v59 = vsel %vm1904_vm0, %v2658_v52, %v1901_v56 }
0x2d8e   :  { %v1910_v62 = vsel %vm1907_vm1, %v1909_v60, %v1905_v59 }
0x2d8f   :  { %v1922_v21 = vsub.f32 1.0, %v1910_v62  ;;  %v1930_v26 = vmul.f32 %v1928_v20, %v1910_v62 }
0x2de3   :  { %v1913_v61 = vpop.permute.xlu0 %1912 }
0x2de4   :  { %v1915_v63 = vmul.f32 %v1913_v61, %v1910_v62 }
0x2de6   :  { %1917 = vrot.lane.b32.xlu1 %v1915_v63, %s2706_s19 }
0x2dee   :  { %1660 = vrot.lane.b32.xlu1 %v1637_v7, %s2706_s19 }
0x2e58   :  { %v1918_v8 = vpop.permute.xlu1 %1917 }
0x2e59   :  { %v1920_v9 = vadd.f32 %v1918_v8, %v3236_v22 }
0x2e5b   :  { %2659 = vtanh.f32 %v1920_v9 }
0x2e5c   :  { %2661 = vpow2.f32 %v2471_v44 }
0x2e60   :  { %v1661_v34 = vpop.permute.xlu1 %1660 }
0x2e61   :  { %v2660_v10 = vpop.eup %2659 }
0x2e62   :  { %1924 = vrot.lane.b32.xlu2 %v2660_v10, %s2707_s22  ;;  %v2662_v36 = vpop.eup %2661 }
0x2e63   :  { %v1643_v14 = vadd.f32 1.0, %v2662_v36 }
0x2e65   :  { %2663 = vrcp.f32 %v1643_v14  ;;  %v1655_v29 = vand.u32 2147483648, %v1643_v14  ;;  %vm1649_vm3 = vweird.f32 %v1643_v14  ;;  %v1653_v30 = vand.u32 2147483647, %v1643_v14 }
0x2e67   :  { %v1656_v1 = vor.u32 1.1754944e-38, %v1655_v29  ;;  %vm1654_vm7 = vcmp.eq.f32.partialorder %v1653_v30, 8.507059e+37 }
0x2e6b   :  { %v2664_v17 = vpop.eup %2663 }
0x2e6c   :  { %v1645_v18 = vmul.f32 %v2664_v17, %v1643_v14  ;;  %vm1650_vm2 = vweird.f32 %v2664_v17 }
0x2e6d   :  { %vm1651_vm6 = vmor %vm1649_vm3, %vm1650_vm2 }
0x2e6e   :  { %v1646_v19 = vsub.f32 1.0, %v1645_v18 }
0x2e70   :  { %v1647_v24 = vmul.f32 %v2664_v17, %v1646_v19 }
0x2e72   :  { %v1648_v28 = vadd.f32 %v2664_v17, %v1647_v24 }
0x2e74   :  { %v1652_v31 = vsel %vm1651_vm6, %v2664_v17, %v1648_v28 }
0x2e75   :  { %v1657_v2 = vsel %vm1654_vm7, %v1656_v1, %v1652_v31 }
0x2e76   :  { %v1663_v35 = vmul.f32 %v1661_v34, %v1657_v2  ;;  %v1670_v58 = vsub.f32 1.0, %v1657_v2  ;;  %v1676_v60 = vmul.f32 %v1657_v2, %v3202_v11 }
0x2ebc   :  { %v1925_v23 = vpop.permute.xlu2 %1924 }
0x2ebd   :  { %v1927_v25 = vmul.f32 %v1925_v23, %v1922_v21 }
0x2ebf   :  { %v3263_v27 = vadd.f32 %v1930_v26, %v1927_v25 }
0x2ec1   :  { %v1938_v5 = vrot.slane %v3263_v27, 2  ;;  %v2002_v11 = vrot.slane %v3263_v27, 6 }
0x2ec3   :  { %1939 = vrot.lane.b32.xlu0 %v1938_v5, %s2707_s22 }
0x2ecb   :  { %1665 = vrot.lane.b32.xlu0 %v1663_v35, %s2706_s19 }
0x2f35   :  { %v1940_v0 = vpop.permute.xlu0 %1939 }
0x2f36   :  { %2490 = vmatmul.msk.f32.vlgmr.msrb.gmra.mxu0 %vm43_vm5, %v1940_v0 }
0x2f3d   :  { %v1666_v33 = vpop.permute.xlu0 %1665 }
0x2f3e   :  { %v1668_v42 = vadd.f32 %v2469_v12, %v1666_v33 }
0x2f40   :  { %2665 = vtanh.f32 %v1668_v42 }
0x2f46   :  { %v2666_v38 = vpop.eup %2665 }
0x2fb3   :  { %v1960_v3 = vpop.f32.mrf.mxu0 }
0x2fb4   :  { %v1961_v32 = vadd.f32 %v3226_v16, %v1960_v3 }
0x2fb6   :  { %v1964_v46 = vrot.slane %v1961_v32, 4 }
0x2fb8   :  { %1986 = vrot.lane.b32.xlu2 %v1964_v46, %s2706_s19  ;;  %v1966_v39 = vadd.f32 %v1964_v46, %v3236_v22 }
0x2fba   :  { %v2491_v40 = vmul.f32 -1.442695, %v1966_v39 }
0x2fbc   :  { %2667 = vpow2.f32 %v2491_v40 }
0x2fc0   :  { %1672 = vrot.lane.b32.xlu2 %v2666_v38, %s2707_s22 }
0x2fc2   :  { %v2668_v43 = vpop.eup %2667 }
0x2fc3   :  { %v1970_v41 = vadd.f32 1.0, %v2668_v43 }
0x2fc5   :  { %2669 = vrcp.f32 %v1970_v41  ;;  %v1982_v51 = vand.u32 2147483648, %v1970_v41  ;;  %vm1976_vm9 = vweird.f32 %v1970_v41  ;;  %v1980_v52 = vand.u32 2147483647, %v1970_v41 }
0x2fc7   :  { %v1983_v54 = vor.u32 1.1754944e-38, %v1982_v51  ;;  %vm1981_vm11 = vcmp.eq.f32.partialorder %v1980_v52, 8.507059e+37 }
0x2fcb   :  { %v2670_v45 = vpop.eup %2669 }
0x2fcc   :  { %v1972_v47 = vmul.f32 %v2670_v45, %v1970_v41  ;;  %vm1977_vm8 = vweird.f32 %v2670_v45 }
0x2fcd   :  { %vm1978_vm10 = vmor %vm1976_vm9, %vm1977_vm8 }
0x2fce   :  { %v1973_v48 = vsub.f32 1.0, %v1972_v47 }
0x2fd0   :  { %v1974_v49 = vmul.f32 %v2670_v45, %v1973_v48 }
0x2fd2   :  { %v1975_v50 = vadd.f32 %v2670_v45, %v1974_v49 }
0x2fd4   :  { %v1979_v53 = vsel %vm1978_vm10, %v2670_v45, %v1975_v50 }
0x2fd5   :  { %v1984_v56 = vsel %vm1981_vm11, %v1983_v54, %v1979_v53 }
0x2fd6   :  { %v1996_v10 = vsub.f32 1.0, %v1984_v56  ;;  %v2004_v13 = vmul.f32 %v2002_v11, %v1984_v56 }
0x3012   :  { %v1987_v55 = vpop.permute.xlu2 %1986 }
0x3013   :  { %v1989_v57 = vmul.f32 %v1987_v55, %v1984_v56 }
0x3015   :  { %1991 = vrot.lane.b32.xlu1 %v1989_v57, %s2706_s19 }
0x301a   :  { %v1673_v59 = vpop.permute.xlu2 %1672 }
0x301b   :  { %v1675_v61 = vmul.f32 %v1673_v59, %v1670_v58 }
0x301d   :  { %v1677_v62 = vadd.f32 %v1676_v60, %v1675_v61 }
0x301f   :  { %1679 = vrot.lane.b32.xlu1 %v1677_v62, %s2707_s22 }
0x3087   :  { %v1992_v63 = vpop.permute.xlu1 %1991 }
0x3088   :  { %v1994_v6 = vadd.f32 %v1992_v63, %v3236_v22 }
0x308a   :  { %2671 = vtanh.f32 %v1994_v6 }
0x3090   :  { %v2672_v7 = vpop.eup %2671 }
0x3091   :  { %1998 = vrot.lane.b32.xlu0 %v2672_v7, %s2707_s22  ;;  %v1680_v8 = vpop.permute.xlu1 %1679 }
0x3092   :  { %1682 = vst.msk [vmem:[#allocation3 + $0xe] sm:$0x3] %vm110_vm4, %v1680_v8 }
0x3099   :  { %v1719_v9 = vld [vmem:[#allocation3 + $0x8] sm:$0xff] }
0x309a   :  { %2479 = vmatmul.msk.f32.gmra.mxu1 %vm43_vm5, %v1719_v9 }
0x3103   :  { %v1999_v12 = vpop.permute.xlu0 %1998 }
0x3104   :  { %v2001_v44 = vmul.f32 %v1999_v12, %v1996_v10 }
0x3106   :  { %v3282_v36 = vadd.f32 %v2004_v13, %v2001_v44 }
0x3108   :  { %v2012_v14 = vrot.slane %v3282_v36, 4  ;;  %v2076_v46 = vrot.slane %v3282_v36, 6 }
0x310a   :  { %2013 = vrot.lane.b32.xlu2 %v2012_v14, %s2707_s22 }
0x3117   :  { %v1755_v17 = vpop.f32.mrf.mxu1 }
0x3164   :  { %v2014_v15 = vpop.permute.xlu2 %2013 }
0x3165   :  { %2492 = vmatmul.msk.f32.vlgmr.msrb.gmra.mxu1 %vm43_vm5, %v2014_v15 }
0x31e2   :  { %v2034_v18 = vpop.f32.mrf.mxu1 }
0x31e3   :  { %v2035_v19 = vadd.f32 %v3226_v16, %v2034_v18 }
0x31e5   :  { %v2038_v20 = vrot.slane %v2035_v19, 2 }
0x31e7   :  { %2060 = vrot.lane.b32.xlu0 %v2038_v20, %s2706_s19  ;;  %v2040_v21 = vadd.f32 %v2038_v20, %v3236_v22 }
0x31e9   :  { %v2493_v23 = vmul.f32 -1.442695, %v2040_v21 }
0x31eb   :  { %2673 = vpow2.f32 %v2493_v23 }
0x31f1   :  { %v2674_v24 = vpop.eup %2673 }
0x31f2   :  { %v2044_v25 = vadd.f32 1.0, %v2674_v24 }
0x31f4   :  { %2675 = vrcp.f32 %v2044_v25  ;;  %v2056_v31 = vand.u32 2147483648, %v2044_v25  ;;  %vm2050_vm13 = vweird.f32 %v2044_v25  ;;  %v2054_v1 = vand.u32 2147483647, %v2044_v25 }
0x31f6   :  { %v2057_v2 = vor.u32 1.1754944e-38, %v2056_v31  ;;  %vm2055_vm15 = vcmp.eq.f32.partialorder %v2054_v1, 8.507059e+37 }
0x31fa   :  { %v2676_v26 = vpop.eup %2675 }
0x31fb   :  { %v2046_v28 = vmul.f32 %v2676_v26, %v2044_v25  ;;  %vm2051_vm12 = vweird.f32 %v2676_v26 }
0x31fc   :  { %vm2052_vm14 = vmor %vm2050_vm13, %vm2051_vm12 }
0x31fd   :  { %v2047_v5 = vsub.f32 1.0, %v2046_v28 }
0x31ff   :  { %v2048_v29 = vmul.f32 %v2676_v26, %v2047_v5 }
0x3201   :  { %v2049_v30 = vadd.f32 %v2676_v26, %v2048_v29 }
0x3203   :  { %v2053_v34 = vsel %vm2052_vm14, %v2676_v26, %v2049_v30 }
0x3204   :  { %v2058_v37 = vsel %vm2055_vm15, %v2057_v2, %v2053_v34 }
0x3205   :  { %v2070_v42 = vsub.f32 1.0, %v2058_v37  ;;  %v2078_v39 = vmul.f32 %v2076_v46, %v2058_v37 }
0x3259   :  { %v2061_v35 = vpop.permute.xlu0 %2060 }
0x325a   :  { %v2063_v0 = vmul.f32 %v2061_v35, %v2058_v37 }
0x325c   :  { %2065 = vrot.lane.b32.xlu1 %v2063_v0, %s2706_s19 }
0x32ce   :  { %v2066_v33 = vpop.permute.xlu1 %2065 }
0x32cf   :  { %v2068_v3 = vadd.f32 %v2066_v33, %v3236_v22  ;;  %v1784_v22 = vpop.f32.mrf.mxu2 }
0x32d0   :  { %v1785_v49 = vadd.f32 %v1784_v22, %v1755_v17 }
0x32d1   :  { %2677 = vtanh.f32 %v2068_v3 }
0x32d2   :  { %v3302_v50 = vadd.f32 %v3233_v4, %v1785_v49 }
0x32d7   :  { %v2678_v32 = vpop.eup %2677 }
0x32d8   :  { %2072 = vrot.lane.b32.xlu2 %v2678_v32, %s2707_s22 }
0x3332   :  { %v2073_v38 = vpop.permute.xlu2 %2072 }
0x3333   :  { %v2075_v40 = vmul.f32 %v2073_v38, %v2070_v42 }
0x3335   :  { %v3294_v43 = vadd.f32 %v2078_v39, %v2075_v40 }
0x3337   :  { %v2086_v41 = vrot.slane %v3294_v43, 6 }
0x3339   :  { %2087 = vrot.lane.b32.xlu0 %v2086_v41, %s2707_s22 }
0x33ab   :  { %v2088_v45 = vpop.permute.xlu0 %2087 }
0x33ac   :  { %2494 = vmatmul.msk.f32.vlgmr.msrb.gmra.mxu2 %vm43_vm5, %v2088_v45 }
0x342f   :  { %v2108_v47 = vpop.f32.mrf.mxu2 }
0x3430   :  { %v2109_v48 = vadd.f32 %v3226_v16, %v2108_v47 }
0x3432   :  { %2132 = vrot.lane.b32.xlu1 %v2109_v48, %s2706_s19  ;;  %v2111_v51 = vadd.f32 %v2109_v48, %v3302_v50 }
0x3434   :  { %v2495_v52 = vmul.f32 -1.442695, %v2111_v51 }
0x3436   :  { %2679 = vpow2.f32 %v2495_v52 }
0x343c   :  { %v2680_v53 = vpop.eup %2679 }
0x343d   :  { %v2115_v54 = vadd.f32 1.0, %v2680_v53 }
0x343f   :  { %2681 = vrcp.f32 %v2115_v54  ;;  %v2127_v60 = vand.u32 2147483648, %v2115_v54  ;;  %vm2121_vm1 = vweird.f32 %v2115_v54  ;;  %v2125_v61 = vand.u32 2147483647, %v2115_v54 }
0x3441   :  { %v2128_v4 = vor.u32 1.1754944e-38, %v2127_v60  ;;  %vm2126_vm3 = vcmp.eq.f32.partialorder %v2125_v61, 8.507059e+37 }
0x3445   :  { %v2682_v55 = vpop.eup %2681 }
0x3446   :  { %v2117_v56 = vmul.f32 %v2682_v55, %v2115_v54  ;;  %vm2122_vm0 = vweird.f32 %v2682_v55 }
0x3447   :  { %vm2123_vm2 = vmor %vm2121_vm1, %vm2122_vm0  ;;  %vm1936_vm1 = vcmask 257026  }
0x3448   :  { %v2118_v57 = vsub.f32 1.0, %v2117_v56 }
0x344a   :  { %v2119_v58 = vmul.f32 %v2682_v55, %v2118_v57 }
0x344c   :  { %v2120_v59 = vadd.f32 %v2682_v55, %v2119_v58 }
0x344e   :  { %v2124_v62 = vsel %vm2123_vm2, %v2682_v55, %v2120_v59  ;;  %vm2010_vm2 = vcmask 259076  }
0x344f   :  { %v2129_v6 = vsel %vm2126_vm3, %v2128_v4, %v2124_v62  ;;  %vm2084_vm3 = vcmask 261126  }
0x3450   :  { %v2142_v11 = vsub.f32 1.0, %v2129_v6  ;;  %v2149_v13 = vmul.f32 %v2129_v6, %v2086_v41 }
0x34a4   :  { %v2133_v63 = vpop.permute.xlu1 %2132 }
0x34a5   :  { %v2135_v7 = vmul.f32 %v2133_v63, %v2129_v6 }
0x34a7   :  { %2137 = vrot.lane.b32.xlu2 %v2135_v7, %s2706_s19 }
0x3501   :  { %v2138_v8 = vpop.permute.xlu2 %2137 }
0x3502   :  { %v2140_v9 = vadd.f32 %v2138_v8, %v3302_v50 }
0x3504   :  { %2683 = vtanh.f32 %v2140_v9 }
0x350a   :  { %v2684_v10 = vpop.eup %2683 }
0x350b   :  { %2144 = vrot.lane.b32.xlu0 %v2684_v10, %s2707_s22 }
0x357d   :  { %v2145_v12 = vpop.permute.xlu0 %2144 }
0x357e   :  { %v2147_v44 = vmul.f32 %v2145_v12, %v2142_v11 }
0x3580   :  { %v2150_v14 = vadd.f32 %v2149_v13, %v2147_v44 }
0x3582   :  { %2152 = vrot.lane.b32.xlu1 %v2150_v14, %s2707_s22  ;;  %v2217_v34 = vrot.slane %v2150_v14, 6 }
0x35f4   :  { %v2153_v15 = vpop.permute.xlu1 %2152 }
0x35f5   :  { %2155 = vst.msk [vmem:[#allocation4 + $0x8] sm:$0x3] %vm110_vm4, %v2153_v15  ;;  %2496 = vmatmul.msk.f32.vlgmr.msra.gmra.mxu3 %vm43_vm5, %v2153_v15 }
0x3678   :  { %v2175_v17 = vpop.f32.mrf.mxu3 }
0x3679   :  { %v2176_v18 = vadd.f32 %v3226_v16, %v2175_v17 }
0x367b   :  { %v2179_v19 = vrot.slane %v2176_v18, 6 }
0x367d   :  { %v2181_v20 = vadd.f32 %v2179_v19, %v3302_v50  ;;  %2201 = vrot.lane.b32.xlu2 %v2179_v19, %s2706_s19 }
0x367f   :  { %v2497_v21 = vmul.f32 -1.442695, %v2181_v20 }
0x3681   :  { %2685 = vpow2.f32 %v2497_v21 }
0x3687   :  { %v2686_v23 = vpop.eup %2685 }
0x3688   :  { %v2185_v24 = vadd.f32 1.0, %v2686_v23 }
0x368a   :  { %2687 = vrcp.f32 %v2185_v24  ;;  %v2197_v5 = vand.u32 2147483648, %v2185_v24  ;;  %v2195_v30 = vand.u32 2147483647, %v2185_v24  ;;  %vm2191_vm6 = vweird.f32 %v2185_v24 }
0x368c   :  { %v2198_v1 = vor.u32 1.1754944e-38, %v2197_v5  ;;  %vm2196_vm8 = vcmp.eq.f32.partialorder %v2195_v30, 8.507059e+37 }
0x3690   :  { %v2688_v25 = vpop.eup %2687 }
0x3691   :  { %v2187_v26 = vmul.f32 %v2688_v25, %v2185_v24  ;;  %vm2192_vm4 = vweird.f32 %v2688_v25 }
0x3692   :  { %vm2193_vm7 = vmor %vm2191_vm6, %vm2192_vm4  ;;  %vm2392_vm4 = vcmask 7168  }
0x3693   :  { %v2188_v28 = vsub.f32 1.0, %v2187_v26 }
0x3695   :  { %v2189_v29 = vmul.f32 %v2688_v25, %v2188_v28 }
0x3697   :  { %v2190_v31 = vadd.f32 %v2688_v25, %v2189_v29 }
0x3699   :  { %v2194_v2 = vsel %vm2193_vm7, %v2688_v25, %v2190_v31 }
0x369a   :  { %v2199_v35 = vsel %vm2196_vm8, %v2198_v1, %v2194_v2 }
0x369b   :  { %v2219_v37 = vmul.f32 %v2217_v34, %v2199_v35  ;;  %v2211_v46 = vsub.f32 1.0, %v2199_v35 }
0x36d7   :  { %v2202_v0 = vpop.permute.xlu2 %2201 }
0x36d8   :  { %v2204_v33 = vmul.f32 %v2202_v0, %v2199_v35 }
0x36da   :  { %2206 = vrot.lane.b32.xlu0 %v2204_v33, %s2706_s19 }
0x374c   :  { %v2207_v3 = vpop.permute.xlu0 %2206 }
0x374d   :  { %v2209_v32 = vadd.f32 %v2207_v3, %v3302_v50 }
0x374f   :  { %2689 = vtanh.f32 %v2209_v32 }
0x3755   :  { %v2690_v42 = vpop.eup %2689 }
0x3756   :  { %2213 = vrot.lane.b32.xlu1 %v2690_v42, %s2707_s22 }
0x37c8   :  { %v2214_v38 = vpop.permute.xlu1 %2213 }
0x37c9   :  { %v2216_v39 = vmul.f32 %v2214_v38, %v2211_v46 }
0x37cb   :  { %v2220_v40 = vadd.f32 %v2219_v37, %v2216_v39 }
0x37cd   :  { %v2226_v41 = vrot.slane %v2220_v40, 2  ;;  %v2290_v11 = vrot.slane %v2220_v40, 6 }
0x37cf   :  { %2227 = vrot.lane.b32.xlu2 %v2226_v41, %s2707_s22 }
0x3829   :  { %v2228_v45 = vpop.permute.xlu2 %2227 }
0x382a   :  { %2498 = vmatmul.msk.f32.vlgmr.msra.gmra.mxu0 %vm43_vm5, %v2228_v45 }
0x38a7   :  { %v2248_v22 = vpop.f32.mrf.mxu0 }
0x38a8   :  { %v2249_v47 = vadd.f32 %v3226_v16, %v2248_v22  ;;  %v2509_v22 = vld [vmem:[%s3363_s7] ss:$0 sm:$0xff] }
0x38aa   :  { %v2252_v48 = vrot.slane %v2249_v47, 4 }
0x38ac   :  { %2274 = vrot.lane.b32.xlu0 %v2252_v48, %s2706_s19  ;;  %v2254_v49 = vadd.f32 %v2252_v48, %v3302_v50 }
0x38ae   :  { %v2499_v51 = vmul.f32 -1.442695, %v2254_v49 }
0x38b0   :  { %2691 = vpow2.f32 %v2499_v51 }
0x38b6   :  { %v2692_v52 = vpop.eup %2691 }
0x38b7   :  { %v2258_v53 = vadd.f32 1.0, %v2692_v52 }
0x38b9   :  { %2693 = vrcp.f32 %v2258_v53  ;;  %v2270_v59 = vand.u32 2147483648, %v2258_v53  ;;  %vm2264_vm10 = vweird.f32 %v2258_v53  ;;  %v2268_v60 = vand.u32 2147483647, %v2258_v53 }
0x38bb   :  { %v2271_v62 = vor.u32 1.1754944e-38, %v2270_v59  ;;  %vm2269_vm12 = vcmp.eq.f32.partialorder %v2268_v60, 8.507059e+37 }
0x38bf   :  { %v2694_v54 = vpop.eup %2693 }
0x38c0   :  { %v2260_v55 = vmul.f32 %v2694_v54, %v2258_v53  ;;  %vm2265_vm9 = vweird.f32 %v2694_v54 }
0x38c1   :  { %vm2266_vm11 = vmor %vm2264_vm10, %vm2265_vm9 }
0x38c2   :  { %v2261_v56 = vsub.f32 1.0, %v2260_v55 }
0x38c4   :  { %v2262_v57 = vmul.f32 %v2694_v54, %v2261_v56 }
0x38c6   :  { %v2263_v58 = vadd.f32 %v2694_v54, %v2262_v57 }
0x38c8   :  { %v2267_v61 = vsel %vm2266_vm11, %v2694_v54, %v2263_v58 }
0x38c9   :  { %v2272_v63 = vsel %vm2269_vm12, %v2271_v62, %v2267_v61 }
0x38ca   :  { %v2284_v10 = vsub.f32 1.0, %v2272_v63  ;;  %v2292_v13 = vmul.f32 %v2290_v11, %v2272_v63 }
0x391e   :  { %v2275_v4 = vpop.permute.xlu0 %2274 }
0x391f   :  { %v2277_v6 = vmul.f32 %v2275_v4, %v2272_v63 }
0x3921   :  { %2279 = vrot.lane.b32.xlu1 %v2277_v6, %s2706_s19 }
0x3993   :  { %v2280_v7 = vpop.permute.xlu1 %2279 }
0x3994   :  { %v2282_v8 = vadd.f32 %v2280_v7, %v3302_v50 }
0x3996   :  { %2695 = vtanh.f32 %v2282_v8 }
0x399c   :  { %v2696_v9 = vpop.eup %2695 }
0x399d   :  { %2286 = vrot.lane.b32.xlu2 %v2696_v9, %s2707_s22 }
0x39f7   :  { %v2287_v12 = vpop.permute.xlu2 %2286 }
0x39f8   :  { %v2289_v44 = vmul.f32 %v2287_v12, %v2284_v10 }
0x39fa   :  { %v2293_v14 = vadd.f32 %v2292_v13, %v2289_v44 }
0x39fc   :  { %v2299_v15 = vrot.slane %v2293_v14, 4  ;;  %v2363_v38 = vrot.slane %v2293_v14, 6 }
0x39fe   :  { %2300 = vrot.lane.b32.xlu0 %v2299_v15, %s2707_s22 }
0x3a70   :  { %v2301_v17 = vpop.permute.xlu0 %2300 }
0x3a71   :  { %2500 = vmatmul.msk.f32.vlgmr.msra.gmra.mxu1 %vm43_vm5, %v2301_v17 }
0x3aee   :  { %v2321_v18 = vpop.f32.mrf.mxu1 }
0x3aef   :  { %v2322_v19 = vadd.f32 %v3226_v16, %v2321_v18 }
0x3af1   :  { %v2325_v20 = vrot.slane %v2322_v19, 2 }
0x3af3   :  { %2347 = vrot.lane.b32.xlu1 %v2325_v20, %s2706_s19  ;;  %v2327_v21 = vadd.f32 %v2325_v20, %v3302_v50 }
0x3af5   :  { %v2501_v23 = vmul.f32 -1.442695, %v2327_v21 }
0x3af7   :  { %2697 = vpow2.f32 %v2501_v23 }
0x3afb   :  { %1933 = vrot.lane.b32.xlu1 %v3263_v27, %s2707_s22 }
0x3afd   :  { %v2698_v24 = vpop.eup %2697 }
0x3afe   :  { %v2331_v25 = vadd.f32 1.0, %v2698_v24 }
0x3b00   :  { %2699 = vrcp.f32 %v2331_v25  ;;  %v2343_v30 = vand.u32 2147483648, %v2331_v25  ;;  %vm2337_vm14 = vweird.f32 %v2331_v25  ;;  %v2341_v31 = vand.u32 2147483647, %v2331_v25 }
0x3b02   :  { %v2344_v1 = vor.u32 1.1754944e-38, %v2343_v30  ;;  %vm2342_vm0 = vcmp.eq.f32.partialorder %v2341_v31, 8.507059e+37 }
0x3b03   :  { %2222 = vrot.lane.b32.xlu1 %v2220_v40, %s2707_s22 }
0x3b06   :  { %v2700_v26 = vpop.eup %2699 }
0x3b07   :  { %v2333_v28 = vmul.f32 %v2700_v26, %v2331_v25  ;;  %vm2338_vm13 = vweird.f32 %v2700_v26 }
0x3b08   :  { %vm2339_vm15 = vmor %vm2337_vm14, %vm2338_vm13 }
0x3b09   :  { %v2334_v5 = vsub.f32 1.0, %v2333_v28 }
0x3b0b   :  { %v2335_v29 = vmul.f32 %v2700_v26, %v2334_v5 }
0x3b0d   :  { %v2336_v16 = vadd.f32 %v2700_v26, %v2335_v29 }
0x3b0f   :  { %v2340_v27 = vsel %vm2339_vm15, %v2700_v26, %v2336_v16 }
0x3b10   :  { %v2345_v2 = vsel %vm2342_vm0, %v2344_v1, %v2340_v27 }
0x3b11   :  { %v2365_v40 = vmul.f32 %v2363_v38, %v2345_v2 }
0x3b65   :  { %v2348_v34 = vpop.permute.xlu1 %2347 }
0x3b66   :  { %v2350_v35 = vmul.f32 %v2348_v34, %v2345_v2 }
0x3b68   :  { %2352 = vrot.lane.b32.xlu2 %v2350_v35, %s2706_s19 }
0x3b6d   :  { %v1934_v37 = vpop.permute.xlu1 %1933 }
0x3b6e   :  { %1937 = vst.msk [vmem:[#allocation4] sm:$0xc] %vm1936_vm1, %v1934_v37 }
0x3b70   :  { %2007 = vrot.lane.b32.xlu2 %v3282_v36, %s2707_s22  ;;  %v2357_v36 = vsub.f32 1.0, %v2345_v2 }
0x3b75   :  { %v2223_v0 = vpop.permute.xlu1 %2222 }
0x3b76   :  { %2225 = vst.msk [vmem:[#allocation4 + $0x8] sm:$0xc] %vm1936_vm1, %v2223_v0 }
0x3b78   :  { %2295 = vrot.lane.b32.xlu2 %v2293_v14, %s2707_s22 }
0x3bc2   :  { %v2353_v33 = vpop.permute.xlu2 %2352 }
0x3bc3   :  { %v2355_v3 = vadd.f32 %v2353_v33, %v3302_v50 }
0x3bc5   :  { %2701 = vtanh.f32 %v2355_v3 }
0x3bca   :  { %v2008_v32 = vpop.permute.xlu2 %2007 }
0x3bcb   :  { %v2702_v42 = vpop.eup %2701  ;;  %2011 = vst.msk [vmem:[#allocation4] sm:$0x30] %vm2010_vm2, %v2008_v32 }
0x3bcc   :  { %2359 = vrot.lane.b32.xlu0 %v2702_v42, %s2707_s22 }
0x3bd2   :  { %v2296_v46 = vpop.permute.xlu2 %2295 }
0x3bd3   :  { %2298 = vst.msk [vmem:[#allocation4 + $0x8] sm:$0x30] %vm2010_vm2, %v2296_v46 }
0x3bd4   :  { %2081 = vrot.lane.b32.xlu0 %v3294_v43, %s2707_s22  ;;  %v14_v43 = vstv %s3364_s8 }
0x3bd5   :  { %15 = vst [vmem:[#allocation5] sm:$0x1] %v14_v43 }
0x3bdc   :  { %v2510_v55 = vld [vmem:[#allocation5] ss:$0 sm:$0xff] }
0x3c3e   :  { %v2360_v39 = vpop.permute.xlu0 %2359 }
0x3c3f   :  { %v2362_v41 = vmul.f32 %v2360_v39, %v2357_v36 }
0x3c41   :  { %v2366_v45 = vadd.f32 %v2365_v40, %v2362_v41 }
0x3c43   :  { %2368 = vrot.lane.b32.xlu0 %v2366_v45, %s2707_s22 }
0x3c46   :  { %v2082_v50 = vpop.permute.xlu0 %2081 }
0x3c47   :  { %2085 = vst.msk [vmem:[#allocation4] sm:$0xc0] %vm2084_vm3, %v2082_v50 }
0x3c4e   :  { %v2372_v47 = vld [vmem:[#allocation4] sm:$0xff] }
0x3c4f   :  { %v2378_v48 = vmul.f32 %v2509_v22, %v2372_v47 }
0x3c51   :  { %v2380_v49 = vsel %vm43_vm5, %v2378_v48, 0.0 }
0x3c52   :  { %2381 = vadd.xlane.f32.xlu1 %v2380_v49 }
0x3cb5   :  { %v2369_v51 = vpop.permute.xlu0 %2368 }
0x3cb6   :  { %2371 = vst.msk [vmem:[#allocation4 + $0x8] sm:$0xc0] %vm2084_vm3, %v2369_v51 }
0x3cbd   :  { %v2373_v52 = vld [vmem:[#allocation4 + $0x8] sm:$0xff] }
0x3cbe   :  { %v2379_v53 = vmul.f32 %v2509_v22, %v2373_v52 }
0x3cc0   :  { %v2383_v54 = vsel %vm43_vm5, %v2379_v53, 0.0 }
0x3cc1   :  { %2384 = vadd.xlane.f32.xlu2 %v2383_v54 }
0x3cc5   :  { %v2382_v56 = vpop.xlane.xlu1 %2381 }
0x3cc6   :  { %v2390_v57 = vadd.f32 %v2510_v55, %v2382_v56 }
0x3cc8   :  { %2393 = vst.msk [vmem:[%s3365_s9] sm:$0xff] %vm2392_vm4, %v2390_v57 }
0x3d34   :  { %v2385_v58 = vpop.xlane.xlu2 %2384 }
0x3d35   :  { %v2391_v59 = vadd.f32 %v2510_v55, %v2385_v58 }
0x3d37   :  { %2394 = vst.msk [vmem:[%s3365_s9 + $0x8] sm:$0xff] %vm2392_vm4, %v2391_v59 }

</bundles_post_ra>
